<compile_context>
chip_gen: v7x
topology: tpu7x:2x2x1
jax: 0.10.0
libtpu: 0.0.40
codegen_flags: <defaults>
</compile_context>

<pallas_src>
import numpy as np
import jax
import jax.numpy as jnp
from jax.experimental import pallas as pl
from jax.experimental.pallas import tpu as pltpu

NEG_SLOPE = 0.01
BN_EPS = 1e-5
TARGET_SUBLANES = 2048            # ~rows_per_step * W per conv input tile
VMEM_LIMIT = 32 * 1024 * 1024     # headroom over the 16 MiB v5e default


def _leaky_relu(x):
    return jnp.where(x >= 0, x, NEG_SLOPE * x)


# ---------------------------------------------------------------------------
# Conv block: Conv2d(k=(1,3), pad=(0,1)) + BN(eval) + LeakyReLU + MaxPool(1,2)
# ---------------------------------------------------------------------------
def _make_conv_kernel(rw2, c_in):
    """rw2 = rows_per_step * (W // 2); c_in = input channels."""

    def kernel(x_ref, w_ref, shift_ref, skeep_ref, ekeep_ref, o_ref):
        # Even / odd input columns via stride-2 sublane loads (W on sublanes).
        x_e = x_ref[pl.ds(0, rw2, stride=2), :]          # x[..., 2j,   :]
        x_o = x_ref[pl.ds(1, rw2, stride=2), :]          # x[..., 2j+1, :]
        # +/-1 shifts along W (XLU roll).  Edge masks zero the "w-1" tap at
        # w==0 and the "w+1" tap at w==W-1 (padding == 0) and kill cross-row
        # wraparound inside the row-batched tile.
        x_o_m1 = pltpu.roll(x_o, shift=1, axis=0) * skeep_ref[...]
        x_e_p1 = pltpu.roll(x_e, shift=rw2 - 1, axis=0) * ekeep_ref[...]
        shift = shift_ref[...]                           # BN shift (+ conv bias)

        if c_in == 1:
            # Block 1: contraction dim would be 1 -> skip the MXU and use VPU
            # broadcast multiply-adds (w_ref is (3, C_out) f32).
            wl = w_ref[0:1, :]
            wc = w_ref[1:2, :]
            wr = w_ref[2:3, :]
            y_e = x_o_m1 * wl + x_e * wc + x_o * wr + shift
            y_o = x_e * wl + x_o * wc + x_e_p1 * wr + shift
        else:
            # Fused 3-tap conv: one bf16 MXU matmul with contraction 3*C_in.
            bf = jnp.bfloat16
            xe_b = x_e.astype(bf)
            xo_b = x_o.astype(bf)
            xm_b = x_o_m1.astype(bf)
            xp_b = x_e_p1.astype(bf)
            w_cat = w_ref[...]                           # (3*C_in, C_out) bf16
            cat_e = jnp.concatenate([xm_b, xe_b, xo_b], axis=-1)
            cat_o = jnp.concatenate([xe_b, xo_b, xp_b], axis=-1)
            y_e = jnp.dot(cat_e, w_cat,
                          preferred_element_type=jnp.float32) + shift
            y_o = jnp.dot(cat_o, w_cat,
                          preferred_element_type=jnp.float32) + shift

        # LeakyReLU then MaxPool(1,2): element-wise max of the two phases.
        # (Dropout is an eval-mode identity.)
        out = jnp.maximum(_leaky_relu(y_e), _leaky_relu(y_o))
        o_ref[...] = out.astype(o_ref.dtype)

    return kernel


def _pick_rows_per_step(rows, w_in):
    """Largest divisor R of `rows` giving ~TARGET_SUBLANES-tall, 8-aligned tiles."""
    w_out = w_in // 2
    target = max(1, TARGET_SUBLANES // max(w_in, 1))
    for r in range(min(rows, target), 0, -1):
        if rows % r == 0 and (r * w_in) % 8 == 0 and (r * w_out) % 8 == 0:
            return r
    return rows  # full-array block is always legal


def conv_block(act, w_cat, shift, *, rows, w_in):
    """act: (rows*w_in, c_in) f32 -> (rows*(w_in//2), c_out) f32."""
    c_in = act.shape[1]
    c_out = w_cat.shape[1]
    w_out = w_in // 2
    r = _pick_rows_per_step(rows, w_in)
    rw2 = r * w_out

    # Host-precomputed edge-mask multipliers (compile-time constants).
    pos = np.arange(rw2) % w_out
    skeep = (pos != 0).astype(np.float32).reshape(rw2, 1)
    ekeep = (pos != w_out - 1).astype(np.float32).reshape(rw2, 1)

    return pl.pallas_call(
        _make_conv_kernel(rw2, c_in),
        out_shape=jax.ShapeDtypeStruct((rows * w_out, c_out), jnp.float32),
        grid_spec=pltpu.PrefetchScalarGridSpec(
            num_scalar_prefetch=0,
            grid=(rows // r,),
            in_specs=[
                pl.BlockSpec((r * w_in, c_in), lambda i: (i, 0)),
                pl.BlockSpec(w_cat.shape, lambda i: (0, 0)),
                pl.BlockSpec((1, c_out), lambda i: (0, 0)),
                pl.BlockSpec((rw2, 1), lambda i: (0, 0)),
                pl.BlockSpec((rw2, 1), lambda i: (0, 0)),
            ],
            out_specs=pl.BlockSpec((rw2, c_out), lambda i: (i, 0)),
        ),
        compiler_params=pltpu.CompilerParams(
            dimension_semantics=("parallel",),   # row tiles independent
            vmem_limit_bytes=VMEM_LIMIT),
    )(act, w_cat, shift, skeep, ekeep)


# ---------------------------------------------------------------------------
# FC head: Linear(feat,128) -> LeakyReLU -> Dropout(identity) -> Linear(128,10)
# K-tiled over the (huge) contraction dim with an f32 VMEM accumulator.
# ---------------------------------------------------------------------------
def fc_kernel(x_ref, w1_ref, b1_ref, w2_ref, b2_ref, o_ref, acc_ref):
    k = pl.program_id(0)

    @pl.when(k == 0)
    def _():
        acc_ref[...] = jnp.zeros_like(acc_ref)

    acc_ref[...] += jnp.dot(x_ref[...], w1_ref[...],
                            preferred_element_type=jnp.float32)

    @pl.when(k == pl.num_programs(0) - 1)
    def _():
        h = _leaky_relu(acc_ref[...] + b1_ref[...])
        o_ref[...] = (jnp.dot(h, w2_ref[...],
                              preferred_element_type=jnp.float32)
                      + b2_ref[...]).astype(o_ref.dtype)


def _pick_fc_tile(feat):
    for tk in range(min(feat, 8192), 0, -128):
        if feat % tk == 0 and tk % 128 == 0:
            return tk
    return feat


def fc_forward(feat, w1, b1, w2, b2):
    n, k_total = feat.shape
    tk = _pick_fc_tile(k_total)
    return pl.pallas_call(
        fc_kernel,
        out_shape=jax.ShapeDtypeStruct((n, 10), jnp.float32),
        grid_spec=pltpu.PrefetchScalarGridSpec(
            num_scalar_prefetch=0,
            grid=(k_total // tk,),
            in_specs=[
                pl.BlockSpec((n, tk), lambda k: (0, k)),
                pl.BlockSpec((tk, 128), lambda k: (k, 0)),
                pl.BlockSpec((1, 128), lambda k: (0, 0)),
                pl.BlockSpec((128, 10), lambda k: (0, 0)),
                pl.BlockSpec((1, 10), lambda k: (0, 0)),
            ],
            out_specs=pl.BlockSpec((n, 10), lambda k: (0, 0)),
            scratch_shapes=[pltpu.VMEM((n, 128), jnp.float32)],
        ),
        compiler_params=pltpu.CompilerParams(
            dimension_semantics=("arbitrary",),   # K is a reduction axis
            vmem_limit_bytes=VMEM_LIMIT),
    )(feat, w1, b1, w2, b2)


# ---------------------------------------------------------------------------
# Parameters (inference-mode: BN running stats / conv bias folded host-side).
# ---------------------------------------------------------------------------
def init_params(key, input_channels, input_height, input_width):
    assert input_width % 16 == 0, "width must survive 4x MaxPool(1,2)"
    chans = [input_channels, 32, 64, 128, 256]
    keys = jax.random.split(key, 24)
    ki = 0
    blocks = []
    for i in range(4):
        c_in, c_out = chans[i], chans[i + 1]
        w = 0.1 * jax.random.normal(keys[ki], (c_out, c_in, 3), jnp.float32); ki += 1
        b = 0.1 * jax.random.normal(keys[ki], (c_out,), jnp.float32); ki += 1
        gamma = 1.0 + 0.1 * jax.random.normal(keys[ki], (c_out,), jnp.float32); ki += 1
        beta = 0.1 * jax.random.normal(keys[ki], (c_out,), jnp.float32); ki += 1
        mean = 0.1 * jax.random.normal(keys[ki], (c_out,), jnp.float32); ki += 1
        var = jnp.ones((c_out,), jnp.float32)
        scale = gamma / jnp.sqrt(var + BN_EPS)
        shift = scale * (b - mean) + beta                 # conv bias folded in
        w_folded = scale[:, None, None] * w               # BN scale folded in
        # (c_out, c_in, 3) -> (3*c_in, c_out), tap-major: [W_-1; W_0; W_+1]
        w_cat = jnp.transpose(w_folded, (2, 1, 0)).reshape(3 * c_in, c_out)
        w_dtype = jnp.float32 if c_in == 1 else jnp.bfloat16
        blocks.append(dict(w_cat=w_cat.astype(w_dtype),
                           shift=shift.reshape(1, c_out).astype(jnp.float32)))

    # 4 MaxPool(1,2) stages -> width // 16 (the reference hardcodes 204800,
    # which equals 256 * 10 * (1280 // 16) for its default input size).
    final_w = input_width // 16
    feat = 256 * input_height * final_w
    w1 = 0.01 * jax.random.normal(keys[ki], (feat, 128), jnp.float32); ki += 1
    b1 = 0.01 * jax.random.normal(keys[ki], (128,), jnp.float32); ki += 1
    w2 = 0.01 * jax.random.normal(keys[ki], (128, 10), jnp.float32); ki += 1
    b2 = 0.01 * jax.random.normal(keys[ki], (10,), jnp.float32); ki += 1
    # Re-order w1 rows from PyTorch's NCHW-flatten order (c, h, w) to the
    # (h, w, c) order produced by the channels-last conv pipeline, so the FC
    # consumes the activations with zero runtime transpose (same math).
    w1_hwc = (w1.reshape(256, input_height, final_w, 128)
                .transpose(1, 2, 0, 3).reshape(feat, 128))
    fc = dict(w1=w1_hwc.astype(jnp.bfloat16),
              b1=b1.reshape(1, 128).astype(jnp.float32),
              w2=w2.astype(jnp.float32),
              b2=b2.reshape(1, 10).astype(jnp.float32))
    return {"conv_blocks": blocks, "fc": fc}


@jax.jit
def eegnet2d_forward(x, params):
    # TODO(synk): Dropout layers are eval-mode identities (no RNG masking).
    n, c_in, hgt, wid = x.shape
    rows = n * hgt
    # NCHW -> channels-last rows-flattened (N*H*W, C); for C_in==1 this is
    # effectively just a reshape.  Only layout change before the FC layer.
    act = jnp.transpose(x, (0, 2, 3, 1)).reshape(rows * wid, c_in)
    act = act.astype(jnp.float32)
    w = wid
    for blk in params["conv_blocks"]:
        act = conv_block(act, blk["w_cat"], blk["shift"], rows=rows, w_in=w)
        w //= 2
    # (N*H*W4, 256) -> (N, H*W4*256); matches the pre-permuted w1 row order
    # (equivalent to PyTorch's x.view(N, -1) with the original Linear weight).
    feat = act.reshape(n, -1).astype(jnp.bfloat16)
    fc = params["fc"]
    return fc_forward(feat, fc["w1"], fc["b1"], fc["w2"], fc["b2"])


if __name__ == "__main__":
    N, C_IN, H, W = 2, 1, 4, 64              # small shapes; W divisible by 16
    key = jax.random.PRNGKey(0)
    pkey, xkey = jax.random.split(key)
    params = init_params(pkey, C_IN, H, W)
    x = jax.random.normal(xkey, (N, C_IN, H, W), jnp.float32)

    out = eegnet2d_forward(x, params)
    jax.block_until_ready(out)
    assert out.shape == (N, 10) and out.dtype == jnp.float32
    assert bool(jnp.all(jnp.isfinite(out)))
    print("KERNEL_OK")
</pallas_src>

<mosaic_0001>
module attributes {stable_mosaic.version = 11 : i64} {
  func.func @kernel(%arg0: i32, %arg1: memref<512x1xf32, #tpu.memory_space<vmem>>, %arg2: memref<3x32xf32, #tpu.memory_space<vmem>>, %arg3: memref<1x32xf32, #tpu.memory_space<vmem>>, %arg4: memref<256x1xf32, #tpu.memory_space<vmem>>, %arg5: memref<256x1xf32, #tpu.memory_space<vmem>>, %arg6: memref<256x32xf32, #tpu.memory_space<vmem>>) attributes {dimension_semantics = [#tpu.dimension_semantics<parallel>], iteration_bounds = array<i64: 1>, scalar_prefetch = 0 : i64, scratch_operands = 0 : i64, tpu.core_type = #tpu.core_type<tc>, window_params = [{transform_indices = @transform_0, window_bounds = array<i64: 512, 1>}, {pipeline_mode = #tpu.pipeline_mode<synchronous>, transform_indices = @transform_1, window_bounds = array<i64: 3, 32>}, {pipeline_mode = #tpu.pipeline_mode<synchronous>, transform_indices = @transform_2, window_bounds = array<i64: 1, 32>}, {pipeline_mode = #tpu.pipeline_mode<synchronous>, transform_indices = @transform_3, window_bounds = array<i64: 256, 1>}, {pipeline_mode = #tpu.pipeline_mode<synchronous>, transform_indices = @transform_4, window_bounds = array<i64: 256, 1>}, {transform_indices = @transform_5, window_bounds = array<i64: 256, 32>}]} {
    %c0 = arith.constant 0 : index
    %c0_0 = arith.constant 0 : index
    %0 = tpu.strided_load %arg1[%c0, %c0_0] {strides = array<i32: 2, 1>} : memref<512x1xf32, #tpu.memory_space<vmem>>, vector<256x1xf32>
    %c1 = arith.constant 1 : index
    %c0_1 = arith.constant 0 : index
    %1 = tpu.strided_load %arg1[%c1, %c0_1] {strides = array<i32: 2, 1>} : memref<512x1xf32, #tpu.memory_space<vmem>>, vector<256x1xf32>
    %c1_i32 = arith.constant 1 : i32
    %2 = tpu.dynamic_rotate %1 by %c1_i32 dim 0 : vector<256x1xf32>, i32 -> vector<256x1xf32>
    %c0_2 = arith.constant 0 : index
    %c0_3 = arith.constant 0 : index
    %3 = vector.load %arg4[%c0_2, %c0_3] : memref<256x1xf32, #tpu.memory_space<vmem>>, vector<256x1xf32>
    %4 = arith.mulf %2, %3 : vector<256x1xf32>
    %c255_i32 = arith.constant 255 : i32
    %5 = tpu.dynamic_rotate %0 by %c255_i32 dim 0 : vector<256x1xf32>, i32 -> vector<256x1xf32>
    %c0_4 = arith.constant 0 : index
    %c0_5 = arith.constant 0 : index
    %6 = vector.load %arg5[%c0_4, %c0_5] : memref<256x1xf32, #tpu.memory_space<vmem>>, vector<256x1xf32>
    %7 = arith.mulf %5, %6 : vector<256x1xf32>
    %c0_6 = arith.constant 0 : index
    %c0_7 = arith.constant 0 : index
    %8 = vector.load %arg3[%c0_6, %c0_7] : memref<1x32xf32, #tpu.memory_space<vmem>>, vector<1x32xf32>
    %c0_8 = arith.constant 0 : index
    %c0_9 = arith.constant 0 : index
    %9 = vector.load %arg2[%c0_8, %c0_9] : memref<3x32xf32, #tpu.memory_space<vmem>>, vector<1x32xf32>
    %c1_10 = arith.constant 1 : index
    %c0_11 = arith.constant 0 : index
    %10 = vector.load %arg2[%c1_10, %c0_11] : memref<3x32xf32, #tpu.memory_space<vmem>>, vector<1x32xf32>
    %c2 = arith.constant 2 : index
    %c0_12 = arith.constant 0 : index
    %11 = vector.load %arg2[%c2, %c0_12] : memref<3x32xf32, #tpu.memory_space<vmem>>, vector<1x32xf32>
    %12 = vector.broadcast %4 : vector<256x1xf32> to vector<256x32xf32>
    %13 = vector.broadcast %9 : vector<1x32xf32> to vector<256x32xf32>
    %14 = arith.mulf %12, %13 : vector<256x32xf32>
    %15 = vector.broadcast %0 : vector<256x1xf32> to vector<256x32xf32>
    %16 = vector.broadcast %10 : vector<1x32xf32> to vector<256x32xf32>
    %17 = arith.mulf %15, %16 : vector<256x32xf32>
    %18 = arith.addf %14, %17 : vector<256x32xf32>
    %19 = vector.broadcast %1 : vector<256x1xf32> to vector<256x32xf32>
    %20 = vector.broadcast %11 : vector<1x32xf32> to vector<256x32xf32>
    %21 = arith.mulf %19, %20 : vector<256x32xf32>
    %22 = arith.addf %18, %21 : vector<256x32xf32>
    %23 = vector.broadcast %8 : vector<1x32xf32> to vector<256x32xf32>
    %24 = arith.addf %22, %23 : vector<256x32xf32>
    %25 = vector.broadcast %0 : vector<256x1xf32> to vector<256x32xf32>
    %26 = vector.broadcast %9 : vector<1x32xf32> to vector<256x32xf32>
    %27 = arith.mulf %25, %26 : vector<256x32xf32>
    %28 = vector.broadcast %1 : vector<256x1xf32> to vector<256x32xf32>
    %29 = vector.broadcast %10 : vector<1x32xf32> to vector<256x32xf32>
    %30 = arith.mulf %28, %29 : vector<256x32xf32>
    %31 = arith.addf %27, %30 : vector<256x32xf32>
    %32 = vector.broadcast %7 : vector<256x1xf32> to vector<256x32xf32>
    %33 = vector.broadcast %11 : vector<1x32xf32> to vector<256x32xf32>
    %34 = arith.mulf %32, %33 : vector<256x32xf32>
    %35 = arith.addf %31, %34 : vector<256x32xf32>
    %36 = vector.broadcast %8 : vector<1x32xf32> to vector<256x32xf32>
    %37 = arith.addf %35, %36 : vector<256x32xf32>
    %cst = arith.constant 0.000000e+00 : f32
    %38 = vector.broadcast %cst : f32 to vector<256x32xf32>
    %39 = arith.cmpf oge, %24, %38 : vector<256x32xf32>
    %cst_13 = arith.constant 0.00999999977 : f32
    %40 = vector.broadcast %cst_13 : f32 to vector<256x32xf32>
    %41 = arith.mulf %40, %24 : vector<256x32xf32>
    %42 = arith.select %39, %24, %41 : vector<256x32xi1>, vector<256x32xf32>
    %cst_14 = arith.constant 0.000000e+00 : f32
    %43 = vector.broadcast %cst_14 : f32 to vector<256x32xf32>
    %44 = arith.cmpf oge, %37, %43 : vector<256x32xf32>
    %cst_15 = arith.constant 0.00999999977 : f32
    %45 = vector.broadcast %cst_15 : f32 to vector<256x32xf32>
    %46 = arith.mulf %45, %37 : vector<256x32xf32>
    %47 = arith.select %44, %37, %46 : vector<256x32xi1>, vector<256x32xf32>
    %48 = arith.maximumf %42, %47 : vector<256x32xf32>
    %c0_16 = arith.constant 0 : index
    %c0_17 = arith.constant 0 : index
    %49 = vector.load %arg6[%c0_16, %c0_17] : memref<256x32xf32, #tpu.memory_space<vmem>>, vector<256x32xf32>
    tpu.vector_store %arg6[%c0_16, %c0_17], %48 {strides = array<i32>} : memref<256x32xf32, #tpu.memory_space<vmem>>, vector<256x32xf32>,
    return
  }
  func.func @transform_0(%arg0: i32) -> (i32, i32) {
    %c0_i32 = arith.constant 0 : i32
    %c0_i32_0 = arith.constant 0 : i32
    return %arg0, %c0_i32 : i32, i32
  }
  func.func @transform_1(%arg0: i32) -> (i32, i32) {
    %c0_i32 = arith.constant 0 : i32
    %c0_i32_0 = arith.constant 0 : i32
    %c0_i32_1 = arith.constant 0 : i32
    return %c0_i32, %c0_i32_0 : i32, i32
  }
  func.func @transform_2(%arg0: i32) -> (i32, i32) {
    %c0_i32 = arith.constant 0 : i32
    %c0_i32_0 = arith.constant 0 : i32
    %c0_i32_1 = arith.constant 0 : i32
    return %c0_i32, %c0_i32_0 : i32, i32
  }
  func.func @transform_3(%arg0: i32) -> (i32, i32) {
    %c0_i32 = arith.constant 0 : i32
    %c0_i32_0 = arith.constant 0 : i32
    %c0_i32_1 = arith.constant 0 : i32
    return %c0_i32, %c0_i32_0 : i32, i32
  }
  func.func @transform_4(%arg0: i32) -> (i32, i32) {
    %c0_i32 = arith.constant 0 : i32
    %c0_i32_0 = arith.constant 0 : i32
    %c0_i32_1 = arith.constant 0 : i32
    return %c0_i32, %c0_i32_0 : i32, i32
  }
  func.func @transform_5(%arg0: i32) -> (i32, i32) {
    %c0_i32 = arith.constant 0 : i32
    %c0_i32_0 = arith.constant 0 : i32
    return %arg0, %c0_i32 : i32, i32
  }
}

module attributes {stable_mosaic.version = 11 : i64} {
  func.func @kernel(%arg0: i32, %arg1: memref<256x32xf32, #tpu.memory_space<vmem>>, %arg2: memref<96x64xbf16, #tpu.memory_space<vmem>>, %arg3: memref<1x64xf32, #tpu.memory_space<vmem>>, %arg4: memref<128x1xf32, #tpu.memory_space<vmem>>, %arg5: memref<128x1xf32, #tpu.memory_space<vmem>>, %arg6: memref<128x64xf32, #tpu.memory_space<vmem>>) attributes {dimension_semantics = [#tpu.dimension_semantics<parallel>], iteration_bounds = array<i64: 1>, scalar_prefetch = 0 : i64, scratch_operands = 0 : i64, tpu.core_type = #tpu.core_type<tc>, window_params = [{transform_indices = @transform_0, window_bounds = array<i64: 256, 32>}, {pipeline_mode = #tpu.pipeline_mode<synchronous>, transform_indices = @transform_1, window_bounds = array<i64: 96, 64>}, {pipeline_mode = #tpu.pipeline_mode<synchronous>, transform_indices = @transform_2, window_bounds = array<i64: 1, 64>}, {pipeline_mode = #tpu.pipeline_mode<synchronous>, transform_indices = @transform_3, window_bounds = array<i64: 128, 1>}, {pipeline_mode = #tpu.pipeline_mode<synchronous>, transform_indices = @transform_4, window_bounds = array<i64: 128, 1>}, {transform_indices = @transform_5, window_bounds = array<i64: 128, 64>}]} {
    %c0 = arith.constant 0 : index
    %c0_0 = arith.constant 0 : index
    %0 = tpu.strided_load %arg1[%c0, %c0_0] {strides = array<i32: 2, 1>} : memref<256x32xf32, #tpu.memory_space<vmem>>, vector<128x32xf32>
    %c1 = arith.constant 1 : index
    %c0_1 = arith.constant 0 : index
    %1 = tpu.strided_load %arg1[%c1, %c0_1] {strides = array<i32: 2, 1>} : memref<256x32xf32, #tpu.memory_space<vmem>>, vector<128x32xf32>
    %c1_i32 = arith.constant 1 : i32
    %2 = tpu.dynamic_rotate %1 by %c1_i32 dim 0 : vector<128x32xf32>, i32 -> vector<128x32xf32>
    %c0_2 = arith.constant 0 : index
    %c0_3 = arith.constant 0 : index
    %3 = vector.load %arg4[%c0_2, %c0_3] : memref<128x1xf32, #tpu.memory_space<vmem>>, vector<128x1xf32>
    %4 = vector.broadcast %3 : vector<128x1xf32> to vector<128x32xf32>
    %5 = arith.mulf %2, %4 : vector<128x32xf32>
    %c127_i32 = arith.constant 127 : i32
    %6 = tpu.dynamic_rotate %0 by %c127_i32 dim 0 : vector<128x32xf32>, i32 -> vector<128x32xf32>
    %c0_4 = arith.constant 0 : index
    %c0_5 = arith.constant 0 : index
    %7 = vector.load %arg5[%c0_4, %c0_5] : memref<128x1xf32, #tpu.memory_space<vmem>>, vector<128x1xf32>
    %8 = vector.broadcast %7 : vector<128x1xf32> to vector<128x32xf32>
    %9 = arith.mulf %6, %8 : vector<128x32xf32>
    %c0_6 = arith.constant 0 : index
    %c0_7 = arith.constant 0 : index
    %10 = vector.load %arg3[%c0_6, %c0_7] : memref<1x64xf32, #tpu.memory_space<vmem>>, vector<1x64xf32>
    %11 = arith.truncf %0 : vector<128x32xf32> to vector<128x32xbf16>
    %12 = arith.truncf %1 : vector<128x32xf32> to vector<128x32xbf16>
    %13 = arith.truncf %5 : vector<128x32xf32> to vector<128x32xbf16>
    %14 = arith.truncf %9 : vector<128x32xf32> to vector<128x32xbf16>
    %c0_8 = arith.constant 0 : index
    %c0_9 = arith.constant 0 : index
    %15 = vector.load %arg2[%c0_8, %c0_9] : memref<96x64xbf16, #tpu.memory_space<vmem>>, vector<96x64xbf16>
    %16 = tpu.concatenate %13, %11, %12 in 1 : vector<128x32xbf16>, vector<128x32xbf16>, vector<128x32xbf16> -> vector<128x96xbf16>
    %17 = tpu.concatenate %11, %12, %14 in 1 : vector<128x32xbf16>, vector<128x32xbf16>, vector<128x32xbf16> -> vector<128x96xbf16>
    %cst = arith.constant dense<0.000000e+00> : vector<128x64xf32>
    %18 = tpu.matmul %16, %15, %cst {dimension_numbers = #tpu.dot_dimension_numbers<[1], [0], [0], [1], [0, 0, 1, 1], [], []>} : vector<128x96xbf16>, vector<96x64xbf16>, vector<128x64xf32> -> vector<128x64xf32>
    %19 = vector.broadcast %10 : vector<1x64xf32> to vector<128x64xf32>
    %20 = arith.addf %18, %19 : vector<128x64xf32>
    %cst_10 = arith.constant dense<0.000000e+00> : vector<128x64xf32>
    %21 = tpu.matmul %17, %15, %cst_10 {dimension_numbers = #tpu.dot_dimension_numbers<[1], [0], [0], [1], [0, 0, 1, 1], [], []>} : vector<128x96xbf16>, vector<96x64xbf16>, vector<128x64xf32> -> vector<128x64xf32>
    %22 = vector.broadcast %10 : vector<1x64xf32> to vector<128x64xf32>
    %23 = arith.addf %21, %22 : vector<128x64xf32>
    %cst_11 = arith.constant 0.000000e+00 : f32
    %24 = vector.broadcast %cst_11 : f32 to vector<128x64xf32>
    %25 = arith.cmpf oge, %20, %24 : vector<128x64xf32>
    %cst_12 = arith.constant 0.00999999977 : f32
    %26 = vector.broadcast %cst_12 : f32 to vector<128x64xf32>
    %27 = arith.mulf %26, %20 : vector<128x64xf32>
    %28 = arith.select %25, %20, %27 : vector<128x64xi1>, vector<128x64xf32>
    %cst_13 = arith.constant 0.000000e+00 : f32
    %29 = vector.broadcast %cst_13 : f32 to vector<128x64xf32>
    %30 = arith.cmpf oge, %23, %29 : vector<128x64xf32>
    %cst_14 = arith.constant 0.00999999977 : f32
    %31 = vector.broadcast %cst_14 : f32 to vector<128x64xf32>
    %32 = arith.mulf %31, %23 : vector<128x64xf32>
    %33 = arith.select %30, %23, %32 : vector<128x64xi1>, vector<128x64xf32>
    %34 = arith.maximumf %28, %33 : vector<128x64xf32>
    %c0_15 = arith.constant 0 : index
    %c0_16 = arith.constant 0 : index
    %35 = vector.load %arg6[%c0_15, %c0_16] : memref<128x64xf32, #tpu.memory_space<vmem>>, vector<128x64xf32>
    tpu.vector_store %arg6[%c0_15, %c0_16], %34 {strides = array<i32>} : memref<128x64xf32, #tpu.memory_space<vmem>>, vector<128x64xf32>,
    return
  }
  func.func @transform_0(%arg0: i32) -> (i32, i32) {
    %c0_i32 = arith.constant 0 : i32
    %c0_i32_0 = arith.constant 0 : i32
    return %arg0, %c0_i32 : i32, i32
  }
  func.func @transform_1(%arg0: i32) -> (i32, i32) {
    %c0_i32 = arith.constant 0 : i32
    %c0_i32_0 = arith.constant 0 : i32
    %c0_i32_1 = arith.constant 0 : i32
    return %c0_i32, %c0_i32_0 : i32, i32
  }
  func.func @transform_2(%arg0: i32) -> (i32, i32) {
    %c0_i32 = arith.constant 0 : i32
    %c0_i32_0 = arith.constant 0 : i32
    %c0_i32_1 = arith.constant 0 : i32
    return %c0_i32, %c0_i32_0 : i32, i32
  }
  func.func @transform_3(%arg0: i32) -> (i32, i32) {
    %c0_i32 = arith.constant 0 : i32
    %c0_i32_0 = arith.constant 0 : i32
    %c0_i32_1 = arith.constant 0 : i32
    return %c0_i32, %c0_i32_0 : i32, i32
  }
  func.func @transform_4(%arg0: i32) -> (i32, i32) {
    %c0_i32 = arith.constant 0 : i32
    %c0_i32_0 = arith.constant 0 : i32
    %c0_i32_1 = arith.constant 0 : i32
    return %c0_i32, %c0_i32_0 : i32, i32
  }
  func.func @transform_5(%arg0: i32) -> (i32, i32) {
    %c0_i32 = arith.constant 0 : i32
    %c0_i32_0 = arith.constant 0 : i32
    return %arg0, %c0_i32 : i32, i32
  }
}

module attributes {stable_mosaic.version = 11 : i64} {
  func.func @kernel(%arg0: i32, %arg1: memref<128x64xf32, #tpu.memory_space<vmem>>, %arg2: memref<192x128xbf16, #tpu.memory_space<vmem>>, %arg3: memref<1x128xf32, #tpu.memory_space<vmem>>, %arg4: memref<64x1xf32, #tpu.memory_space<vmem>>, %arg5: memref<64x1xf32, #tpu.memory_space<vmem>>, %arg6: memref<64x128xf32, #tpu.memory_space<vmem>>) attributes {dimension_semantics = [#tpu.dimension_semantics<parallel>], iteration_bounds = array<i64: 1>, scalar_prefetch = 0 : i64, scratch_operands = 0 : i64, tpu.core_type = #tpu.core_type<tc>, window_params = [{transform_indices = @transform_0, window_bounds = array<i64: 128, 64>}, {pipeline_mode = #tpu.pipeline_mode<synchronous>, transform_indices = @transform_1, window_bounds = array<i64: 192, 128>}, {pipeline_mode = #tpu.pipeline_mode<synchronous>, transform_indices = @transform_2, window_bounds = array<i64: 1, 128>}, {pipeline_mode = #tpu.pipeline_mode<synchronous>, transform_indices = @transform_3, window_bounds = array<i64: 64, 1>}, {pipeline_mode = #tpu.pipeline_mode<synchronous>, transform_indices = @transform_4, window_bounds = array<i64: 64, 1>}, {transform_indices = @transform_5, window_bounds = array<i64: 64, 128>}]} {
    %c0 = arith.constant 0 : index
    %c0_0 = arith.constant 0 : index
    %0 = tpu.strided_load %arg1[%c0, %c0_0] {strides = array<i32: 2, 1>} : memref<128x64xf32, #tpu.memory_space<vmem>>, vector<64x64xf32>
    %c1 = arith.constant 1 : index
    %c0_1 = arith.constant 0 : index
    %1 = tpu.strided_load %arg1[%c1, %c0_1] {strides = array<i32: 2, 1>} : memref<128x64xf32, #tpu.memory_space<vmem>>, vector<64x64xf32>
    %c1_i32 = arith.constant 1 : i32
    %2 = tpu.dynamic_rotate %1 by %c1_i32 dim 0 : vector<64x64xf32>, i32 -> vector<64x64xf32>
    %c0_2 = arith.constant 0 : index
    %c0_3 = arith.constant 0 : index
    %3 = vector.load %arg4[%c0_2, %c0_3] : memref<64x1xf32, #tpu.memory_space<vmem>>, vector<64x1xf32>
    %4 = vector.broadcast %3 : vector<64x1xf32> to vector<64x64xf32>
    %5 = arith.mulf %2, %4 : vector<64x64xf32>
    %c63_i32 = arith.constant 63 : i32
    %6 = tpu.dynamic_rotate %0 by %c63_i32 dim 0 : vector<64x64xf32>, i32 -> vector<64x64xf32>
    %c0_4 = arith.constant 0 : index
    %c0_5 = arith.constant 0 : index
    %7 = vector.load %arg5[%c0_4, %c0_5] : memref<64x1xf32, #tpu.memory_space<vmem>>, vector<64x1xf32>
    %8 = vector.broadcast %7 : vector<64x1xf32> to vector<64x64xf32>
    %9 = arith.mulf %6, %8 : vector<64x64xf32>
    %c0_6 = arith.constant 0 : index
    %c0_7 = arith.constant 0 : index
    %10 = vector.load %arg3[%c0_6, %c0_7] : memref<1x128xf32, #tpu.memory_space<vmem>>, vector<1x128xf32>
    %11 = arith.truncf %0 : vector<64x64xf32> to vector<64x64xbf16>
    %12 = arith.truncf %1 : vector<64x64xf32> to vector<64x64xbf16>
    %13 = arith.truncf %5 : vector<64x64xf32> to vector<64x64xbf16>
    %14 = arith.truncf %9 : vector<64x64xf32> to vector<64x64xbf16>
    %c0_8 = arith.constant 0 : index
    %c0_9 = arith.constant 0 : index
    %15 = vector.load %arg2[%c0_8, %c0_9] : memref<192x128xbf16, #tpu.memory_space<vmem>>, vector<192x128xbf16>
    %16 = tpu.concatenate %13, %11, %12 in 1 : vector<64x64xbf16>, vector<64x64xbf16>, vector<64x64xbf16> -> vector<64x192xbf16>
    %17 = tpu.concatenate %11, %12, %14 in 1 : vector<64x64xbf16>, vector<64x64xbf16>, vector<64x64xbf16> -> vector<64x192xbf16>
    %cst = arith.constant dense<0.000000e+00> : vector<64x128xf32>
    %18 = tpu.matmul %16, %15, %cst {dimension_numbers = #tpu.dot_dimension_numbers<[1], [0], [0], [1], [0, 0, 1, 1], [], []>} : vector<64x192xbf16>, vector<192x128xbf16>, vector<64x128xf32> -> vector<64x128xf32>
    %19 = vector.broadcast %10 : vector<1x128xf32> to vector<64x128xf32>
    %20 = arith.addf %18, %19 : vector<64x128xf32>
    %cst_10 = arith.constant dense<0.000000e+00> : vector<64x128xf32>
    %21 = tpu.matmul %17, %15, %cst_10 {dimension_numbers = #tpu.dot_dimension_numbers<[1], [0], [0], [1], [0, 0, 1, 1], [], []>} : vector<64x192xbf16>, vector<192x128xbf16>, vector<64x128xf32> -> vector<64x128xf32>
    %22 = vector.broadcast %10 : vector<1x128xf32> to vector<64x128xf32>
    %23 = arith.addf %21, %22 : vector<64x128xf32>
    %cst_11 = arith.constant 0.000000e+00 : f32
    %24 = vector.broadcast %cst_11 : f32 to vector<64x128xf32>
    %25 = arith.cmpf oge, %20, %24 : vector<64x128xf32>
    %cst_12 = arith.constant 0.00999999977 : f32
    %26 = vector.broadcast %cst_12 : f32 to vector<64x128xf32>
    %27 = arith.mulf %26, %20 : vector<64x128xf32>
    %28 = arith.select %25, %20, %27 : vector<64x128xi1>, vector<64x128xf32>
    %cst_13 = arith.constant 0.000000e+00 : f32
    %29 = vector.broadcast %cst_13 : f32 to vector<64x128xf32>
    %30 = arith.cmpf oge, %23, %29 : vector<64x128xf32>
    %cst_14 = arith.constant 0.00999999977 : f32
    %31 = vector.broadcast %cst_14 : f32 to vector<64x128xf32>
    %32 = arith.mulf %31, %23 : vector<64x128xf32>
    %33 = arith.select %30, %23, %32 : vector<64x128xi1>, vector<64x128xf32>
    %34 = arith.maximumf %28, %33 : vector<64x128xf32>
    %c0_15 = arith.constant 0 : index
    %c0_16 = arith.constant 0 : index
    %35 = vector.load %arg6[%c0_15, %c0_16] : memref<64x128xf32, #tpu.memory_space<vmem>>, vector<64x128xf32>
    tpu.vector_store %arg6[%c0_15, %c0_16], %34 {strides = array<i32>} : memref<64x128xf32, #tpu.memory_space<vmem>>, vector<64x128xf32>,
    return
  }
  func.func @transform_0(%arg0: i32) -> (i32, i32) {
    %c0_i32 = arith.constant 0 : i32
    %c0_i32_0 = arith.constant 0 : i32
    return %arg0, %c0_i32 : i32, i32
  }
  func.func @transform_1(%arg0: i32) -> (i32, i32) {
    %c0_i32 = arith.constant 0 : i32
    %c0_i32_0 = arith.constant 0 : i32
    %c0_i32_1 = arith.constant 0 : i32
    return %c0_i32, %c0_i32_0 : i32, i32
  }
  func.func @transform_2(%arg0: i32) -> (i32, i32) {
    %c0_i32 = arith.constant 0 : i32
    %c0_i32_0 = arith.constant 0 : i32
    %c0_i32_1 = arith.constant 0 : i32
    return %c0_i32, %c0_i32_0 : i32, i32
  }
  func.func @transform_3(%arg0: i32) -> (i32, i32) {
    %c0_i32 = arith.constant 0 : i32
    %c0_i32_0 = arith.constant 0 : i32
    %c0_i32_1 = arith.constant 0 : i32
    return %c0_i32, %c0_i32_0 : i32, i32
  }
  func.func @transform_4(%arg0: i32) -> (i32, i32) {
    %c0_i32 = arith.constant 0 : i32
    %c0_i32_0 = arith.constant 0 : i32
    %c0_i32_1 = arith.constant 0 : i32
    return %c0_i32, %c0_i32_0 : i32, i32
  }
  func.func @transform_5(%arg0: i32) -> (i32, i32) {
    %c0_i32 = arith.constant 0 : i32
    %c0_i32_0 = arith.constant 0 : i32
    return %arg0, %c0_i32 : i32, i32
  }
}

module attributes {stable_mosaic.version = 11 : i64} {
  func.func @kernel(%arg0: i32, %arg1: memref<64x128xf32, #tpu.memory_space<vmem>>, %arg2: memref<384x256xbf16, #tpu.memory_space<vmem>>, %arg3: memref<1x256xf32, #tpu.memory_space<vmem>>, %arg4: memref<32x1xf32, #tpu.memory_space<vmem>>, %arg5: memref<32x1xf32, #tpu.memory_space<vmem>>, %arg6: memref<32x256xf32, #tpu.memory_space<vmem>>) attributes {dimension_semantics = [#tpu.dimension_semantics<parallel>], iteration_bounds = array<i64: 1>, scalar_prefetch = 0 : i64, scratch_operands = 0 : i64, tpu.core_type = #tpu.core_type<tc>, window_params = [{transform_indices = @transform_0, window_bounds = array<i64: 64, 128>}, {pipeline_mode = #tpu.pipeline_mode<synchronous>, transform_indices = @transform_1, window_bounds = array<i64: 384, 256>}, {pipeline_mode = #tpu.pipeline_mode<synchronous>, transform_indices = @transform_2, window_bounds = array<i64: 1, 256>}, {pipeline_mode = #tpu.pipeline_mode<synchronous>, transform_indices = @transform_3, window_bounds = array<i64: 32, 1>}, {pipeline_mode = #tpu.pipeline_mode<synchronous>, transform_indices = @transform_4, window_bounds = array<i64: 32, 1>}, {transform_indices = @transform_5, window_bounds = array<i64: 32, 256>}]} {
    %c0 = arith.constant 0 : index
    %c0_0 = arith.constant 0 : index
    %0 = tpu.strided_load %arg1[%c0, %c0_0] {strides = array<i32: 2, 1>} : memref<64x128xf32, #tpu.memory_space<vmem>>, vector<32x128xf32>
    %c1 = arith.constant 1 : index
    %c0_1 = arith.constant 0 : index
    %1 = tpu.strided_load %arg1[%c1, %c0_1] {strides = array<i32: 2, 1>} : memref<64x128xf32, #tpu.memory_space<vmem>>, vector<32x128xf32>
    %c1_i32 = arith.constant 1 : i32
    %2 = tpu.dynamic_rotate %1 by %c1_i32 dim 0 : vector<32x128xf32>, i32 -> vector<32x128xf32>
    %c0_2 = arith.constant 0 : index
    %c0_3 = arith.constant 0 : index
    %3 = vector.load %arg4[%c0_2, %c0_3] : memref<32x1xf32, #tpu.memory_space<vmem>>, vector<32x1xf32>
    %4 = vector.broadcast %3 : vector<32x1xf32> to vector<32x128xf32>
    %5 = arith.mulf %2, %4 : vector<32x128xf32>
    %c31_i32 = arith.constant 31 : i32
    %6 = tpu.dynamic_rotate %0 by %c31_i32 dim 0 : vector<32x128xf32>, i32 -> vector<32x128xf32>
    %c0_4 = arith.constant 0 : index
    %c0_5 = arith.constant 0 : index
    %7 = vector.load %arg5[%c0_4, %c0_5] : memref<32x1xf32, #tpu.memory_space<vmem>>, vector<32x1xf32>
    %8 = vector.broadcast %7 : vector<32x1xf32> to vector<32x128xf32>
    %9 = arith.mulf %6, %8 : vector<32x128xf32>
    %c0_6 = arith.constant 0 : index
    %c0_7 = arith.constant 0 : index
    %10 = vector.load %arg3[%c0_6, %c0_7] : memref<1x256xf32, #tpu.memory_space<vmem>>, vector<1x256xf32>
    %11 = arith.truncf %0 : vector<32x128xf32> to vector<32x128xbf16>
    %12 = arith.truncf %1 : vector<32x128xf32> to vector<32x128xbf16>
    %13 = arith.truncf %5 : vector<32x128xf32> to vector<32x128xbf16>
    %14 = arith.truncf %9 : vector<32x128xf32> to vector<32x128xbf16>
    %c0_8 = arith.constant 0 : index
    %c0_9 = arith.constant 0 : index
    %15 = vector.load %arg2[%c0_8, %c0_9] : memref<384x256xbf16, #tpu.memory_space<vmem>>, vector<384x256xbf16>
    %16 = tpu.concatenate %13, %11, %12 in 1 : vector<32x128xbf16>, vector<32x128xbf16>, vector<32x128xbf16> -> vector<32x384xbf16>
    %17 = tpu.concatenate %11, %12, %14 in 1 : vector<32x128xbf16>, vector<32x128xbf16>, vector<32x128xbf16> -> vector<32x384xbf16>
    %cst = arith.constant dense<0.000000e+00> : vector<32x256xf32>
    %18 = tpu.matmul %16, %15, %cst {dimension_numbers = #tpu.dot_dimension_numbers<[1], [0], [0], [1], [0, 0, 1, 1], [], []>} : vector<32x384xbf16>, vector<384x256xbf16>, vector<32x256xf32> -> vector<32x256xf32>
    %19 = vector.broadcast %10 : vector<1x256xf32> to vector<32x256xf32>
    %20 = arith.addf %18, %19 : vector<32x256xf32>
    %cst_10 = arith.constant dense<0.000000e+00> : vector<32x256xf32>
    %21 = tpu.matmul %17, %15, %cst_10 {dimension_numbers = #tpu.dot_dimension_numbers<[1], [0], [0], [1], [0, 0, 1, 1], [], []>} : vector<32x384xbf16>, vector<384x256xbf16>, vector<32x256xf32> -> vector<32x256xf32>
    %22 = vector.broadcast %10 : vector<1x256xf32> to vector<32x256xf32>
    %23 = arith.addf %21, %22 : vector<32x256xf32>
    %cst_11 = arith.constant 0.000000e+00 : f32
    %24 = vector.broadcast %cst_11 : f32 to vector<32x256xf32>
    %25 = arith.cmpf oge, %20, %24 : vector<32x256xf32>
    %cst_12 = arith.constant 0.00999999977 : f32
    %26 = vector.broadcast %cst_12 : f32 to vector<32x256xf32>
    %27 = arith.mulf %26, %20 : vector<32x256xf32>
    %28 = arith.select %25, %20, %27 : vector<32x256xi1>, vector<32x256xf32>
    %cst_13 = arith.constant 0.000000e+00 : f32
    %29 = vector.broadcast %cst_13 : f32 to vector<32x256xf32>
    %30 = arith.cmpf oge, %23, %29 : vector<32x256xf32>
    %cst_14 = arith.constant 0.00999999977 : f32
    %31 = vector.broadcast %cst_14 : f32 to vector<32x256xf32>
    %32 = arith.mulf %31, %23 : vector<32x256xf32>
    %33 = arith.select %30, %23, %32 : vector<32x256xi1>, vector<32x256xf32>
    %34 = arith.maximumf %28, %33 : vector<32x256xf32>
    %c0_15 = arith.constant 0 : index
    %c0_16 = arith.constant 0 : index
    %35 = vector.load %arg6[%c0_15, %c0_16] : memref<32x256xf32, #tpu.memory_space<vmem>>, vector<32x256xf32>
    tpu.vector_store %arg6[%c0_15, %c0_16], %34 {strides = array<i32>} : memref<32x256xf32, #tpu.memory_space<vmem>>, vector<32x256xf32>,
    return
  }
  func.func @transform_0(%arg0: i32) -> (i32, i32) {
    %c0_i32 = arith.constant 0 : i32
    %c0_i32_0 = arith.constant 0 : i32
    return %arg0, %c0_i32 : i32, i32
  }
  func.func @transform_1(%arg0: i32) -> (i32, i32) {
    %c0_i32 = arith.constant 0 : i32
    %c0_i32_0 = arith.constant 0 : i32
    %c0_i32_1 = arith.constant 0 : i32
    return %c0_i32, %c0_i32_0 : i32, i32
  }
  func.func @transform_2(%arg0: i32) -> (i32, i32) {
    %c0_i32 = arith.constant 0 : i32
    %c0_i32_0 = arith.constant 0 : i32
    %c0_i32_1 = arith.constant 0 : i32
    return %c0_i32, %c0_i32_0 : i32, i32
  }
  func.func @transform_3(%arg0: i32) -> (i32, i32) {
    %c0_i32 = arith.constant 0 : i32
    %c0_i32_0 = arith.constant 0 : i32
    %c0_i32_1 = arith.constant 0 : i32
    return %c0_i32, %c0_i32_0 : i32, i32
  }
  func.func @transform_4(%arg0: i32) -> (i32, i32) {
    %c0_i32 = arith.constant 0 : i32
    %c0_i32_0 = arith.constant 0 : i32
    %c0_i32_1 = arith.constant 0 : i32
    return %c0_i32, %c0_i32_0 : i32, i32
  }
  func.func @transform_5(%arg0: i32) -> (i32, i32) {
    %c0_i32 = arith.constant 0 : i32
    %c0_i32_0 = arith.constant 0 : i32
    return %arg0, %c0_i32 : i32, i32
  }
}

module attributes {stable_mosaic.version = 11 : i64} {
  func.func @fc_kernel(%arg0: i32, %arg1: memref<2x4096xbf16, #tpu.memory_space<vmem>>, %arg2: memref<4096x128xbf16, #tpu.memory_space<vmem>>, %arg3: memref<1x128xf32, #tpu.memory_space<vmem>>, %arg4: memref<128x10xf32, #tpu.memory_space<vmem>>, %arg5: memref<1x10xf32, #tpu.memory_space<vmem>>, %arg6: memref<2x10xf32, #tpu.memory_space<vmem>>, %arg7: memref<2x128xf32, #tpu.memory_space<vmem>>) attributes {dimension_semantics = [#tpu.dimension_semantics<arbitrary>], iteration_bounds = array<i64: 1>, scalar_prefetch = 0 : i64, scratch_operands = 1 : i64, tpu.core_type = #tpu.core_type<tc>, window_params = [{transform_indices = @transform_0, window_bounds = array<i64: 2, 4096>}, {transform_indices = @transform_1, window_bounds = array<i64: 4096, 128>}, {pipeline_mode = #tpu.pipeline_mode<synchronous>, transform_indices = @transform_2, window_bounds = array<i64: 1, 128>}, {pipeline_mode = #tpu.pipeline_mode<synchronous>, transform_indices = @transform_3, window_bounds = array<i64: 128, 10>}, {pipeline_mode = #tpu.pipeline_mode<synchronous>, transform_indices = @transform_4, window_bounds = array<i64: 1, 10>}, {pipeline_mode = #tpu.pipeline_mode<synchronous>, transform_indices = @transform_5, window_bounds = array<i64: 2, 10>}]} {
    %c0_i32 = arith.constant 0 : i32
    %0 = arith.cmpi eq, %arg0, %c0_i32 : i32
    %1 = arith.extui %0 : i1 to i32
    %c0_i32_0 = arith.constant 0 : i32
    %2 = arith.cmpi ne, %1, %c0_i32_0 : i32
    scf.if %2 {
      %cst_10 = arith.constant 0.000000e+00 : f32
      %12 = vector.broadcast %cst_10 : f32 to vector<2x128xf32>
      %c0_11 = arith.constant 0 : index
      %c0_12 = arith.constant 0 : index
      %13 = vector.load %arg7[%c0_11, %c0_12] : memref<2x128xf32, #tpu.memory_space<vmem>>, vector<2x128xf32>
      tpu.vector_store %arg7[%c0_11, %c0_12], %12 {strides = array<i32>} : memref<2x128xf32, #tpu.memory_space<vmem>>, vector<2x128xf32>,
    } else {
    }
    %c0 = arith.constant 0 : index
    %c0_1 = arith.constant 0 : index
    %3 = vector.load %arg7[%c0, %c0_1] : memref<2x128xf32, #tpu.memory_space<vmem>>, vector<2x128xf32>
    %c0_2 = arith.constant 0 : index
    %c0_3 = arith.constant 0 : index
    %4 = vector.load %arg1[%c0_2, %c0_3] : memref<2x4096xbf16, #tpu.memory_space<vmem>>, vector<2x4096xbf16>
    %c0_4 = arith.constant 0 : index
    %c0_5 = arith.constant 0 : index
    %5 = vector.load %arg2[%c0_4, %c0_5] : memref<4096x128xbf16, #tpu.memory_space<vmem>>, vector<4096x128xbf16>
    %cst = arith.constant dense<0.000000e+00> : vector<2x128xf32>
    %6 = tpu.matmul %4, %5, %cst {dimension_numbers = #tpu.dot_dimension_numbers<[1], [0], [0], [1], [0, 0, 1, 1], [], []>} : vector<2x4096xbf16>, vector<4096x128xbf16>, vector<2x128xf32> -> vector<2x128xf32>
    %7 = arith.addf %3, %6 : vector<2x128xf32>
    %c0_6 = arith.constant 0 : index
    %c0_7 = arith.constant 0 : index
    %8 = vector.load %arg7[%c0_6, %c0_7] : memref<2x128xf32, #tpu.memory_space<vmem>>, vector<2x128xf32>
    tpu.vector_store %arg7[%c0_6, %c0_7], %7 {strides = array<i32>} : memref<2x128xf32, #tpu.memory_space<vmem>>, vector<2x128xf32>,
    %c0_i32_8 = arith.constant 0 : i32
    %9 = arith.cmpi eq, %arg0, %c0_i32_8 : i32
    %10 = arith.extui %9 : i1 to i32
    %c0_i32_9 = arith.constant 0 : i32
    %11 = arith.cmpi ne, %10, %c0_i32_9 : i32
    scf.if %11 {
      %c0_10 = arith.constant 0 : index
      %c0_11 = arith.constant 0 : index
      %12 = vector.load %arg7[%c0_10, %c0_11] : memref<2x128xf32, #tpu.memory_space<vmem>>, vector<2x128xf32>
      %c0_12 = arith.constant 0 : index
      %c0_13 = arith.constant 0 : index
      %13 = vector.load %arg3[%c0_12, %c0_13] : memref<1x128xf32, #tpu.memory_space<vmem>>, vector<1x128xf32>
      %14 = vector.broadcast %13 : vector<1x128xf32> to vector<2x128xf32>
      %15 = arith.addf %12, %14 : vector<2x128xf32>
      %cst_14 = arith.constant 0.000000e+00 : f32
      %16 = vector.broadcast %cst_14 : f32 to vector<2x128xf32>
      %17 = arith.cmpf oge, %15, %16 : vector<2x128xf32>
      %cst_15 = arith.constant 0.00999999977 : f32
      %18 = vector.broadcast %cst_15 : f32 to vector<2x128xf32>
      %19 = arith.mulf %18, %15 : vector<2x128xf32>
      %20 = arith.select %17, %15, %19 : vector<2x128xi1>, vector<2x128xf32>
      %c0_16 = arith.constant 0 : index
      %c0_17 = arith.constant 0 : index
      %21 = vector.load %arg4[%c0_16, %c0_17] : memref<128x10xf32, #tpu.memory_space<vmem>>, vector<128x10xf32>
      %cst_18 = arith.constant dense<0.000000e+00> : vector<2x10xf32>
      %22 = tpu.matmul %20, %21, %cst_18 {dimension_numbers = #tpu.dot_dimension_numbers<[1], [0], [0], [1], [0, 0, 1, 1], [], []>} : vector<2x128xf32>, vector<128x10xf32>, vector<2x10xf32> -> vector<2x10xf32>
      %c0_19 = arith.constant 0 : index
      %c0_20 = arith.constant 0 : index
      %23 = vector.load %arg5[%c0_19, %c0_20] : memref<1x10xf32, #tpu.memory_space<vmem>>, vector<1x10xf32>
      %24 = vector.broadcast %23 : vector<1x10xf32> to vector<2x10xf32>
      %25 = arith.addf %22, %24 : vector<2x10xf32>
      %c0_21 = arith.constant 0 : index
      %c0_22 = arith.constant 0 : index
      %26 = vector.load %arg6[%c0_21, %c0_22] : memref<2x10xf32, #tpu.memory_space<vmem>>, vector<2x10xf32>
      tpu.vector_store %arg6[%c0_21, %c0_22], %25 {strides = array<i32>} : memref<2x10xf32, #tpu.memory_space<vmem>>, vector<2x10xf32>,
    } else {
    }
    return
  }
  func.func @transform_0(%arg0: i32) -> (i32, i32) {
    %c0_i32 = arith.constant 0 : i32
    %c0_i32_0 = arith.constant 0 : i32
    return %c0_i32, %arg0 : i32, i32
  }
  func.func @transform_1(%arg0: i32) -> (i32, i32) {
    %c0_i32 = arith.constant 0 : i32
    %c0_i32_0 = arith.constant 0 : i32
    return %arg0, %c0_i32 : i32, i32
  }
  func.func @transform_2(%arg0: i32) -> (i32, i32) {
    %c0_i32 = arith.constant 0 : i32
    %c0_i32_0 = arith.constant 0 : i32
    %c0_i32_1 = arith.constant 0 : i32
    return %c0_i32, %c0_i32_0 : i32, i32
  }
  func.func @transform_3(%arg0: i32) -> (i32, i32) {
    %c0_i32 = arith.constant 0 : i32
    %c0_i32_0 = arith.constant 0 : i32
    %c0_i32_1 = arith.constant 0 : i32
    return %c0_i32, %c0_i32_0 : i32, i32
  }
  func.func @transform_4(%arg0: i32) -> (i32, i32) {
    %c0_i32 = arith.constant 0 : i32
    %c0_i32_0 = arith.constant 0 : i32
    %c0_i32_1 = arith.constant 0 : i32
    return %c0_i32, %c0_i32_0 : i32, i32
  }
  func.func @transform_5(%arg0: i32) -> (i32, i32) {
    %c0_i32 = arith.constant 0 : i32
    %c0_i32_0 = arith.constant 0 : i32
    %c0_i32_1 = arith.constant 0 : i32
    return %c0_i32, %c0_i32_0 : i32, i32
  }
}

</mosaic_0001>

<bundles_post_ra>
// kernel: eegnet2d_forward.6
= control target key start
LH: loop header
LB: loop body
LE: loop exit
PB: predicated region body
PF: predicated region fallthrough
CT: control target
= control target key end

     0   :  { %10 = vsyncpa [#allocation3], 0  ;;  %s1896_s0 = inlined_call_operand.vmem [shape: f32[256,32], index: 0, kind: input, shape index: {}]   ;;  %s1897_s1 = inlined_call_operand.vmem [shape: bf16[96,64], index: 1, kind: input, shape index: {}]   ;;  %s1898_s2 = inlined_call_operand.vmem [shape: f32[1,64], index: 2, kind: input, shape index: {}]   ;;  %s1899_s3 = inlined_call_operand.hbm [shape: f32[128,1], index: 3, kind: input, shape index: {}]   ;;  %s1900_s4 = inlined_call_operand.hbm [shape: f32[128,1], index: 4, kind: input, shape index: {}]   ;;  %s1901_s5 = inlined_call_operand.vmem [shape: f32[128,64], index: 5, kind: output, shape index: {}]  }
   0x1   :  { %11 = vsyncpa [#allocation5], 0  ;;  %s1223_s18 = smov [#allocation2]   ;;  %s1175_s22 = scalar_lea.hbm %s1899_s3, 2048 }
   0x2   :  { %s23_s19 = sshll.u32 %s1223_s18, 4  ;;  %p1176_p0 = scmp.ne.s32.totalorder %s1899_s3, %s1175_s22  ;;  %s24_s19 = int_to_ptr.vmem [resolvable:$true] %s23_s19 }
   0x3   :  { %p1179_p1 = scmp.lt.u32.totalorder %s1175_s22, %s1899_s3 }
   0x5   :  { %p1181_p2 = pnand %p1179_p1, %p1176_p0 }
   0x7   :  { %1184 = shalt.err (!%p1181_p2)
}
   0x8   :  { %s1185_s27 = scalar_lea.vmem %s24_s19, 2048  ;;  %p1190_p4 = scmp.lt.s32.totalorder %s24_s19, %s24_s19 }
   0x9   :  { %p1186_p3 = scmp.ne.s32.totalorder %s24_s19, %s1185_s27  ;;  %p1191_p5 = scmp.lt.s32.totalorder %s1185_s27, %s1185_s27 }
   0xb   :  { %p1192_p6 = por %p1191_p5, %p1190_p4 }
   0xd   :  { %p1193_p7 = pnand %p1192_p6, %p1186_p3 }
   0xf   :  { %1196 = shalt.err (!%p1193_p7)
}
  0x10   :  { %s1224_s28 = smov 128   ;;  %s1225_s29 = smov 8  }
  0x11   :  { %29 = dma.hbm_to_vmem [thread:$0]  %s1899_s3, 2048, %s24_s19, [#allocation3], %s1224_s28, %s1224_s28, %s1225_s29  }
  0x12   :  { %s1226_s7 = smov [#allocation4]   ;;  %s1197_s11 = scalar_lea.hbm %s1900_s4, 2048 }
  0x13   :  { %s35_s8 = sshll.u32 %s1226_s7, 4  ;;  %p1198_p8 = scmp.ne.s32.totalorder %s1900_s4, %s1197_s11  ;;  %s36_s8 = int_to_ptr.vmem [resolvable:$true] %s35_s8 }
  0x14   :  { %p1201_p9 = scmp.lt.u32.totalorder %s1197_s11, %s1900_s4 }
  0x16   :  { %p1203_p10 = pnand %p1201_p9, %p1198_p8 }
  0x18   :  { %1206 = shalt.err (!%p1203_p10)
}
  0x19   :  { %s1207_s16 = scalar_lea.vmem %s36_s8, 2048  ;;  %p1212_p12 = scmp.lt.s32.totalorder %s36_s8, %s36_s8 }
  0x1a   :  { %p1208_p11 = scmp.ne.s32.totalorder %s36_s8, %s1207_s16  ;;  %p1213_p13 = scmp.lt.s32.totalorder %s1207_s16, %s1207_s16 }
  0x1c   :  { %p1214_p0 = por %p1213_p13, %p1212_p12 }
  0x1e   :  { %p1215_p1 = pnand %p1214_p0, %p1208_p11 }
  0x20   :  { %1218 = shalt.err (!%p1215_p1)
}
  0x21   :  { %41 = dma.hbm_to_vmem [thread:$0]  %s1900_s4, 2048, %s36_s8, [#allocation5], %s1224_s28, %s1224_s28, %s1225_s29  }
  0x22   :  { %1219 = dma.done.wait [#allocation3], 2048  }
  0x23   :  { %1220 = vsyncadd [#allocation3], 4294965248 }
  0x24   :  { %1221 = dma.done.wait [#allocation5], 2048  }
  0x25   :  { %1222 = vsyncadd [#allocation5], 4294965248  ;;  %v1227_v0 = vmov 0   ;;  %v294_v1 = vld [vmem:[#allocation4 + $0x10] sm:$0xff]  ;;  %v292_v2 = vld [vmem:[#allocation4] sm:$0xff]  ;;  %v128_v5 = vlaneseq  ;;  %s1228_s22 = smov 32  }
  0x26   :  { %1168 = vset.pattern.permute.xlu1 %v1227_v0  ;;  %1167 = vset.pattern.permute.xlu0 %v1227_v0  ;;  %v295_v3 = vld [vmem:[#allocation4 + $0x18] sm:$0xff]  ;;  %v293_v4 = vld [vmem:[#allocation4 + $0x8] sm:$0xff]  ;;  %v296_v7 = vld [vmem:[#allocation4 + $0x20] sm:$0xff]  ;;  %s1229_s25 = smov 64   ;;  %vm497_vm2 = vcmask 261120   ;;  %vm522_vm3 = vcmask 523264  }
  0x27   :  { %320 = vperm.xlu1 %1168, %v294_v1   ;;  %310 = vperm.xlu0 %1167, %v292_v2   ;;  %v297_v6 = vld [vmem:[#allocation4 + $0x28] sm:$0xff]  ;;  %v1284_v8 = vshrl.u32 %v128_v5, 7  ;;  %v299_v10 = vld [vmem:[#allocation4 + $0x38] sm:$0xff]  ;;  %v298_v11 = vld [vmem:[#allocation4 + $0x30] sm:$0xff]  ;;  %vm661_vm4 = vcmask 785408  }
  0x28   :  { %v1289_v9 = vld [vmem:[%s1896_s0 + $0x20] ss:$2 sm:$0xff]  ;;  %v1294_v12 = vld [vmem:[%s1896_s0 + $0x30] ss:$2 sm:$0xff]  ;;  %v1330_v30 = vld [vmem:[%s1896_s0 + $0x1] ss:$2 sm:$0xff] }
  0x29   :  { %v261_v13 = vrot.slane %v1289_v9, 1  ;;  %v1300_v14 = vld [vmem:[%s1896_s0] ss:$2 sm:$0xff]  ;;  %v1305_v15 = vld [vmem:[%s1896_s0 + $0x10] ss:$2 sm:$0xff]  ;;  %vm275_vm0 = vcmp.lt.s32.totalorder %v1284_v8, 7 }
  0x2a   :  { %v262_v16 = vrot.slane %v1294_v12, 1  ;;  %v259_v17 = vrot.slane %v1300_v14, 1  ;;  %v260_v18 = vrot.slane %v1305_v15, 1  ;;  %v301_v20 = vld [vmem:[#allocation4 + $0x48] sm:$0xff]  ;;  %v300_v21 = vld [vmem:[#allocation4 + $0x40] sm:$0xff]  ;;  %v303_v24 = vld [vmem:[#allocation4 + $0x58] sm:$0xff]  ;;  %v1409_v1 = vpack.c.bf16 %v1305_v15, %v1300_v14 }
  0x2b   :  { %325 = vperm.xlu1 %1168, %v295_v3   ;;  %315 = vperm.xlu0 %1167, %v293_v4   ;;  %v302_v25 = vld [vmem:[#allocation4 + $0x50] sm:$0xff]  ;;  %v305_v26 = vld [vmem:[#allocation4 + $0x68] sm:$0xff]  ;;  %v304_v27 = vld [vmem:[#allocation4 + $0x60] sm:$0xff]  ;;  %v112_v34 = vrot.slane %v1330_v30, 7  ;;  %vm130_vm1 = vcmp.lt.s32.totalorder %v1284_v8, 1  ;;  %v1419_v3 = vpack.c.bf16 %v1294_v12, %v1289_v9 }
  0x2c   :  { %v1315_v19 = vsel %vm275_vm0, %v261_v13, %v262_v16  ;;  %v1321_v22 = vsel %vm275_vm0, %v259_v17, %v260_v18  ;;  %v1325_v23 = vsel %vm275_vm0, %v260_v18, %v261_v13  ;;  %v307_v28 = vld [vmem:[#allocation4 + $0x78] sm:$0xff]  ;;  %v306_v29 = vld [vmem:[#allocation4 + $0x70] sm:$0xff]  ;;  %v148_v32 = vld [vmem:[#allocation2 + $0x8] sm:$0xff] }
  0x2d   :  { %v1038_v31 = vld [vmem:[%s1896_s0 + $0x11] ss:$2 sm:$0xff]  ;;  %v147_v33 = vld [vmem:[#allocation2] sm:$0xff]  ;;  %v152_v48 = vld [vmem:[#allocation2 + $0x28] sm:$0xff] }
  0x2e   :  { %v113_v35 = vrot.slane %v1038_v31, 7  ;;  %v1039_v37 = vld [vmem:[%s1896_s0 + $0x21] ss:$2 sm:$0xff]  ;;  %v1040_v38 = vld [vmem:[%s1896_s0 + $0x31] ss:$2 sm:$0xff]  ;;  %v413_v0 = vpack.c.bf16 %v1038_v31, %v1330_v30 }
  0x2f   :  { %335 = vperm.xlu1 %1168, %v297_v6   ;;  %330 = vperm.xlu0 %1167, %v296_v7   ;;  %v150_v39 = vld [vmem:[#allocation2 + $0x18] sm:$0xff]  ;;  %v149_v40 = vld [vmem:[#allocation2 + $0x10] sm:$0xff]  ;;  %v114_v41 = vrot.slane %v1039_v37, 7  ;;  %v115_v42 = vrot.slane %v1040_v38, 7  ;;  %v1169_v45 = vld [vmem:[%s1897_s1] sm:$0xff]   ;;  %v414_v5 = vpack.c.bf16 %v1040_v38, %v1039_v37 }
  0x30   :  { %v1341_v36 = vsel %vm130_vm1, %v112_v34, %v113_v35  ;;  %v1363_v46 = vld [vmem:[%s1896_s0 + $0x41] ss:$2 sm:$0xff]  ;;  %v1368_v47 = vld [vmem:[%s1896_s0 + $0x51] ss:$2 sm:$0xff]  ;;  %1104 = vmatprep.subr.bf16.mxu0 %v1169_v45  ;;  %1132 = vmatprep.subr.bf16.mxu1 %v1169_v45 }
  0x31   :  { %v1351_v43 = vsel %vm130_vm1, %v114_v41, %v115_v42  ;;  %v1355_v44 = vsel %vm130_vm1, %v113_v35, %v114_v41  ;;  %v151_v49 = vld [vmem:[#allocation2 + $0x20] sm:$0xff]  ;;  %v116_v50 = vrot.slane %v1363_v46, 7  ;;  %v117_v51 = vrot.slane %v1368_v47, 7  ;;  %1105 = vmatpush3.bf16.msra.mxu0 %v1169_v45  ;;  %1133 = vmatpush3.bf16.msra.mxu1 %v1169_v45  ;;  %v1170_v54 = vld [vmem:[%s1897_s1 + $0x8] sm:$0xff]   ;;  %v1391_v56 = vld [vmem:[%s1896_s0 + $0x71] ss:$2 sm:$0xff] }
  0x32   :  { %v1386_v55 = vld [vmem:[%s1896_s0 + $0x61] ss:$2 sm:$0xff]  ;;  %v154_v57 = vld [vmem:[#allocation2 + $0x38] sm:$0xff]  ;;  %v153_v58 = vld [vmem:[#allocation2 + $0x30] sm:$0xff]  ;;  %1106 = vmatprep.subr.bf16.mxu0 %v1170_v54  ;;  %v119_v60 = vrot.slane %v1391_v56, 7  ;;  %1134 = vmatprep.subr.bf16.mxu1 %v1170_v54 }
  0x33   :  { %345 = vperm.xlu1 %1168, %v299_v10   ;;  %340 = vperm.xlu0 %1167, %v298_v11   ;;  %v1374_v52 = vsel %vm130_vm1, %v116_v50, %v117_v51  ;;  %v1378_v53 = vsel %vm130_vm1, %v115_v42, %v116_v50  ;;  %v118_v59 = vrot.slane %v1386_v55, 7  ;;  %v1171_v63 = vld [vmem:[%s1897_s1 + $0x10] sm:$0xff]   ;;  %v1172_v2 = vld [vmem:[%s1897_s1 + $0x18] sm:$0xff]   ;;  %v1173_v4 = vld [vmem:[%s1897_s1 + $0x20] sm:$0xff]  }
  0x34   :  { %v1045_v6 = vld [vmem:[%s1896_s0 + $0x81] ss:$2 sm:$0xff]  ;;  %v1046_v7 = vld [vmem:[%s1896_s0 + $0x91] ss:$2 sm:$0xff]  ;;  %v1493_v41 = vld [vmem:[%s1896_s0 + $0x60] ss:$2 sm:$0xff] }
  0x35   :  { %1107 = vmatpush3.bf16.msra.mxu0 %v1170_v54  ;;  %1135 = vmatpush3.bf16.msra.mxu1 %v1170_v54  ;;  %v1397_v61 = vsel %vm130_vm1, %v118_v59, %v119_v60  ;;  %v1401_v62 = vsel %vm130_vm1, %v117_v51, %v118_v59  ;;  %v156_v9 = vld [vmem:[#allocation2 + $0x48] sm:$0xff]  ;;  %v120_v10 = vrot.slane %v1045_v6, 7  ;;  %v121_v11 = vrot.slane %v1046_v7, 7  ;;  %v1441_v15 = vld [vmem:[%s1896_s0 + $0xb1] ss:$2 sm:$0xff] }
  0x36   :  { %1108 = vmatprep.subr.bf16.mxu0 %v1171_v63  ;;  %1136 = vmatprep.subr.bf16.mxu1 %v1171_v63  ;;  %v1436_v13 = vld [vmem:[%s1896_s0 + $0xa1] ss:$2 sm:$0xff]  ;;  %v157_v31 = vld [vmem:[#allocation2 + $0x50] sm:$0xff]  ;;  %v162_v51 = vld [vmem:[#allocation2 + $0x78] sm:$0xff]  ;;  %v416_v59 = vpack.c.bf16 %v1391_v56, %v1386_v55 }
  0x37   :  { %355 = vperm.xlu1 %1168, %v301_v20   ;;  %350 = vperm.xlu0 %1167, %v300_v21   ;;  %v1445_v18 = vsel %vm130_vm1, %v120_v10, %v121_v11  ;;  %v1174_v20 = vld [vmem:[%s1897_s1 + $0x28] sm:$0xff]   ;;  %v122_v21 = vrot.slane %v1436_v13, 7  ;;  %v1498_v42 = vld [vmem:[%s1896_s0 + $0x70] ss:$2 sm:$0xff]  ;;  %v1516_v50 = vld [vmem:[%s1896_s0 + $0xf1] ss:$2 sm:$0xff] }
  0x38   :  { %v160_v37 = vld [vmem:[#allocation2 + $0x68] sm:$0xff]  ;;  %v127_v54 = vrot.slane %v1516_v50, 7  ;;  %v1030_v56 = vld [vmem:[%s1896_s0 + $0x90] ss:$2 sm:$0xff] }
  0x39   :  { %1109 = vmatpush3.bf16.msra.mxu0 %v1171_v63  ;;  %1137 = vmatpush3.bf16.msra.mxu1 %v1171_v63  ;;  %v1477_v35 = vsel %vm130_vm1, %v121_v11, %v122_v21  ;;  %v1541_v55 = vld [vmem:[%s1896_s0 + $0x80] ss:$2 sm:$0xff]  ;;  %v418_v11 = vpack.c.bf16 %v1441_v15, %v1436_v13 }
  0x3a   :  { %1110 = vmatprep.subr.bf16.mxu0 %v1172_v2  ;;  %1138 = vmatprep.subr.bf16.mxu1 %v1172_v2  ;;  %v1593_v13 = vld [vmem:[%s1896_s0 + $0xe0] ss:$2 sm:$0xff] }
  0x3b   :  { %365 = vperm.xlu1 %1168, %v303_v24   ;;  %360 = vperm.xlu0 %1167, %v302_v25   ;;  %v123_v24 = vrot.slane %v1441_v15, 7  ;;  %v158_v25 = vld [vmem:[#allocation2 + $0x58] sm:$0xff] }
  0x3c   :  { %v1598_v15 = vld [vmem:[%s1896_s0 + $0xf0] ss:$2 sm:$0xff] }
  0x3d   :  { %1111 = vmatpush3.bf16.msra.mxu0 %v1172_v2  ;;  %1139 = vmatpush3.bf16.msra.mxu1 %v1172_v2 }
  0x3e   :  { %1112 = vmatprep.subr.bf16.mxu0 %v1173_v4  ;;  %1140 = vmatprep.subr.bf16.mxu1 %v1173_v4 }
  0x3f   :  { %375 = vperm.xlu1 %1168, %v305_v26   ;;  %370 = vperm.xlu0 %1167, %v304_v27   ;;  %v1455_v26 = vsel %vm130_vm1, %v122_v21, %v123_v24  ;;  %v415_v27 = vpack.c.bf16 %v1368_v47, %v1363_v46  ;;  %v1583_v21 = vld [vmem:[%s1896_s0 + $0xd0] ss:$2 sm:$0xff] }
  0x41   :  { %1113 = vmatpush3.bf16.msra.mxu0 %v1173_v4  ;;  %1141 = vmatpush3.bf16.msra.mxu1 %v1173_v4  ;;  %v161_v4 = vld [vmem:[#allocation2 + $0x70] sm:$0xff] }
  0x42   :  { %1114 = vmatprep.subr.bf16.mxu0 %v1174_v20  ;;  %1142 = vmatprep.subr.bf16.mxu1 %v1174_v20 }
  0x43   :  { %385 = vperm.xlu1 %1168, %v307_v28   ;;  %380 = vperm.xlu0 %1167, %v306_v29   ;;  %v155_v28 = vld [vmem:[#allocation2 + $0x40] sm:$0xff]  ;;  %v1462_v29 = vsel %vm130_vm1, %v119_v60, %v120_v10  ;;  %v417_v60 = vpack.c.bf16 %v1046_v7, %v1045_v6  ;;  %v1551_v6 = vpack.c.bf16 %v1030_v56, %v1541_v55 }
  0x44   :  { %v1557_v7 = vld [vmem:[%s1896_s0 + $0xa0] ss:$2 sm:$0xff] }
  0x45   :  { %1115 = vmatpush3.bf16.msra.mxu0 %v1174_v20  ;;  %1143 = vmatpush3.bf16.msra.mxu1 %v1174_v20  ;;  %v1578_v20 = vld [vmem:[%s1896_s0 + $0xc0] ss:$2 sm:$0xff] }
  0x47   :  { %170 = vperm.xlu1 %1168, %v148_v32   ;;  %165 = vperm.xlu0 %1167, %v147_v33   ;;  %v1468_v32 = vld [vmem:[%s1896_s0 + $0x40] ss:$2 sm:$0xff]  ;;  %v1473_v33 = vld [vmem:[%s1896_s0 + $0x50] ss:$2 sm:$0xff] }
  0x48   :  { %v1482_v38 = vpack.c.bf16 %v1473_v33, %v1468_v32 }
  0x4b   :  { %180 = vperm.xlu1 %1168, %v150_v39   ;;  %175 = vperm.xlu0 %1167, %v149_v40   ;;  %v1049_v39 = vld [vmem:[%s1896_s0 + $0xc1] ss:$2 sm:$0xff]  ;;  %v1050_v40 = vld [vmem:[%s1896_s0 + $0xd1] ss:$2 sm:$0xff] }
  0x4c   :  { %v124_v45 = vrot.slane %v1049_v39, 7  ;;  %v125_v46 = vrot.slane %v1050_v40, 7  ;;  %v419_v63 = vpack.c.bf16 %v1050_v40, %v1049_v39 }
  0x4e   :  { %v1502_v47 = vsel %vm130_vm1, %v124_v45, %v125_v46  ;;  %v1535_v2 = vsel %vm130_vm1, %v123_v24, %v124_v45  ;;  %v1588_v24 = vpack.c.bf16 %v1583_v21, %v1578_v20 }
  0x4f   :  { %190 = vperm.xlu1 %1168, %v152_v48   ;;  %185 = vperm.xlu0 %1167, %v151_v49   ;;  %v1508_v48 = vpack.c.bf16 %v1498_v42, %v1493_v41  ;;  %v1051_v49 = vld [vmem:[%s1896_s0 + $0xe1] ss:$2 sm:$0xff] }
  0x53   :  { %200 = vperm.xlu1 %1168, %v154_v57   ;;  %195 = vperm.xlu0 %1167, %v153_v58   ;;  %v126_v57 = vrot.slane %v1051_v49, 7 }
  0x55   :  { %v1523_v58 = vsel %vm130_vm1, %v126_v57, %v127_v54 }
  0x57   :  { %539 = vrot.lane.b32.xlu1 %v413_v0, %s1228_s22  ;;  %457 = vrot.lane.b32.xlu0 %v1409_v1, %s1228_s22 }
  0x5b   :  { %481 = vrot.lane.b32.xlu1 %v413_v0, %s1229_s25  ;;  %459 = vrot.lane.b32.xlu0 %v1419_v3, %s1228_s22  ;;  %v159_v0 = vld [vmem:[#allocation2 + $0x60] sm:$0xff] }
  0x5f   :  { %210 = vperm.xlu1 %1168, %v156_v9   ;;  %541 = vrot.lane.b32.xlu0 %v414_v5, %s1228_s22  ;;  %v1562_v9 = vld [vmem:[%s1896_s0 + $0xb0] ss:$2 sm:$0xff] }
  0x60   :  { %v1568_v10 = vpack.c.bf16 %v1562_v9, %v1557_v7 }
  0x63   :  { %220 = vperm.xlu1 %1168, %v158_v25   ;;  %483 = vrot.lane.b32.xlu0 %v414_v5, %s1229_s25  ;;  %v1548_v5 = vsel %vm130_vm1, %v125_v46, %v126_v57  ;;  %v1604_v25 = vpack.c.bf16 %v1598_v15, %v1593_v13 }
  0x67   :  { %543 = vrot.lane.b32.xlu1 %v415_v27, %s1228_s22  ;;  %205 = vperm.xlu0 %1167, %v155_v28   ;;  %v263_v28 = vrot.slane %v1468_v32, 1 }
  0x69   :  { %v287_v39 = vsel %vm275_vm0, %v262_v16, %v263_v28 }
  0x6b   :  { %485 = vrot.lane.b32.xlu1 %v415_v27, %s1229_s25  ;;  %215 = vperm.xlu0 %1167, %v157_v31   ;;  %v420_v27 = vpack.c.bf16 %v1516_v50, %v1051_v49  ;;  %v265_v49 = vrot.slane %v1493_v41, 1 }
  0x6f   :  { %230 = vperm.xlu1 %1168, %v160_v37   ;;  %461 = vrot.lane.b32.xlu0 %v1482_v38, %s1228_s22 }
  0x73   :  { %240 = vperm.xlu1 %1168, %v162_v51   ;;  %463 = vrot.lane.b32.xlu0 %v1508_v48, %s1228_s22  ;;  %v264_v51 = vrot.slane %v1473_v33, 1  ;;  %v267_v33 = vrot.slane %v1541_v55, 1 }
  0x75   :  { %v285_v12 = vsel %vm275_vm0, %v264_v51, %v265_v49 }
  0x77   :  { %545 = vrot.lane.b32.xlu0 %v416_v59, %s1228_s22  ;;  %547 = vrot.lane.b32.xlu1 %v417_v60, %s1228_s22 }
  0x7b   :  { %487 = vrot.lane.b32.xlu0 %v416_v59, %s1229_s25  ;;  %489 = vrot.lane.b32.xlu1 %v417_v60, %s1229_s25 }
  0x7f   :  { %225 = vperm.xlu0 %1167, %v159_v0   ;;  %551 = vrot.lane.b32.xlu1 %v419_v63, %s1228_s22 }
  0x83   :  { %235 = vperm.xlu0 %1167, %v161_v4   ;;  %493 = vrot.lane.b32.xlu1 %v419_v63, %s1229_s25  ;;  %v266_v4 = vrot.slane %v1498_v42, 1 }
  0x87   :  { %465 = vrot.lane.b32.xlu0 %v1551_v6, %s1228_s22 }
  0x8b   :  { %467 = vrot.lane.b32.xlu0 %v1568_v10, %s1228_s22 }
  0x8f   :  { %549 = vrot.lane.b32.xlu0 %v418_v11, %s1228_s22 }
  0x93   :  { %491 = vrot.lane.b32.xlu0 %v418_v11, %s1229_s25 }
  0x97   :  { %469 = vrot.lane.b32.xlu0 %v1588_v24, %s1228_s22 }
  0x9b   :  { %471 = vrot.lane.b32.xlu0 %v1604_v25, %s1228_s22 }
  0x9f   :  { %553 = vrot.lane.b32.xlu0 %v420_v27, %s1228_s22 }
  0xa3   :  { %495 = vrot.lane.b32.xlu0 %v420_v27, %s1229_s25 }
  0xa6   :  { %v321_v31 = vpop.permute.xlu1 %320  ;;  %v311_v37 = vpop.permute.xlu0 %310 }
  0xa7   :  { %v390_v40 = vmul.f32 %v321_v31, %v1315_v19  ;;  %v388_v57 = vmul.f32 %v311_v37, %v1321_v22  ;;  %v286_v19 = vsel %vm275_vm0, %v263_v28, %v264_v51  ;;  %v284_v31 = vsel %vm275_vm0, %v265_v49, %v266_v4 }
  0xa8   :  { %v268_v37 = vrot.slane %v1030_v56, 1  ;;  %v271_v49 = vrot.slane %v1578_v20, 1 }
  0xaa   :  { %v326_v45 = vpop.permute.xlu1 %325  ;;  %v316_v46 = vpop.permute.xlu0 %315  ;;  %v282_v51 = vsel %vm275_vm0, %v267_v33, %v268_v37 }
  0xab   :  { %v391_v59 = vmul.f32 %v326_v45, %v287_v39  ;;  %v389_v32 = vmul.f32 %v316_v46, %v1325_v23  ;;  %v283_v23 = vsel %vm275_vm0, %v266_v4, %v267_v33  ;;  %v269_v39 = vrot.slane %v1557_v7, 1 }
  0xad   :  { %v430_v60 = vpack.c.bf16 %v391_v59, %v390_v40  ;;  %v429_v63 = vpack.c.bf16 %v389_v32, %v388_v57  ;;  %v281_v45 = vsel %vm275_vm0, %v268_v37, %v269_v39  ;;  %v270_v57 = vrot.slane %v1562_v9, 1 }
  0xae   :  { %v336_v0 = vpop.permute.xlu1 %335  ;;  %v331_v16 = vpop.permute.xlu0 %330 }
  0xaf   :  { %563 = vrot.lane.b32.xlu1 %v429_v63, %s1229_s25  ;;  %v393_v22 = vmul.f32 %v336_v0, %v285_v12  ;;  %v392_v41 = vmul.f32 %v331_v16, %v286_v19  ;;  %v280_v0 = vsel %vm275_vm0, %v269_v39, %v270_v57  ;;  %v272_v12 = vrot.slane %v1583_v21, 1 }
  0xb0   :  { %v273_v16 = vrot.slane %v1593_v13, 1 }
  0xb1   :  { %v431_v42 = vpack.c.bf16 %v393_v22, %v392_v41  ;;  %v278_v41 = vsel %vm275_vm0, %v271_v49, %v272_v12 }
  0xb2   :  { %v346_v11 = vpop.permute.xlu1 %345  ;;  %v341_v27 = vpop.permute.xlu0 %340  ;;  %v277_v33 = vsel %vm275_vm0, %v272_v12, %v273_v16 }
  0xb3   :  { %565 = vrot.lane.b32.xlu1 %v430_v60, %s1229_s25  ;;  %v395_v28 = vmul.f32 %v346_v11, %v283_v23  ;;  %v394_v55 = vmul.f32 %v341_v27, %v284_v31  ;;  %v279_v60 = vsel %vm275_vm0, %v270_v57, %v271_v49  ;;  %v274_v11 = vrot.slane %v1598_v15, 1 }
  0xb4   :  { %v146_v15 = vsel %vm130_vm1, %v127_v54, %v112_v34 }
  0xb5   :  { %v432_v56 = vpack.c.bf16 %v395_v28, %v394_v55  ;;  %v291_v31 = vsel %vm275_vm0, %v274_v11, %v259_v17  ;;  %v276_v39 = vsel %vm275_vm0, %v273_v16, %v274_v11 }
  0xb6   :  { %v356_v40 = vpop.permute.xlu1 %355  ;;  %v351_v46 = vpop.permute.xlu0 %350 }
  0xb7   :  { %567 = vrot.lane.b32.xlu1 %v431_v42, %s1229_s25  ;;  %v397_v7 = vmul.f32 %v356_v40, %v281_v45  ;;  %v396_v59 = vmul.f32 %v351_v46, %v282_v51 }
  0xb9   :  { %v433_v9 = vpack.c.bf16 %v397_v7, %v396_v59 }
  0xba   :  { %v366_v32 = vpop.permute.xlu1 %365  ;;  %v361_v63 = vpop.permute.xlu0 %360 }
  0xbb   :  { %569 = vrot.lane.b32.xlu1 %v432_v56, %s1229_s25  ;;  %v399_v20 = vmul.f32 %v366_v32, %v279_v60  ;;  %v398_v19 = vmul.f32 %v361_v63, %v280_v0 }
  0xbd   :  { %v434_v21 = vpack.c.bf16 %v399_v20, %v398_v19 }
  0xbe   :  { %v376_v4 = vpop.permute.xlu1 %375  ;;  %v371_v22 = vpop.permute.xlu0 %370 }
  0xbf   :  { %571 = vrot.lane.b32.xlu1 %v433_v9, %s1229_s25  ;;  %v401_v23 = vmul.f32 %v376_v4, %v277_v33  ;;  %v400_v13 = vmul.f32 %v371_v22, %v278_v41 }
  0xc1   :  { %v435_v42 = vpack.c.bf16 %v401_v23, %v400_v13 }
  0xc2   :  { %v386_v27 = vpop.permute.xlu1 %385  ;;  %v381_v37 = vpop.permute.xlu0 %380 }
  0xc3   :  { %573 = vrot.lane.b32.xlu1 %v434_v21, %s1229_s25  ;;  %v403_v28 = vmul.f32 %v386_v27, %v291_v31  ;;  %v402_v55 = vmul.f32 %v381_v37, %v276_v39 }
  0xc5   :  { %v436_v46 = vpack.c.bf16 %v403_v28, %v402_v55 }
  0xc6   :  { %v171_v14 = vpop.permute.xlu1 %170  ;;  %v166_v40 = vpop.permute.xlu0 %165 }
  0xc7   :  { %v244_v17 = vmul.f32 %v171_v14, %v1341_v36  ;;  %v243_v45 = vmul.f32 %v166_v40, %v146_v15  ;;  %575 = vrot.lane.b32.xlu1 %v435_v42, %s1229_s25 }
  0xc9   :  { %v421_v51 = vpack.c.bf16 %v244_v17, %v243_v45 }
  0xca   :  { %v181_v57 = vpop.permute.xlu1 %180  ;;  %v176_v49 = vpop.permute.xlu0 %175 }
  0xcb   :  { %v246_v30 = vmul.f32 %v181_v57, %v1351_v43  ;;  %v245_v50 = vmul.f32 %v176_v49, %v1355_v44  ;;  %577 = vrot.lane.b32.xlu1 %v436_v46, %s1229_s25 }
  0xcd   :  { %v422_v8 = vpack.c.bf16 %v246_v30, %v245_v50 }
  0xce   :  { %v191_v34 = vpop.permute.xlu1 %190  ;;  %v186_v54 = vpop.permute.xlu0 %185 }
  0xcf   :  { %v248_v56 = vmul.f32 %v191_v34, %v1374_v52  ;;  %v247_v36 = vmul.f32 %v186_v54, %v1378_v53 }
  0xd1   :  { %v423_v7 = vpack.c.bf16 %v248_v56, %v247_v36 }
  0xd2   :  { %v201_v59 = vpop.permute.xlu1 %200  ;;  %v196_v32 = vpop.permute.xlu0 %195 }
  0xd3   :  { %v250_v60 = vmul.f32 %v201_v59, %v1397_v61  ;;  %v249_v63 = vmul.f32 %v196_v32, %v1401_v62 }
  0xd5   :  { %v424_v0 = vpack.c.bf16 %v250_v60, %v249_v63 }
  0xd6   :  { %v1676_v43 = vpop.permute.xlu1 %539  ;;  %v458_v44 = vpop.permute.xlu0 %457 }
  0xd7   :  { %v500_v12 = vsel %vm497_vm2, %v421_v51, %v458_v44 }
  0xda   :  { %v482_v16 = vpop.permute.xlu1 %481  ;;  %v460_v52 = vpop.permute.xlu0 %459 }
  0xdb   :  { %v524_v53 = vsel %vm522_vm3, %v500_v12, %v482_v16  ;;  %v503_v61 = vsel %vm497_vm2, %v422_v8, %v460_v52  ;;  %v581_v12 = vsel %vm497_vm2, %v1409_v1, %v1676_v43 }
  0xdc   :  { %1116 = vmatprep.mubr.msk.bf16.mxu0 %vm661_vm4, %v524_v53 }
  0xde   :  { %v211_v9 = vpop.permute.xlu1 %210  ;;  %v1681_v20 = vpop.permute.xlu0 %541 }
  0xdf   :  { %v252_v22 = vmul.f32 %v211_v9, %v1445_v18 }
  0xe2   :  { %v484_v62 = vpop.permute.xlu0 %483  ;;  %v221_v19 = vpop.permute.xlu1 %220 }
  0xe3   :  { %v526_v4 = vsel %vm522_vm3, %v503_v61, %v484_v62  ;;  %v254_v13 = vmul.f32 %v221_v19, %v1455_v26  ;;  %v584_v62 = vsel %vm497_vm2, %v1419_v3, %v1681_v20 }
  0xe4   :  { %1117 = vmatmul.mubr.msk.bf16.vlgmr.msra.gmra.mrb[0].mxu0 %vm661_vm4, %v526_v4 }
  0xe6   :  { %v206_v33 = vpop.permute.xlu0 %205  ;;  %v544_v11 = vpop.permute.xlu1 %543 }
  0xe7   :  { %v251_v41 = vmul.f32 %v206_v33, %v1462_v29  ;;  %v587_v1 = vsel %vm497_vm2, %v1482_v38, %v544_v11 }
  0xe9   :  { %v425_v21 = vpack.c.bf16 %v252_v22, %v251_v41 }
  0xea   :  { %v216_v23 = vpop.permute.xlu0 %215  ;;  %v486_v39 = vpop.permute.xlu1 %485 }
  0xeb   :  { %v253_v27 = vmul.f32 %v216_v23, %v1477_v35 }
  0xed   :  { %v426_v31 = vpack.c.bf16 %v254_v13, %v253_v27 }
  0xee   :  { %v462_v37 = vpop.permute.xlu0 %461  ;;  %v231_v18 = vpop.permute.xlu1 %230 }
  0xef   :  { %v506_v15 = vsel %vm497_vm2, %v423_v7, %v462_v37  ;;  %v256_v17 = vmul.f32 %v231_v18, %v1502_v47 }
  0xf0   :  { %v528_v42 = vsel %vm522_vm3, %v506_v15, %v486_v39 }
  0xf1   :  { %1120 = vmatprep.mubr.msk.bf16.mxu0 %vm661_vm4, %v528_v42 }
  0xf2   :  { %v464_v28 = vpop.permute.xlu0 %463  ;;  %v241_v40 = vpop.permute.xlu1 %240 }
  0xf3   :  { %v509_v29 = vsel %vm497_vm2, %v424_v0, %v464_v28  ;;  %v258_v49 = vmul.f32 %v241_v40, %v1523_v58 }
  0xf6   :  { %v546_v55 = vpop.permute.xlu0 %545  ;;  %v548_v46 = vpop.permute.xlu1 %547 }
  0xf7   :  { %v590_v22 = vsel %vm497_vm2, %v1508_v48, %v546_v55  ;;  %v593_v3 = vsel %vm497_vm2, %v1551_v6, %v548_v46 }
  0xfa   :  { %v488_v14 = vpop.permute.xlu0 %487  ;;  %v490_v8 = vpop.permute.xlu1 %489 }
  0xfb   :  { %v530_v26 = vsel %vm522_vm3, %v509_v29, %v488_v14 }
  0xfc   :  { %1121 = vmatmul.mubr.msk.bf16.gmra.mrb[4].mxu0 %vm661_vm4, %v530_v26 }
  0xfe   :  { %v226_v35 = vpop.permute.xlu0 %225  ;;  %v552_v7 = vpop.permute.xlu1 %551 }
  0xff   :  { %v255_v45 = vmul.f32 %v226_v35, %v1535_v2  ;;  %v599_v48 = vsel %vm497_vm2, %v1588_v24, %v552_v7 }
 0x101   :  { %v427_v51 = vpack.c.bf16 %v256_v17, %v255_v45 }
 0x102   :  { %v236_v57 = vpop.permute.xlu0 %235  ;;  %v494_v58 = vpop.permute.xlu1 %493 }
 0x103   :  { %v257_v30 = vmul.f32 %v236_v57, %v1548_v5 }
 0x105   :  { %v428_v50 = vpack.c.bf16 %v258_v49, %v257_v30 }
 0x106   :  { %v466_v34 = vpop.permute.xlu0 %465 }
 0x107   :  { %v512_v54 = vsel %vm497_vm2, %v425_v21, %v466_v34 }
 0x108   :  { %v532_v56 = vsel %vm522_vm3, %v512_v54, %v490_v8 }
 0x109   :  { %1124 = vmatprep.mubr.msk.bf16.mxu0 %vm661_vm4, %v532_v56 }
 0x10a   :  { %v468_v36 = vpop.permute.xlu0 %467 }
 0x10b   :  { %v515_v2 = vsel %vm497_vm2, %v426_v31, %v468_v36 }
 0x10e   :  { %v550_v47 = vpop.permute.xlu0 %549 }
 0x10f   :  { %v596_v38 = vsel %vm497_vm2, %v1568_v10, %v550_v47 }
 0x112   :  { %v492_v59 = vpop.permute.xlu0 %491 }
 0x113   :  { %v534_v32 = vsel %vm522_vm3, %v515_v2, %v492_v59 }
 0x114   :  { %1125 = vmatmul.mubr.msk.bf16.gmra.mrb[8].mxu0 %vm661_vm4, %v534_v32 }
 0x116   :  { %v470_v5 = vpop.permute.xlu0 %469 }
 0x117   :  { %v518_v60 = vsel %vm497_vm2, %v427_v51, %v470_v5 }
 0x118   :  { %v536_v63 = vsel %vm522_vm3, %v518_v60, %v494_v58 }
 0x119   :  { %1128 = vmatprep.mubr.msk.bf16.mxu0 %vm661_vm4, %v536_v63 }
 0x11a   :  { %v472_v0 = vpop.permute.xlu0 %471 }
 0x11b   :  { %v521_v52 = vsel %vm497_vm2, %v428_v50, %v472_v0 }
 0x11e   :  { %v554_v44 = vpop.permute.xlu0 %553 }
 0x11f   :  { %v602_v6 = vsel %vm497_vm2, %v1604_v25, %v554_v44  ;;  %v1751_v25 = vld [vmem:[%s1898_s2] ss:$0 sm:$0xff] }
 0x121   :  { %v564_v16 = vpop.permute.xlu1 %563 }
 0x122   :  { %v496_v53 = vpop.permute.xlu0 %495  ;;  %v604_v9 = vsel %vm522_vm3, %v581_v12, %v564_v16 }
 0x123   :  { %v538_v61 = vsel %vm522_vm3, %v521_v52, %v496_v53  ;;  %1144 = vmatprep.mubr.msk.bf16.mxu1 %vm661_vm4, %v604_v9 }
 0x124   :  { %1129 = vmatmul.mubr.msk.bf16.gmra.mrb[12].mxu0 %vm661_vm4, %v538_v61 }
 0x125   :  { %v566_v19 = vpop.permute.xlu1 %565 }
 0x126   :  { %v606_v4 = vsel %vm522_vm3, %v584_v62, %v566_v19 }
 0x127   :  { %1145 = vmatmul.mubr.msk.bf16.vlgmr.msra.gmra.mrb[0].mxu1 %vm661_vm4, %v606_v4 }
 0x129   :  { %v568_v43 = vpop.permute.xlu1 %567 }
 0x12a   :  { %v608_v33 = vsel %vm522_vm3, %v587_v1, %v568_v43 }
 0x12b   :  { %1148 = vmatprep.mubr.msk.bf16.mxu1 %vm661_vm4, %v608_v33 }
 0x12d   :  { %v570_v41 = vpop.permute.xlu1 %569 }
 0x12e   :  { %v610_v21 = vsel %vm522_vm3, %v590_v22, %v570_v41 }
 0x12f   :  { %1149 = vmatmul.mubr.msk.bf16.gmra.mrb[4].mxu1 %vm661_vm4, %v610_v21 }
 0x131   :  { %v572_v20 = vpop.permute.xlu1 %571 }
 0x132   :  { %v612_v23 = vsel %vm522_vm3, %v593_v3, %v572_v20 }
 0x133   :  { %1152 = vmatprep.mubr.msk.bf16.mxu1 %vm661_vm4, %v612_v23 }
 0x135   :  { %v574_v11 = vpop.permute.xlu1 %573 }
 0x136   :  { %v614_v13 = vsel %vm522_vm3, %v596_v38, %v574_v11 }
 0x137   :  { %1153 = vmatmul.mubr.msk.bf16.gmra.mrb[8].mxu1 %vm661_vm4, %v614_v13 }
 0x139   :  { %v576_v27 = vpop.permute.xlu1 %575 }
 0x13a   :  { %v616_v31 = vsel %vm522_vm3, %v599_v48, %v576_v27 }
 0x13b   :  { %1156 = vmatprep.mubr.msk.bf16.mxu1 %vm661_vm4, %v616_v31 }
 0x13d   :  { %v578_v37 = vpop.permute.xlu1 %577 }
 0x13e   :  { %v618_v39 = vsel %vm522_vm3, %v602_v6, %v578_v37 }
 0x13f   :  { %1157 = vmatmul.mubr.msk.bf16.gmra.mrb[12].mxu1 %vm661_vm4, %v618_v39 }
 0x1b7   :  { %v1118_v10 = vpop.f32.mrb[0].mxu0 }
 0x1b8   :  { %v712_v15 = vpop.f32.mrb[1].mxu0  ;;  %v721_v17 = vadd.f32 %v1118_v10, %v1751_v25 }
 0x1b9   :  { %v1119_v42 = vpop.f32.mrb[2].mxu0  ;;  %v713_v45 = vadd.f32 %v1751_v25, %v712_v15 }
 0x1ba   :  { %v715_v28 = vpop.f32.mrb[3].mxu0  ;;  %v724_v46 = vadd.f32 %v1119_v42, %v1751_v25  ;;  %v906_v49 = vmul.f32 0.01, %v721_v17  ;;  %vm890_vm5 = vcmp.ge.f32.partialorder %v721_v17, 0.0 }
 0x1bb   :  { %v716_v51 = vadd.f32 %v1751_v25, %v715_v28  ;;  %v904_v50 = vmul.f32 0.01, %v713_v45  ;;  %vm888_vm6 = vcmp.ge.f32.partialorder %v713_v45, 0.0 }
 0x1bc   :  { %v907_v34 = vmul.f32 0.01, %v724_v46  ;;  %vm891_vm7 = vcmp.ge.f32.partialorder %v724_v46, 0.0  ;;  %v922_v2 = vsel %vm890_vm5, %v721_v17, %v906_v49 }
 0x1bd   :  { %v905_v36 = vmul.f32 0.01, %v716_v51  ;;  %vm889_vm8 = vcmp.ge.f32.partialorder %v716_v51, 0.0  ;;  %v920_v5 = vsel %vm888_vm6, %v713_v45, %v904_v50 }
 0x1be   :  { %v923_v44 = vsel %vm891_vm7, %v724_v46, %v907_v34 }
 0x1bf   :  { %v921_v9 = vsel %vm889_vm8, %v716_v51, %v905_v36 }
 0x1cf   :  { %v1122_v18 = vpop.f32.mrb[4].mxu0 }
 0x1d0   :  { %v728_v55 = vpop.f32.mrb[5].mxu0  ;;  %v737_v57 = vadd.f32 %v1122_v18, %v1751_v25 }
 0x1d1   :  { %v1123_v24 = vpop.f32.mrb[6].mxu0  ;;  %v729_v30 = vadd.f32 %v1751_v25, %v728_v55 }
 0x1d2   :  { %v731_v29 = vpop.f32.mrb[7].mxu0  ;;  %v740_v54 = vadd.f32 %v1123_v24, %v1751_v25  ;;  %v910_v47 = vmul.f32 0.01, %v737_v57  ;;  %vm894_vm9 = vcmp.ge.f32.partialorder %v737_v57, 0.0 }
 0x1d3   :  { %v908_v59 = vmul.f32 0.01, %v729_v30  ;;  %vm892_vm10 = vcmp.ge.f32.partialorder %v729_v30, 0.0  ;;  %v1769_v60 = vadd.f32 %v1751_v25, %v731_v29 }
 0x1d4   :  { %v911_v12 = vmul.f32 0.01, %v740_v54  ;;  %v1776_v61 = vsel %vm894_vm9, %v737_v57, %v910_v47  ;;  %vm895_vm11 = vcmp.ge.f32.partialorder %v740_v54, 0.0 }
 0x1d5   :  { %v1778_v19 = vsel %vm892_vm10, %v729_v30, %v908_v59  ;;  %vm893_vm14 = vcmp.ge.f32.partialorder %v1769_v60, 0.0  ;;  %v909_v43 = vmul.f32 0.01, %v1769_v60 }
 0x1d6   :  { %v1787_v21 = vsel %vm895_vm11, %v740_v54, %v911_v12 }
 0x1d7   :  { %v925_v54 = vsel %vm893_vm14, %v1769_v60, %v909_v43 }
 0x1e7   :  { %v1126_v14 = vpop.f32.mrb[8].mxu0 }
 0x1e8   :  { %v744_v40 = vpop.f32.mrb[9].mxu0  ;;  %v1773_v16 = vadd.f32 %v1126_v14, %v1751_v25 }
 0x1e9   :  { %v1127_v26 = vpop.f32.mrb[10].mxu0  ;;  %v1783_v33 = vadd.f32 %v1751_v25, %v744_v40 }
 0x1ea   :  { %v1746_v35 = vpop.f32.mrb[11].mxu0  ;;  %vm898_vm15 = vcmp.ge.f32.partialorder %v1773_v16, 0.0  ;;  %v914_v13 = vmul.f32 0.01, %v1773_v16  ;;  %v756_v48 = vadd.f32 %v1127_v26, %v1751_v25 }
 0x1eb   :  { %vm896_vm2 = vcmp.ge.f32.partialorder %v1783_v33, 0.0  ;;  %v748_v6 = vadd.f32 %v1751_v25, %v1746_v35  ;;  %v912_v15 = vmul.f32 0.01, %v1783_v33 }
 0x1ec   :  { %v915_v26 = vmul.f32 0.01, %v756_v48  ;;  %vm899_vm8 = vcmp.ge.f32.partialorder %v756_v48, 0.0 }
 0x1ed   :  { %v913_v45 = vmul.f32 0.01, %v748_v6  ;;  %vm897_vm9 = vcmp.ge.f32.partialorder %v748_v6, 0.0 }
 0x1f7   :  { %v1759_v8 = vpop.f32.mrb[12].mxu0 }
 0x1f8   :  { %v1762_v56 = vpop.f32.mrb[13].mxu0  ;;  %v769_v36 = vadd.f32 %v1759_v8, %v1751_v25 }
 0x1f9   :  { %v1764_v7 = vpop.f32.mrb[14].mxu0 }
 0x1fa   :  { %v1766_v32 = vpop.f32.mrb[15].mxu0  ;;  %v1146_v58 = vpop.f32.mrb[0].mxu1  ;;  %vm902_vm14 = vcmp.ge.f32.partialorder %v769_v36, 0.0 }
 0x1fb   :  { %v834_v63 = vadd.f32 %v1146_v58, %v1751_v25  ;;  %v825_v0 = vpop.f32.mrb[1].mxu1  ;;  %v930_v58 = vsel %vm898_vm15, %v1773_v16, %v914_v13 }
 0x1fc   :  { %v826_v52 = vadd.f32 %v1751_v25, %v825_v0  ;;  %v1147_v53 = vpop.f32.mrb[2].mxu1  ;;  %v931_v0 = vsel %vm899_vm8, %v756_v48, %v915_v26 }
 0x1fd   :  { %vm938_vm12 = vcmp.ge.f32.partialorder %v834_v63, 0.0  ;;  %v828_v62 = vpop.f32.mrb[3].mxu1  ;;  %v954_v4 = vmul.f32 0.01, %v834_v63  ;;  %v837_v22 = vadd.f32 %v1147_v53, %v1751_v25 }
 0x1fe   :  { %vm936_vm13 = vcmp.ge.f32.partialorder %v826_v52, 0.0  ;;  %v952_v1 = vmul.f32 0.01, %v826_v52  ;;  %v829_v41 = vadd.f32 %v1751_v25, %v828_v62  ;;  %v918_v62 = vmul.f32 0.01, %v769_v36 }
 0x1ff   :  { %v970_v3 = vsel %vm938_vm12, %v834_v63, %v954_v4  ;;  %vm939_vm0 = vcmp.ge.f32.partialorder %v837_v22, 0.0  ;;  %v955_v11 = vmul.f32 0.01, %v837_v22  ;;  %v928_v63 = vsel %vm896_vm2, %v1783_v33, %v912_v15 }
 0x200   :  { %v968_v20 = vsel %vm936_vm13, %v826_v52, %v952_v1  ;;  %v986_v23 = vmax.f32 %v922_v2, %v970_v3  ;;  %vm937_vm1 = vcmp.ge.f32.partialorder %v829_v41, 0.0  ;;  %v953_v27 = vmul.f32 0.01, %v829_v41 }
 0x201   :  { %v984_v38 = vmax.f32 %v920_v5, %v968_v20  ;;  %v971_v37 = vsel %vm939_vm0, %v837_v22, %v955_v11  ;;  %v761_v52 = vadd.f32 %v1751_v25, %v1762_v56  ;;  %v772_v1 = vadd.f32 %v1764_v7, %v1751_v25 }
 0x202   :  { %v1150_v31 = vpop.f32.mrb[4].mxu1  ;;  %1002 = vst.msk [vmem:[%s1901_s5 + $0x10] sm:$0xff] %vm522_vm3, %v986_v23  ;;  %v987_v42 = vmax.f32 %v923_v44, %v971_v37  ;;  %v969_v28 = vsel %vm937_vm1, %v829_v41, %v953_v27  ;;  %v929_v44 = vsel %vm897_vm9, %v748_v6, %v913_v45  ;;  %v764_v23 = vadd.f32 %v1751_v25, %v1766_v32 }
 0x203   :  { %1000 = vst.msk [vmem:[%s1901_s5] sm:$0xff] %vm522_vm3, %v984_v38  ;;  %v850_v39 = vadd.f32 %v1150_v31, %v1751_v25  ;;  %v841_v10 = vpop.f32.mrb[5].mxu1  ;;  %v985_v24 = vmax.f32 %v921_v9, %v969_v28  ;;  %vm900_vm15 = vcmp.ge.f32.partialorder %v761_v52, 0.0  ;;  %v934_v31 = vsel %vm902_vm14, %v769_v36, %v918_v62 }
 0x204   :  { %v842_v18 = vadd.f32 %v1751_v25, %v841_v10  ;;  %v1151_v55 = vpop.f32.mrb[6].mxu1  ;;  %1003 = vst.msk [vmem:[%s1901_s5 + $0x18] sm:$0xff] %vm522_vm3, %v987_v42  ;;  %vm903_vm0 = vcmp.ge.f32.partialorder %v772_v1, 0.0  ;;  %v919_v32 = vmul.f32 0.01, %v772_v1 }
 0x205   :  { %vm942_vm4 = vcmp.ge.f32.partialorder %v850_v39, 0.0  ;;  %v958_v29 = vmul.f32 0.01, %v850_v39  ;;  %v853_v14 = vadd.f32 %v1151_v55, %v1751_v25  ;;  %v844_v40 = vpop.f32.mrb[7].mxu1  ;;  %1001 = vst.msk [vmem:[%s1901_s5 + $0x8] sm:$0xff] %vm522_vm3, %v985_v24 }
 0x206   :  { %vm940_vm5 = vcmp.ge.f32.partialorder %v842_v18, 0.0  ;;  %v956_v35 = vmul.f32 0.01, %v842_v18  ;;  %v845_v17 = vadd.f32 %v1751_v25, %v844_v40  ;;  %v917_v28 = vmul.f32 0.01, %v764_v23 }
 0x207   :  { %v974_v46 = vsel %vm942_vm4, %v850_v39, %v958_v29  ;;  %vm943_vm6 = vcmp.ge.f32.partialorder %v853_v14, 0.0  ;;  %v959_v51 = vmul.f32 0.01, %v853_v14  ;;  %vm901_vm4 = vcmp.ge.f32.partialorder %v764_v23, 0.0 }
 0x208   :  { %v990_v57 = vmax.f32 %v1776_v61, %v974_v46  ;;  %v972_v49 = vsel %vm940_vm5, %v842_v18, %v956_v35  ;;  %vm941_vm7 = vcmp.ge.f32.partialorder %v845_v17, 0.0  ;;  %v957_v30 = vmul.f32 0.01, %v845_v17 }
 0x209   :  { %v988_v50 = vmax.f32 %v1778_v19, %v972_v49  ;;  %v975_v34 = vsel %vm943_vm6, %v853_v14, %v959_v51  ;;  %v935_v35 = vsel %vm903_vm0, %v772_v1, %v919_v32  ;;  %v933_v46 = vsel %vm901_vm4, %v764_v23, %v917_v28 }
 0x20a   :  { %1006 = vst.msk [vmem:[%s1901_s5 + $0x30] sm:$0xff] %vm522_vm3, %v990_v57  ;;  %v991_v47 = vmax.f32 %v1787_v21, %v975_v34  ;;  %v973_v2 = vsel %vm941_vm7, %v845_v17, %v957_v30  ;;  %v1154_v59 = vpop.f32.mrb[8].mxu1  ;;  %v916_v21 = vmul.f32 0.01, %v761_v52 }
 0x20b   :  { %1004 = vst.msk [vmem:[%s1901_s5 + $0x20] sm:$0xff] %vm522_vm3, %v988_v50  ;;  %v989_v5 = vmax.f32 %v925_v54, %v973_v2  ;;  %v866_v8 = vadd.f32 %v1154_v59, %v1751_v25  ;;  %v857_v60 = vpop.f32.mrb[9].mxu1 }
 0x20c   :  { %1007 = vst.msk [vmem:[%s1901_s5 + $0x38] sm:$0xff] %vm522_vm3, %v991_v47  ;;  %v858_v12 = vadd.f32 %v1751_v25, %v857_v60  ;;  %v1155_v16 = vpop.f32.mrb[10].mxu1  ;;  %v932_v39 = vsel %vm900_vm15, %v761_v52, %v916_v21 }
 0x20d   :  { %1005 = vst.msk [vmem:[%s1901_s5 + $0x28] sm:$0xff] %vm522_vm3, %v989_v5  ;;  %vm946_vm10 = vcmp.ge.f32.partialorder %v866_v8, 0.0  ;;  %v962_v53 = vmul.f32 0.01, %v866_v8  ;;  %v869_v9 = vadd.f32 %v1155_v16, %v1751_v25  ;;  %v860_v61 = vpop.f32.mrb[11].mxu1 }
 0x20e   :  { %vm944_vm11 = vcmp.ge.f32.partialorder %v858_v12, 0.0  ;;  %v960_v19 = vmul.f32 0.01, %v858_v12  ;;  %v861_v4 = vadd.f32 %v1751_v25, %v860_v61 }
 0x20f   :  { %v978_v43 = vsel %vm946_vm10, %v866_v8, %v962_v53  ;;  %vm947_vm12 = vcmp.ge.f32.partialorder %v869_v9, 0.0  ;;  %v963_v56 = vmul.f32 0.01, %v869_v9 }
 0x210   :  { %v994_v33 = vmax.f32 %v930_v58, %v978_v43  ;;  %v976_v22 = vsel %vm944_vm11, %v858_v12, %v960_v19  ;;  %vm945_vm13 = vcmp.ge.f32.partialorder %v861_v4, 0.0  ;;  %v961_v41 = vmul.f32 0.01, %v861_v4 }
 0x211   :  { %v992_v3 = vmax.f32 %v928_v63, %v976_v22  ;;  %v979_v20 = vsel %vm947_vm12, %v869_v9, %v963_v56 }
 0x212   :  { %1010 = vst.msk [vmem:[%s1901_s5 + $0x50] sm:$0xff] %vm522_vm3, %v994_v33  ;;  %v995_v7 = vmax.f32 %v931_v0, %v979_v20  ;;  %v977_v38 = vsel %vm945_vm13, %v861_v4, %v961_v41  ;;  %v1158_v11 = vpop.f32.mrb[12].mxu1 }
 0x213   :  { %1008 = vst.msk [vmem:[%s1901_s5 + $0x40] sm:$0xff] %vm522_vm3, %v992_v3  ;;  %v993_v13 = vmax.f32 %v929_v44, %v977_v38  ;;  %v882_v48 = vadd.f32 %v1158_v11, %v1751_v25  ;;  %v873_v27 = vpop.f32.mrb[13].mxu1 }
 0x214   :  { %1011 = vst.msk [vmem:[%s1901_s5 + $0x58] sm:$0xff] %vm522_vm3, %v995_v7  ;;  %v874_v6 = vadd.f32 %v1751_v25, %v873_v27  ;;  %v1159_v37 = vpop.f32.mrb[14].mxu1 }
 0x215   :  { %1009 = vst.msk [vmem:[%s1901_s5 + $0x48] sm:$0xff] %vm522_vm3, %v993_v13  ;;  %vm950_vm1 = vcmp.ge.f32.partialorder %v882_v48, 0.0  ;;  %v966_v10 = vmul.f32 0.01, %v882_v48  ;;  %v885_v15 = vadd.f32 %v1159_v37, %v1751_v25  ;;  %v876_v42 = vpop.f32.mrb[15].mxu1 }
 0x216   :  { %vm948_vm2 = vcmp.ge.f32.partialorder %v874_v6, 0.0  ;;  %v964_v18 = vmul.f32 0.01, %v874_v6  ;;  %v877_v55 = vadd.f32 %v1751_v25, %v876_v42 }
 0x217   :  { %v982_v24 = vsel %vm950_vm1, %v882_v48, %v966_v10  ;;  %vm951_vm5 = vcmp.ge.f32.partialorder %v885_v15, 0.0  ;;  %v967_v29 = vmul.f32 0.01, %v885_v15 }
 0x218   :  { %v998_v14 = vmax.f32 %v934_v31, %v982_v24  ;;  %v980_v40 = vsel %vm948_vm2, %v874_v6, %v964_v18  ;;  %vm949_vm6 = vcmp.ge.f32.partialorder %v877_v55, 0.0  ;;  %v965_v26 = vmul.f32 0.01, %v877_v55 }
 0x219   :  { %v996_v17 = vmax.f32 %v932_v39, %v980_v40  ;;  %v983_v45 = vsel %vm951_vm5, %v885_v15, %v967_v29 }
 0x21a   :  { %1014 = vst.msk [vmem:[%s1901_s5 + $0x70] sm:$0xff] %vm522_vm3, %v998_v14  ;;  %v999_v51 = vmax.f32 %v935_v35, %v983_v45  ;;  %v981_v25 = vsel %vm949_vm6, %v877_v55, %v965_v26 }
 0x21b   :  { %1012 = vst.msk [vmem:[%s1901_s5 + $0x60] sm:$0xff] %vm522_vm3, %v996_v17  ;;  %v997_v57 = vmax.f32 %v933_v46, %v981_v25 }
 0x21c   :  { %1015 = vst.msk [vmem:[%s1901_s5 + $0x78] sm:$0xff] %vm522_vm3, %v999_v51 }
 0x21d   :  { %1013 = vst.msk [vmem:[%s1901_s5 + $0x68] sm:$0xff] %vm522_vm3, %v997_v57 }
 0x21e   :  { %1020 = vsyncpa [#allocation3], 1 }
 0x21f   :  { %1021 = vsyncpa [#allocation5], 1 }

// kernel: eegnet2d_forward.5
= control target key start
LH: loop header
LB: loop body
LE: loop exit
PB: predicated region body
PF: predicated region fallthrough
CT: control target
= control target key end

     0   :  { %10 = vsyncpa [#allocation3], 0  ;;  %s1825_s18 = smov [#allocation2]   ;;  %s4021_s0 = inlined_call_operand.vmem [shape: f32[512,1], index: 0, kind: input, shape index: {}]   ;;  %s4022_s1 = inlined_call_operand.vmem [shape: f32[3,32], index: 1, kind: input, shape index: {}]   ;;  %s4023_s2 = inlined_call_operand.hbm [shape: f32[1,32], index: 2, kind: input, shape index: {}]   ;;  %s4024_s3 = inlined_call_operand.vmem [shape: f32[256,1], index: 3, kind: input, shape index: {}]   ;;  %s4025_s4 = inlined_call_operand.vmem [shape: f32[256,1], index: 4, kind: input, shape index: {}]   ;;  %s4026_s5 = inlined_call_operand.vmem [shape: f32[256,32], index: 5, kind: output, shape index: {}]  }
   0x1   :  { %s21_s19 = sshll.u32 %s1825_s18, 4  ;;  %s1801_s22 = scalar_lea.hbm %s4023_s2, 16  ;;  %s22_s19 = int_to_ptr.vmem [resolvable:$true] %s21_s19 }
   0x2   :  { %p1802_p0 = scmp.ne.s32.totalorder %s4023_s2, %s1801_s22  ;;  %p1805_p1 = scmp.lt.u32.totalorder %s1801_s22, %s4023_s2 }
   0x4   :  { %p1807_p2 = pnand %p1805_p1, %p1802_p0 }
   0x6   :  { %1810 = shalt.err (!%p1807_p2)
}
   0x7   :  { %s1811_s27 = scalar_lea.vmem %s22_s19, 16  ;;  %s1815_s28 = scalar_lea.vmem %s22_s19, 32 }
   0x8   :  { %p1812_p3 = scmp.ne.s32.totalorder %s22_s19, %s1811_s27  ;;  %p1816_p4 = scmp.lt.s32.totalorder %s22_s19, %s22_s19 }
   0x9   :  { %p1817_p5 = scmp.lt.s32.totalorder %s1815_s28, %s1811_s27 }
   0xb   :  { %p1818_p6 = por %p1817_p5, %p1816_p4 }
   0xd   :  { %p1819_p7 = pnand %p1818_p6, %p1812_p3 }
   0xf   :  { %1822 = shalt.err (!%p1819_p7)
}
  0x10   :  { %24 = dma.hbm_to_vmem [thread:$0]  %s4023_s2, 16, %s22_s19, [#allocation3]  }
  0x11   :  { %1823 = dma.done.wait [#allocation3], 16  }
  0x12   :  { %1824 = vsyncadd [#allocation3], 4294967280  ;;  %v191_v0 = vlaneseq  ;;  %v1826_v1 = vmov 0   ;;  %v1874_v3 = vld [vmem:[%s4021_s0 + $0x11] ss:$2 sm:$0xff]  ;;  %v226_v12 = vld [vmem:[%s4024_s3] sm:$0xff] }
  0x13   :  { %1797 = vset.pattern.permute.xlu1 %v1826_v1  ;;  %1796 = vset.pattern.permute.xlu0 %v1826_v1  ;;  %v1879_v4 = vld [vmem:[%s4021_s0 + $0x21] ss:$2 sm:$0xff]  ;;  %v228_v5 = vld [vmem:[%s4024_s3 + $0x10] sm:$0xff]  ;;  %v160_v6 = vrot.slane %v1874_v3, 7  ;;  %v229_v16 = vld [vmem:[%s4024_s3 + $0x18] sm:$0xff] }
  0x14   :  { %v1869_v2 = vshrl.u32 %v191_v0, 7  ;;  %v161_v7 = vrot.slane %v1879_v4, 7  ;;  %v1890_v8 = vld [vmem:[%s4021_s0 + $0x1] ss:$2 sm:$0xff]  ;;  %v1895_v9 = vld [vmem:[%s4021_s0 + $0x1f1] ss:$2 sm:$0xff] }
  0x15   :  { %v159_v10 = vrot.slane %v1890_v8, 7  ;;  %v4028_v11 = vrot.slane %v1895_v9, 7  ;;  %v1905_v13 = vld [vmem:[%s4021_s0 + $0x31] ss:$2 sm:$0xff]  ;;  %v1916_v17 = vld [vmem:[%s4021_s0 + $0x41] ss:$2 sm:$0xff] }
  0x16   :  { %vm193_vm0 = vcmp.lt.s32.totalorder %v1869_v2, 1  ;;  %v162_v15 = vrot.slane %v1905_v13, 7  ;;  %v1921_v18 = vld [vmem:[%s4021_s0 + $0x51] ss:$2 sm:$0xff]  ;;  %v227_v22 = vld [vmem:[%s4024_s3 + $0x8] sm:$0xff]  ;;  %v163_v23 = vrot.slane %v1916_v17, 7 }
  0x17   :  { %v223_v14 = vsel %vm193_vm0, %v160_v6, %v161_v7  ;;  %v225_v20 = vsel %vm193_vm0, %v4028_v11, %v159_v10  ;;  %v224_v21 = vsel %vm193_vm0, %v159_v10, %v160_v6  ;;  %v1936_v24 = vld [vmem:[%s4021_s0 + $0x61] ss:$2 sm:$0xff]  ;;  %v164_v27 = vrot.slane %v1921_v18, 7  ;;  %v1944_v28 = vld [vmem:[%s4021_s0 + $0x71] ss:$2 sm:$0xff] }
  0x18   :  { %v260_v19 = vmul.f32 %v228_v5, %v223_v14  ;;  %v258_v25 = vmul.f32 %v226_v12, %v225_v20  ;;  %v222_v26 = vsel %vm193_vm0, %v161_v7, %v162_v15  ;;  %v259_v30 = vmul.f32 %v227_v22, %v224_v21  ;;  %v231_v32 = vld [vmem:[%s4024_s3 + $0x28] sm:$0xff]  ;;  %v230_v36 = vld [vmem:[%s4024_s3 + $0x20] sm:$0xff]  ;;  %v1966_v38 = vld [vmem:[%s4021_s0 + $0x91] ss:$2 sm:$0xff] }
  0x19   :  { %v261_v29 = vmul.f32 %v229_v16, %v222_v26  ;;  %v220_v31 = vsel %vm193_vm0, %v163_v23, %v164_v27  ;;  %v165_v33 = vrot.slane %v1936_v24, 7  ;;  %v166_v34 = vrot.slane %v1944_v28, 7  ;;  %v1961_v37 = vld [vmem:[%s4021_s0 + $0x81] ss:$2 sm:$0xff]  ;;  %v233_v42 = vld [vmem:[%s4024_s3 + $0x38] sm:$0xff]  ;;  %v232_v47 = vld [vmem:[%s4024_s3 + $0x30] sm:$0xff] }
  0x1a   :  { %435 = vperm.xlu1 %1797, %v260_v19   ;;  %425 = vperm.xlu0 %1796, %v258_v25   ;;  %v221_v35 = vsel %vm193_vm0, %v162_v15, %v163_v23  ;;  %v263_v39 = vmul.f32 %v231_v32, %v220_v31  ;;  %v167_v43 = vrot.slane %v1961_v37, 7  ;;  %v168_v44 = vrot.slane %v1966_v38, 7  ;;  %v1978_v45 = vld [vmem:[%s4021_s0 + $0xa1] ss:$2 sm:$0xff]  ;;  %v1988_v48 = vld [vmem:[%s4021_s0 + $0xb1] ss:$2 sm:$0xff] }
  0x1b   :  { %v262_v40 = vmul.f32 %v230_v36, %v221_v35  ;;  %v218_v41 = vsel %vm193_vm0, %v165_v33, %v166_v34  ;;  %v219_v46 = vsel %vm193_vm0, %v164_v27, %v165_v33  ;;  %v169_v50 = vrot.slane %v1978_v45, 7  ;;  %v235_v53 = vld [vmem:[%s4024_s3 + $0x48] sm:$0xff]  ;;  %v234_v55 = vld [vmem:[%s4024_s3 + $0x40] sm:$0xff]  ;;  %v2010_v58 = vld [vmem:[%s4021_s0 + $0xd1] ss:$2 sm:$0xff] }
  0x1c   :  { %v265_v49 = vmul.f32 %v233_v42, %v218_v41  ;;  %v264_v51 = vmul.f32 %v232_v47, %v219_v46  ;;  %v216_v52 = vsel %vm193_vm0, %v167_v43, %v168_v44  ;;  %v217_v54 = vsel %vm193_vm0, %v166_v34, %v167_v43  ;;  %v2005_v57 = vld [vmem:[%s4021_s0 + $0xc1] ss:$2 sm:$0xff]  ;;  %v2020_v60 = vld [vmem:[%s4021_s0 + $0xf1] ss:$2 sm:$0xff]  ;;  %v2083_v35 = vld [vmem:[%s4021_s0 + $0x30] ss:$2 sm:$0xff] }
  0x1d   :  { %v170_v56 = vrot.slane %v1988_v48, 7  ;;  %v2015_v59 = vld [vmem:[%s4021_s0 + $0xe1] ss:$2 sm:$0xff]  ;;  %v267_v61 = vmul.f32 %v235_v53, %v216_v52  ;;  %v266_v62 = vmul.f32 %v234_v55, %v217_v54  ;;  %v237_v0 = vld [vmem:[%s4024_s3 + $0x58] sm:$0xff]  ;;  %v171_v1 = vrot.slane %v2005_v57, 7  ;;  %v236_v10 = vld [vmem:[%s4024_s3 + $0x50] sm:$0xff] }
  0x1e   :  { %440 = vperm.xlu1 %1797, %v261_v29   ;;  %430 = vperm.xlu0 %1796, %v259_v30   ;;  %v172_v5 = vrot.slane %v2010_v58, 7  ;;  %v173_v6 = vrot.slane %v2015_v59, 7  ;;  %v215_v7 = vsel %vm193_vm0, %v168_v44, %v169_v50  ;;  %v174_v12 = vrot.slane %v2020_v60, 7  ;;  %v2039_v14 = vld [vmem:[%s4021_s0 + $0x101] ss:$2 sm:$0xff]  ;;  %v241_v30 = vld [vmem:[%s4024_s3 + $0x78] sm:$0xff] }
  0x1f   :  { %v214_v63 = vsel %vm193_vm0, %v169_v50, %v170_v56  ;;  %v2044_v15 = vld [vmem:[%s4021_s0 + $0x111] ss:$2 sm:$0xff]  ;;  %v2049_v16 = vld [vmem:[%s4021_s0 + $0x121] ss:$2 sm:$0xff]  ;;  %vm322_vm1 = vcmp.lt.s32.totalorder %v1869_v2, 7  ;;  %v268_v20 = vmul.f32 %v236_v10, %v215_v7  ;;  %v213_v23 = vsel %vm193_vm0, %v170_v56, %v171_v1 }
  0x20   :  { %v269_v19 = vmul.f32 %v237_v0, %v214_v63  ;;  %v212_v21 = vsel %vm193_vm0, %v171_v1, %v172_v5  ;;  %v239_v22 = vld [vmem:[%s4024_s3 + $0x68] sm:$0xff]  ;;  %v238_v25 = vld [vmem:[%s4024_s3 + $0x60] sm:$0xff]  ;;  %v211_v26 = vsel %vm193_vm0, %v172_v5, %v173_v6  ;;  %v2067_v27 = vld [vmem:[%s4021_s0 + $0x131] ss:$2 sm:$0xff]  ;;  %v210_v29 = vsel %vm193_vm0, %v173_v6, %v174_v12 }
  0x21   :  { %v240_v31 = vld [vmem:[%s4024_s3 + $0x70] sm:$0xff]  ;;  %v175_v32 = vrot.slane %v2039_v14, 7  ;;  %v176_v33 = vrot.slane %v2044_v15, 7  ;;  %v177_v34 = vrot.slane %v2049_v16, 7  ;;  %v2088_v36 = vld [vmem:[%s4021_s0 + $0x20] ss:$2 sm:$0xff]  ;;  %v270_v41 = vmul.f32 %v238_v25, %v213_v23 }
  0x22   :  { %450 = vperm.xlu1 %1797, %v263_v39   ;;  %445 = vperm.xlu0 %1796, %v262_v40   ;;  %v2093_v39 = vld [vmem:[%s4021_s0 + $0x50] ss:$2 sm:$0xff]  ;;  %v271_v40 = vmul.f32 %v239_v22, %v212_v21  ;;  %v4029_v42 = vrot.slane %v2067_v27, 7  ;;  %v293_v43 = vrot.slane %v2083_v35, 1  ;;  %v2100_v44 = vld [vmem:[%s4021_s0 + $0x40] ss:$2 sm:$0xff]  ;;  %v273_v47 = vmul.f32 %v241_v30, %v210_v29 }
  0x23   :  { %v2105_v46 = vld [vmem:[%s4021_s0 + $0x70] ss:$2 sm:$0xff]  ;;  %v4027_v50 = vrot.slane %v2088_v36, 1  ;;  %v2112_v52 = vld [vmem:[%s4021_s0 + $0x60] ss:$2 sm:$0xff]  ;;  %v208_v54 = vsel %vm193_vm0, %v175_v32, %v176_v33  ;;  %v209_v55 = vsel %vm193_vm0, %v174_v12, %v175_v32  ;;  %v294_v56 = vrot.slane %v2100_v44, 1 }
  0x24   :  { %v2117_v53 = vld [vmem:[%s4021_s0 + $0x90] ss:$2 sm:$0xff]  ;;  %v296_v1 = vrot.slane %v2112_v52, 1  ;;  %v2149_v7 = vld [vmem:[%s4021_s0 + $0xa0] ss:$2 sm:$0xff] }
  0x25   :  { %v2135_v63 = vld [vmem:[%s4021_s0 + $0xb0] ss:$2 sm:$0xff]  ;;  %v2141_v0 = vsel %vm322_vm1, %v4027_v50, %v293_v43  ;;  %v299_v5 = vrot.slane %v2117_v53, 1  ;;  %v243_v10 = vld [vmem:[%s4024_s3 + $0x88] sm:$0xff]  ;;  %v242_v12 = vld [vmem:[%s4024_s3 + $0x80] sm:$0xff]  ;;  %v300_v22 = vrot.slane %v2149_v7, 1 }
  0x26   :  { %460 = vperm.xlu1 %1797, %v265_v49   ;;  %455 = vperm.xlu0 %1796, %v264_v51   ;;  %v272_v49 = vmul.f32 %v240_v31, %v211_v26  ;;  %v295_v51 = vrot.slane %v2093_v39, 1  ;;  %4051 = vst [vmem:[#allocation5_spill] sm:$0xff] %v2141_v0  ;;  %v301_v21 = vrot.slane %v2135_v63, 1  ;;  %v2170_v23 = vld [vmem:[%s4021_s0 + $0x141] ss:$2 sm:$0xff] }
  0x27   :  { %v2191_v31 = vld [vmem:[%s4021_s0 + $0xd0] ss:$2 sm:$0xff]  ;;  %v2196_v32 = vld [vmem:[%s4021_s0 + $0xc0] ss:$2 sm:$0xff]  ;;  %v179_v50 = vrot.slane %v2170_v23, 7 }
  0x28   :  { %v2178_v26 = vsel %vm322_vm1, %v295_v51, %v296_v1 }
  0x29   :  { %4055 = vst [vmem:[#allocation9_spill] sm:$0xff] %v2178_v26 }
  0x2a   :  { %470 = vperm.xlu1 %1797, %v267_v61   ;;  %465 = vperm.xlu0 %1796, %v266_v62   ;;  %v297_v61 = vrot.slane %v2105_v46, 1  ;;  %v2130_v62 = vld [vmem:[%s4021_s0 + $0x80] ss:$2 sm:$0xff] }
  0x2b   :  { %v298_v6 = vrot.slane %v2130_v62, 1 }
  0x2c   :  { %v2174_v25 = vsel %vm322_vm1, %v296_v1, %v297_v61 }
  0x2d   :  { %4054 = vst [vmem:[#allocation8_spill] sm:$0xff] %v2174_v25  ;;  %v2182_v29 = vsel %vm322_vm1, %v298_v6, %v299_v5  ;;  %v2186_v30 = vsel %vm322_vm1, %v297_v61, %v298_v6  ;;  %v2216_v61 = vld [vmem:[%s4021_s0 + $0xe0] ss:$2 sm:$0xff]  ;;  %v275_v6 = vmul.f32 %v243_v10, %v208_v54  ;;  %v245_v54 = vld [vmem:[%s4024_s3 + $0x98] sm:$0xff] }
  0x2e   :  { %480 = vperm.xlu1 %1797, %v269_v19   ;;  %475 = vperm.xlu0 %1796, %v268_v20   ;;  %v2159_v19 = vsel %vm322_vm1, %v294_v56, %v295_v51  ;;  %v2163_v20 = vsel %vm322_vm1, %v293_v43, %v294_v56  ;;  %4056 = vst [vmem:[#allocation10_spill] sm:$0xff] %v2182_v29  ;;  %4057 = vst [vmem:[#allocation11_spill] sm:$0xff] %v2186_v30  ;;  %v303_v51 = vrot.slane %v2191_v31, 1 }
  0x2f   :  { %4052 = vst [vmem:[#allocation6_spill] sm:$0xff] %v2159_v19  ;;  %4053 = vst [vmem:[#allocation7_spill] sm:$0xff] %v2163_v20  ;;  %v2209_v43 = vsel %vm322_vm1, %v299_v5, %v300_v22  ;;  %v302_v56 = vrot.slane %v2196_v32, 1  ;;  %v4030_v1 = vrot.slane %v2216_v61, 1  ;;  %v254_v20 = vld [vmem:[%s4024_s3 + $0xe0] sm:$0xff] }
  0x30   :  { %4059 = vst [vmem:[#allocation13_spill] sm:$0xff] %v2209_v43  ;;  %v249_v43 = vld [vmem:[%s4024_s3 + $0xb8] sm:$0xff] }
  0x31   :  { %v2222_v11 = vsel %vm322_vm1, %v302_v56, %v303_v51  ;;  %v2226_v5 = vsel %vm322_vm1, %v301_v21, %v302_v56  ;;  %v2261_v56 = vld [vmem:[%s4021_s0 + $0x171] ss:$2 sm:$0xff] }
  0x32   :  { %490 = vperm.xlu1 %1797, %v271_v40   ;;  %485 = vperm.xlu0 %1796, %v270_v41   ;;  %v2201_v40 = vld [vmem:[%s4021_s0 + $0x151] ss:$2 sm:$0xff]  ;;  %v2205_v41 = vsel %vm322_vm1, %v300_v22, %v301_v21  ;;  %4060 = vst [vmem:[#allocation14_spill] sm:$0xff] %v2222_v11  ;;  %4061 = vst [vmem:[#allocation15_spill] sm:$0xff] %v2226_v5  ;;  %v274_v22 = vmul.f32 %v242_v12, %v209_v55  ;;  %v2241_v21 = vld [vmem:[%s4021_s0 + $0x161] ss:$2 sm:$0xff] }
  0x33   :  { %4058 = vst [vmem:[#allocation12_spill] sm:$0xff] %v2205_v41  ;;  %v180_v10 = vrot.slane %v2201_v40, 7  ;;  %v207_v55 = vsel %vm193_vm0, %v176_v33, %v177_v34  ;;  %v244_v12 = vld [vmem:[%s4024_s3 + $0x90] sm:$0xff]  ;;  %v247_v33 = vld [vmem:[%s4024_s3 + $0xa8] sm:$0xff] }
  0x35   :  { %v204_v11 = vsel %vm193_vm0, %v179_v50, %v180_v10 }
  0x36   :  { %500 = vperm.xlu1 %1797, %v273_v47   ;;  %495 = vperm.xlu0 %1796, %v272_v49   ;;  %v206_v47 = vsel %vm193_vm0, %v177_v34, %v4029_v42  ;;  %v2247_v49 = vsel %vm322_vm1, %v303_v51, %v4030_v1  ;;  %v181_v51 = vrot.slane %v2241_v21, 7  ;;  %v276_v1 = vmul.f32 %v244_v12, %v207_v55  ;;  %v2295_v55 = vld [vmem:[%s4021_s0 + $0x1f0] ss:$2 sm:$0xff] }
  0x37   :  { %4062 = vst [vmem:[#allocation16_spill] sm:$0xff] %v2247_v49  ;;  %v277_v42 = vmul.f32 %v245_v54, %v206_v47  ;;  %v4063_v34 = vrot.slane %v2067_v27, 7  ;;  %v182_v47 = vrot.slane %v2261_v56, 7  ;;  %v2285_v54 = vld [vmem:[%s4021_s0 + $0x191] ss:$2 sm:$0xff]  ;;  %v279_v41 = vmul.f32 %v247_v33, %v204_v11 }
  0x38   :  { %v184_v30 = vrot.slane %v2285_v54, 7  ;;  %v2327_v33 = vld [vmem:[%s4021_s0 + $0x1b1] ss:$2 sm:$0xff] }
  0x39   :  { %v205_v49 = vsel %vm193_vm0, %v4063_v34, %v179_v50  ;;  %v2290_v50 = vld [vmem:[%s4021_s0] ss:$2 sm:$0xff]  ;;  %v4031_v34 = vrot.slane %v2295_v55, 1  ;;  %v202_v29 = vsel %vm193_vm0, %v181_v51, %v182_v47 }
  0x3a   :  { %510 = vperm.xlu1 %1797, %v275_v6   ;;  %505 = vperm.xlu0 %1796, %v274_v22   ;;  %v246_v6 = vld [vmem:[%s4024_s3 + $0xa0] sm:$0xff]  ;;  %v4032_v12 = vrot.slane %v2290_v50, 1 }
  0x3b   :  { %v2280_v22 = vld [vmem:[%s4021_s0 + $0x181] ss:$2 sm:$0xff]  ;;  %v278_v5 = vmul.f32 %v246_v6, %v205_v49  ;;  %v281_v6 = vmul.f32 %v249_v43, %v202_v29  ;;  %v2349_v43 = vld [vmem:[%s4021_s0 + $0x1d1] ss:$2 sm:$0xff] }
  0x3c   :  { %v183_v25 = vrot.slane %v2280_v22, 7  ;;  %v2312_v11 = vsel %vm322_vm1, %v4031_v34, %v4032_v12  ;;  %v2322_v49 = vld [vmem:[%s4021_s0 + $0x1a1] ss:$2 sm:$0xff]  ;;  %v188_v26 = vrot.slane %v2349_v43, 7 }
  0x3d   :  { %4064 = vst [vmem:[#allocation17_spill] sm:$0xff] %v2312_v11  ;;  %v185_v12 = vrot.slane %v2322_v49, 7  ;;  %v186_v11 = vrot.slane %v2327_v33, 7  ;;  %v250_v29 = vld [vmem:[%s4024_s3 + $0xc0] sm:$0xff] }
  0x3e   :  { %520 = vperm.xlu1 %1797, %v277_v42   ;;  %515 = vperm.xlu0 %1796, %v276_v1   ;;  %v203_v42 = vsel %vm193_vm0, %v180_v10, %v181_v51  ;;  %v248_v1 = vld [vmem:[%s4024_s3 + $0xb0] sm:$0xff]  ;;  %v200_v10 = vsel %vm193_vm0, %v183_v25, %v184_v30  ;;  %v251_v51 = vld [vmem:[%s4024_s3 + $0xc8] sm:$0xff]  ;;  %v201_v19 = vsel %vm193_vm0, %v182_v47, %v183_v25  ;;  %v253_v47 = vld [vmem:[%s4024_s3 + $0xd8] sm:$0xff] }
  0x3f   :  { %v280_v34 = vmul.f32 %v248_v1, %v203_v42  ;;  %v282_v42 = vmul.f32 %v250_v29, %v201_v19  ;;  %v198_v25 = vsel %vm193_vm0, %v185_v12, %v186_v11  ;;  %v199_v0 = vsel %vm193_vm0, %v184_v30, %v185_v12  ;;  %v2366_v19 = vld [vmem:[%s4021_s0 + $0x1e1] ss:$2 sm:$0xff] }
  0x40   :  { %v255_v30 = vld [vmem:[%s4024_s3 + $0xe8] sm:$0xff]  ;;  %v189_v12 = vrot.slane %v2366_v19, 7 }
  0x42   :  { %530 = vperm.xlu1 %1797, %v279_v41   ;;  %525 = vperm.xlu0 %1796, %v278_v5   ;;  %v2344_v41 = vld [vmem:[%s4021_s0 + $0x1c1] ss:$2 sm:$0xff]  ;;  %v283_v5 = vmul.f32 %v251_v51, %v200_v10 }
  0x43   :  { %v187_v1 = vrot.slane %v2344_v41, 7 }
  0x45   :  { %v196_v51 = vsel %vm193_vm0, %v187_v1, %v188_v26  ;;  %v197_v29 = vsel %vm193_vm0, %v186_v11, %v187_v1  ;;  %v195_v11 = vsel %vm193_vm0, %v188_v26, %v189_v12  ;;  %v256_v1 = vld [vmem:[%s4024_s3 + $0xf0] sm:$0xff] }
  0x46   :  { %540 = vperm.xlu1 %1797, %v281_v6   ;;  %535 = vperm.xlu0 %1796, %v280_v34   ;;  %v252_v6 = vld [vmem:[%s4024_s3 + $0xd0] sm:$0xff]  ;;  %v285_v34 = vmul.f32 %v253_v47, %v198_v25  ;;  %v257_v47 = vld [vmem:[%s4024_s3 + $0xf8] sm:$0xff] }
  0x47   :  { %v284_v10 = vmul.f32 %v252_v6, %v199_v0  ;;  %v286_v0 = vmul.f32 %v254_v20, %v197_v29  ;;  %v288_v20 = vmul.f32 %v256_v1, %v195_v11  ;;  %v2501_v29 = vld [vmem:[%s4021_s0 + $0x1d0] ss:$2 sm:$0xff] }
  0x4a   :  { %550 = vperm.xlu1 %1797, %v283_v5   ;;  %545 = vperm.xlu0 %1796, %v282_v42   ;;  %v287_v5 = vmul.f32 %v255_v30, %v196_v51  ;;  %v4065_v42 = vrot.slane %v1895_v9, 7  ;;  %v4066_v51 = vrot.slane %v2088_v36, 1  ;;  %v4067_v30 = vrot.slane %v2290_v50, 1 }
  0x4c   :  { %v194_v25 = vsel %vm193_vm0, %v189_v12, %v4065_v42 }
  0x4d   :  { %v289_v6 = vmul.f32 %v257_v47, %v194_v25 }
  0x4e   :  { %560 = vperm.xlu1 %1797, %v285_v34   ;;  %555 = vperm.xlu0 %1796, %v284_v10   ;;  %v1727_v34 = vld [vmem:[%s4021_s0 + $0x10] ss:$2 sm:$0xff] }
  0x4f   :  { %v291_v10 = vrot.slane %v1727_v34, 1 }
  0x51   :  { %v2398_v26 = vsel %vm322_vm1, %v291_v10, %v4066_v51  ;;  %v2404_v12 = vsel %vm322_vm1, %v4067_v30, %v291_v10 }
  0x52   :  { %570 = vperm.xlu1 %1797, %v287_v5   ;;  %565 = vperm.xlu0 %1796, %v286_v0   ;;  %v2506_v5 = vld [vmem:[%s4021_s0 + $0x1c0] ss:$2 sm:$0xff] }
  0x53   :  { %v2513_v0 = vld [vmem:[%s4021_s0 + $0x1e0] ss:$2 sm:$0xff] }
  0x56   :  { %580 = vperm.xlu1 %1797, %v289_v6   ;;  %575 = vperm.xlu0 %1796, %v288_v20  }
  0x5a   :  { %626 = vperm.xlu1 %1797, %v1727_v34   ;;  %621 = vperm.xlu0 %1796, %v2290_v50   ;;  %v2494_v50 = vld [vmem:[%s4021_s0 + $0x1a0] ss:$2 sm:$0xff]  ;;  %v357_v34 = vld [vmem:[%s4025_s4 + $0x10] sm:$0xff] }
  0x5e   :  { %636 = vperm.xlu1 %1797, %v2083_v35   ;;  %631 = vperm.xlu0 %1796, %v2088_v36   ;;  %v2422_v35 = vld [vmem:[%s4021_s0 + $0xf0] ss:$2 sm:$0xff] }
  0x5f   :  { %v2429_v36 = vld [vmem:[%s4021_s0 + $0x110] ss:$2 sm:$0xff] }
  0x62   :  { %646 = vperm.xlu1 %1797, %v2093_v39   ;;  %641 = vperm.xlu0 %1796, %v2100_v44   ;;  %v2434_v39 = vld [vmem:[%s4021_s0 + $0x100] ss:$2 sm:$0xff]  ;;  %v2441_v44 = vld [vmem:[%s4021_s0 + $0x130] ss:$2 sm:$0xff] }
  0x66   :  { %656 = vperm.xlu1 %1797, %v2105_v46   ;;  %651 = vperm.xlu0 %1796, %v2112_v52   ;;  %v2446_v46 = vld [vmem:[%s4021_s0 + $0x120] ss:$2 sm:$0xff]  ;;  %v2453_v52 = vld [vmem:[%s4021_s0 + $0x150] ss:$2 sm:$0xff] }
  0x6a   :  { %666 = vperm.xlu1 %1797, %v2117_v53   ;;  %661 = vperm.xlu0 %1796, %v2130_v62   ;;  %v2458_v53 = vld [vmem:[%s4021_s0 + $0x140] ss:$2 sm:$0xff]  ;;  %v2465_v62 = vld [vmem:[%s4021_s0 + $0x170] ss:$2 sm:$0xff] }
  0x6e   :  { %676 = vperm.xlu1 %1797, %v2135_v63   ;;  %671 = vperm.xlu0 %1796, %v2149_v7   ;;  %v2470_v63 = vld [vmem:[%s4021_s0 + $0x160] ss:$2 sm:$0xff]  ;;  %v2477_v7 = vld [vmem:[%s4021_s0 + $0x190] ss:$2 sm:$0xff] }
  0x72   :  { %686 = vperm.xlu1 %1797, %v2191_v31   ;;  %681 = vperm.xlu0 %1796, %v2196_v32   ;;  %v2482_v31 = vld [vmem:[%s4021_s0 + $0x180] ss:$2 sm:$0xff]  ;;  %v2489_v32 = vld [vmem:[%s4021_s0 + $0x1b0] ss:$2 sm:$0xff] }
  0x76   :  { %696 = vperm.xlu1 %1797, %v2422_v35   ;;  %691 = vperm.xlu0 %1796, %v2216_v61  }
  0x7a   :  { %706 = vperm.xlu1 %1797, %v2429_v36   ;;  %701 = vperm.xlu0 %1796, %v2434_v39  }
  0x7e   :  { %716 = vperm.xlu1 %1797, %v2441_v44   ;;  %711 = vperm.xlu0 %1796, %v2446_v46  }
  0x82   :  { %726 = vperm.xlu1 %1797, %v2453_v52   ;;  %721 = vperm.xlu0 %1796, %v2458_v53  }
  0x86   :  { %736 = vperm.xlu1 %1797, %v2465_v62   ;;  %731 = vperm.xlu0 %1796, %v2470_v63  }
  0x8a   :  { %746 = vperm.xlu1 %1797, %v2477_v7   ;;  %741 = vperm.xlu0 %1796, %v2482_v31  }
  0x8e   :  { %756 = vperm.xlu1 %1797, %v2489_v32   ;;  %751 = vperm.xlu0 %1796, %v2494_v50  }
  0x92   :  { %766 = vperm.xlu1 %1797, %v2501_v29   ;;  %761 = vperm.xlu0 %1796, %v2506_v5  }
  0x96   :  { %776 = vperm.xlu1 %1797, %v2295_v55   ;;  %771 = vperm.xlu0 %1796, %v2513_v0  }
  0x99   :  { %v2517_v42 = vpop.permute.xlu1 %435  ;;  %v2519_v25 = vpop.permute.xlu0 %425 }
  0x9a   :  { %854 = vperm.xlu1 %1797, %v1874_v3   ;;  %849 = vperm.xlu0 %1796, %v1890_v8  }
  0x9d   :  { %v2523_v47 = vpop.permute.xlu1 %440  ;;  %v2525_v11 = vpop.permute.xlu0 %430 }
  0x9e   :  { %864 = vperm.xlu1 %1797, %v1905_v13   ;;  %859 = vperm.xlu0 %1796, %v1879_v4  }
  0xa1   :  { %v2529_v1 = vpop.permute.xlu1 %450  ;;  %v2531_v6 = vpop.permute.xlu0 %445 }
  0xa2   :  { %874 = vperm.xlu1 %1797, %v1921_v18   ;;  %869 = vperm.xlu0 %1796, %v1916_v17  }
  0xa5   :  { %v2535_v20 = vpop.permute.xlu1 %460  ;;  %v2537_v3 = vpop.permute.xlu0 %455 }
  0xa6   :  { %884 = vperm.xlu1 %1797, %v1944_v28   ;;  %879 = vperm.xlu0 %1796, %v1936_v24  }
  0xa9   :  { %v2541_v8 = vpop.permute.xlu1 %470  ;;  %v2543_v13 = vpop.permute.xlu0 %465 }
  0xaa   :  { %894 = vperm.xlu1 %1797, %v1966_v38   ;;  %889 = vperm.xlu0 %1796, %v1961_v37  }
  0xad   :  { %v2547_v4 = vpop.permute.xlu1 %480  ;;  %v2549_v18 = vpop.permute.xlu0 %475 }
  0xae   :  { %904 = vperm.xlu1 %1797, %v1988_v48   ;;  %899 = vperm.xlu0 %1796, %v1978_v45  }
  0xb1   :  { %v2553_v17 = vpop.permute.xlu1 %490  ;;  %v2555_v28 = vpop.permute.xlu0 %485 }
  0xb2   :  { %914 = vperm.xlu1 %1797, %v2010_v58   ;;  %909 = vperm.xlu0 %1796, %v2005_v57  }
  0xb5   :  { %v2559_v24 = vpop.permute.xlu1 %500  ;;  %v2561_v38 = vpop.permute.xlu0 %495 }
  0xb6   :  { %924 = vperm.xlu1 %1797, %v2020_v60   ;;  %919 = vperm.xlu0 %1796, %v2015_v59  }
  0xb9   :  { %v2565_v37 = vpop.permute.xlu1 %510  ;;  %v2567_v48 = vpop.permute.xlu0 %505 }
  0xba   :  { %934 = vperm.xlu1 %1797, %v2044_v15   ;;  %929 = vperm.xlu0 %1796, %v2039_v14  }
  0xbd   :  { %v2571_v45 = vpop.permute.xlu1 %520  ;;  %v2573_v58 = vpop.permute.xlu0 %515 }
  0xbe   :  { %944 = vperm.xlu1 %1797, %v2067_v27   ;;  %939 = vperm.xlu0 %1796, %v2049_v16  }
  0xc1   :  { %v2577_v57 = vpop.permute.xlu1 %530  ;;  %v2579_v60 = vpop.permute.xlu0 %525 }
  0xc2   :  { %954 = vperm.xlu1 %1797, %v2201_v40   ;;  %949 = vperm.xlu0 %1796, %v2170_v23  }
  0xc5   :  { %v2583_v59 = vpop.permute.xlu1 %540  ;;  %v2585_v15 = vpop.permute.xlu0 %535 }
  0xc6   :  { %964 = vperm.xlu1 %1797, %v2261_v56   ;;  %959 = vperm.xlu0 %1796, %v2241_v21   ;;  %v356_v21 = vld [vmem:[%s4025_s4 + $0x8] sm:$0xff] }
  0xc9   :  { %v2589_v14 = vpop.permute.xlu1 %550  ;;  %v2591_v27 = vpop.permute.xlu0 %545 }
  0xca   :  { %974 = vperm.xlu1 %1797, %v2285_v54   ;;  %969 = vperm.xlu0 %1796, %v2280_v22   ;;  %v355_v22 = vld [vmem:[%s4025_s4] sm:$0xff] }
  0xcd   :  { %v2595_v16 = vpop.permute.xlu1 %560  ;;  %v2597_v40 = vpop.permute.xlu0 %555 }
  0xce   :  { %984 = vperm.xlu1 %1797, %v2327_v33   ;;  %979 = vperm.xlu0 %1796, %v2322_v49   ;;  %v388_v49 = vmul.f32 %v356_v21, %v2398_v26  ;;  %v4072_v26 = vld [vmem:[#allocation5_spill] sm:$0xff] }
  0xcf   :  { %v359_v21 = vld [vmem:[%s4025_s4 + $0x20] sm:$0xff] }
  0xd1   :  { %v2601_v23 = vpop.permute.xlu1 %570  ;;  %v2603_v56 = vpop.permute.xlu0 %565 }
  0xd2   :  { %4068 = vst [vmem:[#allocation18_spill] sm:$0xff] %v2603_v56  ;;  %994 = vperm.xlu1 %1797, %v2349_v43   ;;  %989 = vperm.xlu0 %1796, %v2344_v41   ;;  %v387_v41 = vmul.f32 %v355_v22, %v2404_v12  ;;  %v358_v43 = vld [vmem:[%s4025_s4 + $0x18] sm:$0xff]  ;;  %v360_v12 = vld [vmem:[%s4025_s4 + $0x28] sm:$0xff] }
  0xd5   :  { %v2613_v54 = vpop.permute.xlu1 %580  ;;  %v2615_v33 = vpop.permute.xlu0 %575 }
  0xd6   :  { %4069 = vst [vmem:[#allocation19_spill] sm:$0xff] %v2613_v54  ;;  %4070 = vst [vmem:[#allocation20_spill] sm:$0xff] %v2615_v33  ;;  %1004 = vperm.xlu1 %1797, %v1895_v9   ;;  %999 = vperm.xlu0 %1796, %v2366_v19   ;;  %v4071_v9 = vld [vmem:[#allocation7_spill] sm:$0xff]  ;;  %v389_v19 = vmul.f32 %v357_v34, %v4072_v26  ;;  %v4075_v54 = vld [vmem:[#allocation9_spill] sm:$0xff] }
  0xd7   :  { %v390_v30 = vmul.f32 %v358_v43, %v4071_v9  ;;  %v4076_v43 = vld [vmem:[#allocation6_spill] sm:$0xff]  ;;  %v362_v34 = vld [vmem:[%s4025_s4 + $0x38] sm:$0xff] }
  0xd8   :  { %v361_v9 = vld [vmem:[%s4025_s4 + $0x30] sm:$0xff] }
  0xd9   :  { %v2627_v10 = vpop.permute.xlu1 %626  ;;  %v2629_v51 = vpop.permute.xlu0 %621 }
  0xda   :  { %1216 = vperm.xlu1 %1797, %v388_v49   ;;  %1211 = vperm.xlu0 %1796, %v387_v41   ;;  %v392_v49 = vmul.f32 %v360_v12, %v4075_v54  ;;  %v391_v41 = vmul.f32 %v359_v21, %v4076_v43  ;;  %v4080_v54 = vld [vmem:[#allocation8_spill] sm:$0xff]  ;;  %v364_v12 = vld [vmem:[%s4025_s4 + $0x48] sm:$0xff] }
  0xdb   :  { %v363_v21 = vld [vmem:[%s4025_s4 + $0x40] sm:$0xff] }
  0xdd   :  { %v2639_v22 = vpop.permute.xlu1 %636  ;;  %v2641_v33 = vpop.permute.xlu0 %631 }
  0xde   :  { %4073 = vst [vmem:[#allocation7_spill] sm:$0xff] %v2639_v22  ;;  %4074 = vst [vmem:[#allocation5_spill] sm:$0xff] %v2641_v33  ;;  %1226 = vperm.xlu1 %1797, %v390_v30   ;;  %1221 = vperm.xlu0 %1796, %v389_v19   ;;  %v4079_v33 = vld [vmem:[#allocation11_spill] sm:$0xff]  ;;  %v393_v19 = vmul.f32 %v361_v9, %v4080_v54 }
  0xdf   :  { %v394_v30 = vmul.f32 %v362_v34, %v4079_v33  ;;  %v4084_v33 = vld [vmem:[#allocation10_spill] sm:$0xff]  ;;  %v366_v34 = vld [vmem:[%s4025_s4 + $0x58] sm:$0xff] }
  0xe0   :  { %v365_v9 = vld [vmem:[%s4025_s4 + $0x50] sm:$0xff] }
  0xe1   :  { %v2651_v26 = vpop.permute.xlu1 %646  ;;  %v2653_v56 = vpop.permute.xlu0 %641 }
  0xe2   :  { %4077 = vst [vmem:[#allocation9_spill] sm:$0xff] %v2651_v26  ;;  %4078 = vst [vmem:[#allocation6_spill] sm:$0xff] %v2653_v56  ;;  %1236 = vperm.xlu1 %1797, %v392_v49   ;;  %1231 = vperm.xlu0 %1796, %v391_v41   ;;  %v4083_v56 = vld [vmem:[#allocation13_spill] sm:$0xff]  ;;  %v395_v41 = vmul.f32 %v363_v21, %v4084_v33 }
  0xe3   :  { %v396_v49 = vmul.f32 %v364_v12, %v4083_v56  ;;  %v305_v56 = vrot.slane %v2422_v35, 1  ;;  %v4088_v12 = vld [vmem:[#allocation12_spill] sm:$0xff]  ;;  %v368_v33 = vld [vmem:[%s4025_s4 + $0x68] sm:$0xff] }
  0xe4   :  { %v397_v21 = vmul.f32 %v365_v9, %v4088_v12  ;;  %v4091_v9 = vld [vmem:[#allocation14_spill] sm:$0xff] }
  0xe5   :  { %v2663_v43 = vpop.permute.xlu1 %656  ;;  %v2665_v22 = vpop.permute.xlu0 %651 }
  0xe6   :  { %4081 = vst [vmem:[#allocation11_spill] sm:$0xff] %v2663_v43  ;;  %4082 = vst [vmem:[#allocation8_spill] sm:$0xff] %v2665_v22  ;;  %1246 = vperm.xlu1 %1797, %v394_v30   ;;  %1241 = vperm.xlu0 %1796, %v393_v19   ;;  %v4087_v22 = vld [vmem:[#allocation15_spill] sm:$0xff]  ;;  %v306_v19 = vrot.slane %v2434_v39, 1  ;;  %v307_v39 = vrot.slane %v2429_v36, 1 }
  0xe7   :  { %v398_v30 = vmul.f32 %v366_v34, %v4087_v22  ;;  %v4090_v22 = vld [vmem:[#allocation16_spill] sm:$0xff]  ;;  %v308_v34 = vrot.slane %v2446_v46, 1  ;;  %v369_v36 = vld [vmem:[%s4025_s4 + $0x70] sm:$0xff] }
  0xe8   :  { %v400_v35 = vmul.f32 %v368_v33, %v4090_v22 }
  0xe9   :  { %v2675_v54 = vpop.permute.xlu1 %666  ;;  %v2677_v26 = vpop.permute.xlu0 %661 }
  0xea   :  { %4085 = vst [vmem:[#allocation13_spill] sm:$0xff] %v2675_v54  ;;  %4086 = vst [vmem:[#allocation10_spill] sm:$0xff] %v2677_v26  ;;  %1256 = vperm.xlu1 %1797, %v396_v49   ;;  %1251 = vperm.xlu0 %1796, %v395_v41   ;;  %v367_v54 = vld [vmem:[%s4025_s4 + $0x60] sm:$0xff]  ;;  %v338_v41 = vsel %vm322_vm1, %v305_v56, %v306_v19  ;;  %v370_v26 = vld [vmem:[%s4025_s4 + $0x78] sm:$0xff] }
  0xeb   :  { %v399_v12 = vmul.f32 %v367_v54, %v4091_v9  ;;  %v402_v46 = vmul.f32 %v370_v26, %v338_v41  ;;  %v309_v54 = vrot.slane %v2441_v44, 1  ;;  %v371_v26 = vld [vmem:[%s4025_s4 + $0x80] sm:$0xff] }
  0xed   :  { %v2689_v43 = vpop.permute.xlu1 %676  ;;  %v2691_v49 = vpop.permute.xlu0 %671 }
  0xee   :  { %4089 = vst [vmem:[#allocation15_spill] sm:$0xff] %v2689_v43  ;;  %1266 = vperm.xlu1 %1797, %v398_v30   ;;  %1261 = vperm.xlu0 %1796, %v397_v21   ;;  %v4092_v43 = vrot.slane %v2216_v61, 1  ;;  %v336_v21 = vsel %vm322_vm1, %v307_v39, %v308_v34  ;;  %v310_v61 = vrot.slane %v2458_v53, 1  ;;  %v311_v53 = vrot.slane %v2453_v52, 1 }
  0xef   :  { %v313_v52 = vrot.slane %v2465_v62, 1  ;;  %v375_v62 = vld [vmem:[%s4025_s4 + $0xa0] sm:$0xff] }
  0xf0   :  { %v339_v30 = vsel %vm322_vm1, %v4092_v43, %v305_v56  ;;  %v372_v43 = vld [vmem:[%s4025_s4 + $0x88] sm:$0xff]  ;;  %v337_v56 = vsel %vm322_vm1, %v306_v19, %v307_v39  ;;  %v374_v19 = vld [vmem:[%s4025_s4 + $0x98] sm:$0xff]  ;;  %v335_v39 = vsel %vm322_vm1, %v308_v34, %v309_v54 }
  0xf1   :  { %v2709_v33 = vpop.permute.xlu1 %686  ;;  %v2711_v22 = vpop.permute.xlu0 %681  ;;  %v401_v9 = vmul.f32 %v369_v36, %v339_v30  ;;  %v404_v41 = vmul.f32 %v372_v43, %v336_v21  ;;  %v312_v30 = vrot.slane %v2470_v63, 1  ;;  %v403_v36 = vmul.f32 %v371_v26, %v337_v56  ;;  %v376_v34 = vld [vmem:[%s4025_s4 + $0xa8] sm:$0xff] }
  0xf2   :  { %1276 = vperm.xlu1 %1797, %v400_v35   ;;  %1271 = vperm.xlu0 %1796, %v399_v12   ;;  %v334_v12 = vsel %vm322_vm1, %v309_v54, %v310_v61  ;;  %v314_v43 = vrot.slane %v2482_v31, 1  ;;  %v333_v54 = vsel %vm322_vm1, %v310_v61, %v311_v53  ;;  %v315_v31 = vrot.slane %v2477_v7, 1 }
  0xf3   :  { %v332_v56 = vsel %vm322_vm1, %v311_v53, %v312_v30  ;;  %v319_v61 = vrot.slane %v2501_v29, 1  ;;  %v318_v53 = vrot.slane %v2506_v5, 1  ;;  %v407_v7 = vmul.f32 %v375_v62, %v333_v54 }
  0xf4   :  { %v329_v29 = vsel %vm322_vm1, %v314_v43, %v315_v31 }
  0xf5   :  { %v2725_v35 = vpop.permute.xlu1 %696  ;;  %v2727_v44 = vpop.permute.xlu0 %691 }
  0xf6   :  { %4093 = vst [vmem:[#allocation12_spill] sm:$0xff] %v2725_v35  ;;  %4094 = vst [vmem:[#allocation16_spill] sm:$0xff] %v2727_v44  ;;  %1286 = vperm.xlu1 %1797, %v402_v46   ;;  %1281 = vperm.xlu0 %1796, %v401_v9   ;;  %v373_v46 = vld [vmem:[%s4025_s4 + $0x90] sm:$0xff]  ;;  %v406_v9 = vmul.f32 %v374_v19, %v334_v12  ;;  %v330_v12 = vsel %vm322_vm1, %v313_v52, %v314_v43  ;;  %v316_v19 = vrot.slane %v2494_v50, 1  ;;  %v379_v43 = vld [vmem:[%s4025_s4 + $0xc0] sm:$0xff] }
  0xf7   :  { %v405_v26 = vmul.f32 %v373_v46, %v335_v39  ;;  %v408_v46 = vmul.f32 %v376_v34, %v332_v56  ;;  %v377_v50 = vld [vmem:[%s4025_s4 + $0xb0] sm:$0xff]  ;;  %v411_v2 = vmul.f32 %v379_v43, %v329_v29 }
  0xf8   :  { %v328_v5 = vsel %vm322_vm1, %v315_v31, %v316_v19  ;;  %v382_v31 = vld [vmem:[%s4025_s4 + $0xd8] sm:$0xff] }
  0xf9   :  { %v2741_v21 = vpop.permute.xlu1 %706  ;;  %v2745_v63 = vpop.permute.xlu0 %701 }
  0xfa   :  { %4095 = vst [vmem:[#allocation14_spill] sm:$0xff] %v2741_v21  ;;  %4096 = vst [vmem:[#allocation21_spill] sm:$0xff] %v2745_v63  ;;  %1296 = vperm.xlu1 %1797, %v404_v41   ;;  %1291 = vperm.xlu0 %1796, %v403_v36   ;;  %v317_v36 = vrot.slane %v2489_v32, 1  ;;  %v320_v63 = vrot.slane %v2513_v0, 1  ;;  %v331_v32 = vsel %vm322_vm1, %v312_v30, %v313_v52  ;;  %v2786_v0 = vld [vmem:[%s4022_s1] ss:$0 sm:$0xff] }
  0xfb   :  { %v380_v52 = vld [vmem:[%s4025_s4 + $0xc8] sm:$0xff]  ;;  %v409_v62 = vmul.f32 %v377_v50, %v331_v32  ;;  %v386_v32 = vld [vmem:[%s4025_s4 + $0xf8] sm:$0xff]  ;;  %v385_v50 = vld [vmem:[%s4025_s4 + $0xf0] sm:$0xff]  ;;  %v590_v29 = vmul.f32 %v2786_v0, %v2523_v47  ;;  %v2855_v43 = vmul.f32 %v2786_v0, %v2537_v3 }
  0xfc   :  { %v326_v34 = vsel %vm322_vm1, %v317_v36, %v318_v53  ;;  %v324_v54 = vsel %vm322_vm1, %v319_v61, %v320_v63  ;;  %v4102_v21 = vld [vmem:[#allocation17_spill] sm:$0xff]  ;;  %v2882_v3 = vld [vmem:[%s4022_s1 + $0x1] ss:$0 sm:$0xff] }
  0xfd   :  { %v2758_v41 = vpop.permute.xlu1 %716  ;;  %v2764_v39 = vpop.permute.xlu0 %711  ;;  %v2835_v44 = vmul.f32 %v386_v32, %v4102_v21  ;;  %v2851_v21 = vmul.f32 %v2786_v0, %v2535_v20  ;;  %v2877_v20 = vmul.f32 %v2786_v0, %v2553_v17  ;;  %v2900_v17 = vmul.f32 %v2786_v0, %v2565_v37 }
  0xfe   :  { %4097 = vst [vmem:[#allocation22_spill] sm:$0xff] %v2758_v41  ;;  %4098 = vst [vmem:[#allocation23_spill] sm:$0xff] %v2764_v39  ;;  %1306 = vperm.xlu1 %1797, %v406_v9   ;;  %1301 = vperm.xlu0 %1796, %v405_v26   ;;  %v378_v41 = vld [vmem:[%s4025_s4 + $0xb8] sm:$0xff]  ;;  %v327_v26 = vsel %vm322_vm1, %v316_v19, %v317_v36  ;;  %v325_v36 = vsel %vm322_vm1, %v318_v53, %v319_v61  ;;  %v4101_v19 = vrot.slane %v2295_v55, 1 }
  0xff   :  { %v410_v30 = vmul.f32 %v378_v41, %v330_v12  ;;  %v381_v41 = vld [vmem:[%s4025_s4 + $0xd0] sm:$0xff]  ;;  %v384_v12 = vld [vmem:[%s4025_s4 + $0xe8] sm:$0xff]  ;;  %v412_v61 = vmul.f32 %v380_v52, %v328_v5  ;;  %v414_v55 = vmul.f32 %v382_v31, %v326_v34  ;;  %v587_v5 = vmul.f32 %v2786_v0, %v2519_v25 }
 0x100   :  { %v591_v52 = vmul.f32 %v2786_v0, %v2531_v6  ;;  %v2859_v25 = vmul.f32 %v2786_v0, %v2541_v8  ;;  %v2873_v6 = vmul.f32 %v2786_v0, %v2549_v18  ;;  %v2896_v18 = vmul.f32 %v2786_v0, %v2561_v38 }
 0x101   :  { %v2777_v9 = vpop.permute.xlu1 %726  ;;  %v2788_v56 = vpop.permute.xlu0 %721  ;;  %v2916_v38 = vmul.f32 %v2786_v0, %v2577_v57  ;;  %v2920_v37 = vmul.f32 %v2786_v0, %v2579_v60  ;;  %v2936_v57 = vmul.f32 %v2786_v0, %v2589_v14  ;;  %v2940_v60 = vmul.f32 %v2786_v0, %v2591_v27  ;;  %v4105_v27 = vld [vmem:[#allocation7_spill] sm:$0xff] }
 0x102   :  { %4099 = vst [vmem:[#allocation24_spill] sm:$0xff] %v2777_v9  ;;  %4100 = vst [vmem:[#allocation25_spill] sm:$0xff] %v2788_v56  ;;  %1316 = vperm.xlu1 %1797, %v408_v46   ;;  %1311 = vperm.xlu0 %1796, %v407_v7   ;;  %v323_v46 = vsel %vm322_vm1, %v320_v63, %v4101_v19  ;;  %v383_v7 = vld [vmem:[%s4025_s4 + $0xe0] sm:$0xff]  ;;  %v413_v63 = vmul.f32 %v381_v41, %v327_v26 }
 0x103   :  { %v416_v19 = vmul.f32 %v384_v12, %v324_v54  ;;  %v589_v9 = vmul.f32 %v2786_v0, %v2517_v42  ;;  %v2832_v39 = vmul.f32 %v383_v7, %v325_v36  ;;  %v2837_v35 = vmul.f32 %v385_v50, %v323_v46  ;;  %v4106_v41 = vld [vmem:[#allocation5_spill] sm:$0xff]  ;;  %v4107_v12 = vld [vmem:[#allocation18_spill] sm:$0xff]  ;;  %v4109_v46 = vld [vmem:[#allocation19_spill] sm:$0xff] }
 0x104   :  { %v592_v42 = vmul.f32 %v2786_v0, %v2529_v1  ;;  %v2869_v1 = vmul.f32 %v2786_v0, %v2547_v4  ;;  %v2892_v4 = vmul.f32 %v2786_v0, %v2559_v24  ;;  %v2904_v26 = vmul.f32 %v2786_v0, %v2567_v48  ;;  %v4111_v50 = vld [vmem:[#allocation9_spill] sm:$0xff] }
 0x105   :  { %v2826_v56 = vpop.permute.xlu1 %736  ;;  %v2828_v53 = vpop.permute.xlu0 %731  ;;  %v2912_v24 = vmul.f32 %v2786_v0, %v2573_v58  ;;  %v2924_v48 = vmul.f32 %v2786_v0, %v2583_v59  ;;  %v784_v58 = vmul.f32 %v2882_v3, %v2627_v10  ;;  %v2944_v59 = vmul.f32 %v2786_v0, %v2595_v16 }
 0x106   :  { %1326 = vperm.xlu1 %1797, %v410_v30   ;;  %1321 = vperm.xlu0 %1796, %v409_v62   ;;  %v588_v30 = vmul.f32 %v2786_v0, %v2525_v11  ;;  %v2865_v11 = vmul.f32 %v2786_v0, %v2543_v13  ;;  %v2888_v13 = vmul.f32 %v2786_v0, %v2555_v28 }
 0x107   :  { %v2908_v28 = vmul.f32 %v2786_v0, %v2571_v45  ;;  %v2928_v45 = vmul.f32 %v2786_v0, %v2585_v15  ;;  %v783_v15 = vmul.f32 %v2882_v3, %v2629_v51  ;;  %v2952_v62 = vmul.f32 %v2786_v0, %v2597_v40  ;;  %v4110_v40 = vld [vmem:[#allocation20_spill] sm:$0xff] }
 0x108   :  { %v2956_v14 = vmul.f32 %v2786_v0, %v2601_v23  ;;  %v786_v31 = vmul.f32 %v2882_v3, %v4105_v27  ;;  %v785_v16 = vmul.f32 %v2882_v3, %v4106_v41  ;;  %v2964_v36 = vmul.f32 %v2786_v0, %v4107_v12 }
 0x109   :  { %v2861_v47 = vpop.permute.xlu1 %746  ;;  %v2884_v8 = vpop.permute.xlu0 %741  ;;  %4103 = vst [vmem:[#allocation17_spill] sm:$0xff] %v2952_v62  ;;  %v618_v7 = vmul.f32 %v2786_v0, %v4109_v46  ;;  %v617_v32 = vmul.f32 %v2786_v0, %v4110_v40  ;;  %v788_v23 = vmul.f32 %v2882_v3, %v4111_v50  ;;  %v815_v46 = vadd.f32 %v783_v15, %v587_v5  ;;  %v4118_v15 = vld [vmem:[#allocation13_spill] sm:$0xff] }
 0x10a   :  { %1336 = vperm.xlu1 %1797, %v412_v61   ;;  %1331 = vperm.xlu0 %1796, %v411_v2   ;;  %4104 = vst [vmem:[#allocation26_spill] sm:$0xff] %v2956_v14  ;;  %4108 = vst [vmem:[#allocation7_spill] sm:$0xff] %v2964_v36  ;;  %v816_v61 = vadd.f32 %v784_v58, %v588_v30  ;;  %v2974_v2 = vmul.f32 %v2786_v0, %v2627_v10  ;;  %v4116_v14 = vld [vmem:[#allocation11_spill] sm:$0xff]  ;;  %v4117_v58 = vld [vmem:[#allocation8_spill] sm:$0xff] }
 0x10b   :  { %v2986_v40 = vmul.f32 %v2786_v0, %v4105_v27  ;;  %v790_v30 = vmul.f32 %v2882_v3, %v4116_v14  ;;  %v789_v10 = vmul.f32 %v2882_v3, %v4117_v58  ;;  %v3000_v5 = vmul.f32 %v2786_v0, %v4106_v41 }
 0x10c   :  { %4112 = vst [vmem:[#allocation5_spill] sm:$0xff] %v2974_v2  ;;  %v792_v27 = vmul.f32 %v2882_v3, %v4118_v15  ;;  %v3009_v62 = vmul.f32 %v2786_v0, %v4111_v50  ;;  %v3021_v41 = vmul.f32 %v2786_v0, %v4116_v14 }
 0x10d   :  { %v2932_v34 = vpop.permute.xlu1 %756  ;;  %v2948_v54 = vpop.permute.xlu0 %751  ;;  %4115 = vst [vmem:[#allocation19_spill] sm:$0xff] %v2986_v40  ;;  %v3005_v40 = vadd.f32 %v788_v23, %v592_v42  ;;  %v4122_v42 = vld [vmem:[#allocation15_spill] sm:$0xff]  ;;  %v3032_v23 = vadd.f32 %v790_v30, %v2851_v21  ;;  %v3049_v21 = vmul.f32 %v2786_v0, %v4118_v15  ;;  %v795_v15 = vmul.f32 %v2882_v3, %v2711_v22 }
 0x10e   :  { %1346 = vperm.xlu1 %1797, %v414_v55   ;;  %1341 = vperm.xlu0 %1796, %v413_v63   ;;  %v2978_v55 = vmul.f32 %v2786_v0, %v2629_v51  ;;  %v4114_v63 = vld [vmem:[#allocation6_spill] sm:$0xff]  ;;  %v2994_v51 = vadd.f32 %v786_v31, %v590_v29  ;;  %4120 = vst [vmem:[#allocation20_spill] sm:$0xff] %v3021_v41 }
 0x10f   :  { %v787_v12 = vmul.f32 %v2882_v3, %v4114_v63  ;;  %4123 = vst [vmem:[#allocation6_spill] sm:$0xff] %v3049_v21 }
 0x110   :  { %4113 = vst [vmem:[#allocation18_spill] sm:$0xff] %v2978_v55  ;;  %v2996_v55 = vadd.f32 %v785_v16, %v589_v9  ;;  %v4119_v9 = vld [vmem:[#allocation10_spill] sm:$0xff]  ;;  %v794_v16 = vmul.f32 %v2882_v3, %v4122_v42 }
 0x111   :  { %v2982_v36 = vpop.permute.xlu1 %766  ;;  %v2992_v2 = vpop.permute.xlu0 %761  ;;  %v791_v29 = vmul.f32 %v2882_v3, %v4119_v9  ;;  %v3017_v31 = vadd.f32 %v787_v12, %v591_v52  ;;  %v793_v52 = vmul.f32 %v2882_v3, %v2691_v49 }
 0x112   :  { %1356 = vperm.xlu1 %1797, %v416_v19   ;;  %1351 = vperm.xlu0 %1796, %v2832_v39   ;;  %v3013_v19 = vmul.f32 %v2786_v0, %v4114_v63  ;;  %v3025_v39 = vmul.f32 %v2786_v0, %v4117_v58  ;;  %v3035_v63 = vadd.f32 %v789_v10, %v2855_v43 }
 0x113   :  { %v3045_v58 = vadd.f32 %v792_v27, %v2859_v25  ;;  %v3053_v43 = vmul.f32 %v2786_v0, %v4119_v9  ;;  %v3064_v25 = vadd.f32 %v791_v29, %v2865_v11  ;;  %v796_v10 = vmul.f32 %v2882_v3, %v2709_v33 }
 0x114   :  { %4121 = vst [vmem:[#allocation9_spill] sm:$0xff] %v3025_v39  ;;  %v3073_v9 = vadd.f32 %v794_v16, %v2869_v1  ;;  %v3088_v21 = vadd.f32 %v793_v52, %v2873_v6  ;;  %v4130_v1 = vld [vmem:[#allocation16_spill] sm:$0xff]  ;;  %v4133_v6 = vld [vmem:[#allocation14_spill] sm:$0xff] }
 0x115   :  { %v3029_v50 = vpop.permute.xlu1 %776  ;;  %v3041_v12 = vpop.permute.xlu0 %771  ;;  %4124 = vst [vmem:[#allocation11_spill] sm:$0xff] %v3053_v43  ;;  %v3081_v43 = vmul.f32 %v2786_v0, %v2691_v49  ;;  %v797_v16 = vmul.f32 %v2882_v3, %v4130_v1  ;;  %v3100_v49 = vmul.f32 %v2786_v0, %v2709_v33  ;;  %v800_v52 = vmul.f32 %v2882_v3, %v4133_v6  ;;  %v4137_v39 = vld [vmem:[#allocation22_spill] sm:$0xff] }
 0x116   :  { %v814_v14 = vmul.f32 %v2882_v3, %v3029_v50  ;;  %1366 = vperm.xlu1 %1797, %v2835_v44   ;;  %v813_v30 = vmul.f32 %v2882_v3, %v3041_v12  ;;  %1361 = vperm.xlu0 %1796, %v2837_v35   ;;  %v3061_v44 = vld [vmem:[%s4022_s1 + $0x2] ss:$0 sm:$0xff]  ;;  %v3077_v35 = vmul.f32 %v2786_v0, %v4122_v42 }
 0x117   :  { %4127 = vst [vmem:[#allocation10_spill] sm:$0xff] %v3081_v43  ;;  %v3114_v43 = vadd.f32 %v795_v15, %v2888_v13  ;;  %v802_v41 = vmul.f32 %v2882_v3, %v4137_v39  ;;  %v4138_v15 = vld [vmem:[#allocation23_spill] sm:$0xff] }
 0x118   :  { %v3070_v27 = vadd.f32 %v814_v14, %v618_v7  ;;  %4126 = vst [vmem:[#allocation13_spill] sm:$0xff] %v3077_v35  ;;  %v3083_v11 = vadd.f32 %v813_v30, %v617_v32  ;;  %v4129_v7 = vld [vmem:[#allocation12_spill] sm:$0xff]  ;;  %v3104_v32 = vmul.f32 %v2786_v0, %v2711_v22  ;;  %v4134_v35 = vld [vmem:[#allocation21_spill] sm:$0xff] }
 0x119   :  { %v3085_v29 = vpop.permute.xlu1 %854  ;;  %v798_v14 = vmul.f32 %v2882_v3, %v4129_v7  ;;  %4131 = vst [vmem:[#allocation12_spill] sm:$0xff] %v3100_v49  ;;  %v799_v33 = vmul.f32 %v2882_v3, %v4134_v35  ;;  %v3120_v22 = vmul.f32 %v2786_v0, %v4129_v7  ;;  %v801_v7 = vmul.f32 %v2882_v3, %v4138_v15 }
 0x11a   :  { %4125 = vst [vmem:[#allocation8_spill] sm:$0xff] %v3070_v27  ;;  %4128 = vst [vmem:[#allocation15_spill] sm:$0xff] %v3083_v11  ;;  %v1012_v42 = vmul.f32 %v3061_v44, %v3085_v29  ;;  %v3096_v27 = vpop.permute.xlu0 %849  ;;  %v3111_v11 = vadd.f32 %v796_v10, %v2877_v20 }
 0x11b   :  { %4132 = vst [vmem:[#allocation16_spill] sm:$0xff] %v3104_v32  ;;  %v1011_v30 = vmul.f32 %v3061_v44, %v3096_v27  ;;  %4135 = vst [vmem:[#allocation14_spill] sm:$0xff] %v3120_v22  ;;  %v3124_v32 = vmul.f32 %v2786_v0, %v4130_v1  ;;  %v3133_v13 = vadd.f32 %v798_v14, %v2892_v4  ;;  %v4142_v22 = vld [vmem:[#allocation25_spill] sm:$0xff] }
 0x11c   :  { %v1044_v49 = vadd.f32 %v1012_v42, %v816_v61  ;;  %v3136_v61 = vadd.f32 %v797_v16, %v2896_v18  ;;  %v3153_v4 = vmul.f32 %v2786_v0, %v4134_v35  ;;  %v3158_v14 = vadd.f32 %v799_v33, %v2904_v26  ;;  %v4141_v16 = vld [vmem:[#allocation24_spill] sm:$0xff] }
 0x11d   :  { %4136 = vst [vmem:[#allocation21_spill] sm:$0xff] %v3124_v32  ;;  %v3128_v20 = vadd.f32 %v1011_v30, %v815_v46  ;;  %v3130_v10 = vpop.permute.xlu1 %864  ;;  %v3145_v32 = vadd.f32 %v800_v52, %v2900_v17  ;;  %v3149_v46 = vmul.f32 %v2786_v0, %v4133_v6  ;;  %v804_v30 = vmul.f32 %v2882_v3, %v4141_v16 }
 0x11e   :  { %v1014_v1 = vmul.f32 %v3061_v44, %v3130_v10  ;;  %v3142_v42 = vpop.permute.xlu0 %859  ;;  %4140 = vst [vmem:[#allocation23_spill] sm:$0xff] %v3153_v4  ;;  %v803_v17 = vmul.f32 %v2882_v3, %v4142_v22  ;;  %v3168_v6 = vadd.f32 %v802_v41, %v2908_v28  ;;  %v3172_v35 = vmul.f32 %v2786_v0, %v4137_v39 }
 0x11f   :  { %4139 = vst [vmem:[#allocation22_spill] sm:$0xff] %v3149_v46  ;;  %v1013_v18 = vmul.f32 %v3061_v44, %v3142_v42  ;;  %v3176_v26 = vmul.f32 %v2786_v0, %v4138_v15  ;;  %v3184_v46 = vadd.f32 %v801_v7, %v2912_v24  ;;  %v806_v28 = vmul.f32 %v2882_v3, %v2826_v56 }
 0x120   :  { %v3165_v52 = vadd.f32 %v1014_v1, %v2994_v51  ;;  %v805_v51 = vmul.f32 %v2882_v3, %v2828_v53  ;;  %v3200_v15 = vmul.f32 %v2786_v0, %v4142_v22  ;;  %v808_v24 = vmul.f32 %v2882_v3, %v2861_v47 }
 0x121   :  { %v3179_v33 = vadd.f32 %v1013_v18, %v2996_v55  ;;  %v3181_v4 = vpop.permute.xlu1 %874  ;;  %v3196_v55 = vmul.f32 %v2786_v0, %v4141_v16  ;;  %v3207_v1 = vadd.f32 %v804_v30, %v2916_v38  ;;  %v3210_v18 = vadd.f32 %v803_v17, %v2920_v37 }
 0x122   :  { %v1016_v41 = vmul.f32 %v3061_v44, %v3181_v4  ;;  %v3192_v39 = vpop.permute.xlu0 %869  ;;  %4144 = vst [vmem:[#allocation25_spill] sm:$0xff] %v3200_v15  ;;  %v807_v16 = vmul.f32 %v2882_v3, %v2884_v8  ;;  %v3219_v22 = vmul.f32 %v2786_v0, %v2826_v56  ;;  %v3223_v15 = vmul.f32 %v2786_v0, %v2828_v53 }
 0x123   :  { %4143 = vst [vmem:[#allocation24_spill] sm:$0xff] %v3196_v55  ;;  %v1015_v7 = vmul.f32 %v3061_v44, %v3192_v39  ;;  %v810_v38 = vmul.f32 %v2882_v3, %v2932_v34  ;;  %v3233_v17 = vadd.f32 %v806_v28, %v2924_v48  ;;  %v809_v56 = vmul.f32 %v2882_v3, %v2948_v54 }
 0x124   :  { %v3215_v55 = vadd.f32 %v1016_v41, %v3005_v40  ;;  %4145 = vst [vmem:[#allocation27_spill] sm:$0xff] %v3219_v22  ;;  %4146 = vst [vmem:[#allocation28_spill] sm:$0xff] %v3223_v15  ;;  %v3236_v40 = vadd.f32 %v805_v51, %v2928_v45  ;;  %v3245_v15 = vadd.f32 %v808_v24, %v2936_v57  ;;  %v3255_v45 = vld [vmem:[#allocation2] ss:$0 sm:$0xff] }
 0x125   :  { %v3228_v37 = vadd.f32 %v1015_v7, %v3017_v31  ;;  %v3230_v30 = vpop.permute.xlu1 %884  ;;  %v3249_v31 = vmul.f32 %v2786_v0, %v2861_v47  ;;  %v3253_v48 = vmul.f32 %v2786_v0, %v2884_v8  ;;  %v3260_v51 = vadd.f32 %v807_v16, %v2940_v60 }
 0x126   :  { %v1018_v53 = vmul.f32 %v3061_v44, %v3230_v30  ;;  %v3242_v41 = vpop.permute.xlu0 %879  ;;  %v812_v57 = vmul.f32 %v2882_v3, %v2982_v36  ;;  %v811_v24 = vmul.f32 %v2882_v3, %v2992_v2  ;;  %v3268_v7 = vadd.f32 %v810_v38, %v2944_v59 }
 0x127   :  { %4147 = vst [vmem:[#allocation29_spill] sm:$0xff] %v3249_v31  ;;  %4148 = vst [vmem:[#allocation30_spill] sm:$0xff] %v3253_v48  ;;  %v1017_v28 = vmul.f32 %v3061_v44, %v3242_v41  ;;  %v3272_v8 = vmul.f32 %v2786_v0, %v2932_v34  ;;  %v3276_v48 = vmul.f32 %v2786_v0, %v2948_v54  ;;  %v4150_v31 = vld [vmem:[#allocation17_spill] sm:$0xff] }
 0x128   :  { %v1050_v47 = vadd.f32 %v1018_v53, %v3032_v23  ;;  %v3284_v22 = vadd.f32 %v809_v56, %v4150_v31  ;;  %v1082_v23 = vadd.f32 %v3255_v45, %v1044_v49  ;;  %v1146_v59 = vmul.f32 %v2882_v3, %v3085_v29  ;;  %v4153_v29 = vld [vmem:[#allocation26_spill] sm:$0xff]  ;;  %v4154_v31 = vld [vmem:[#allocation7_spill] sm:$0xff] }
 0x129   :  { %4149 = vst [vmem:[#allocation31_spill] sm:$0xff] %v3276_v48  ;;  %v3279_v60 = vadd.f32 %v1017_v28, %v3035_v63  ;;  %v3281_v16 = vpop.permute.xlu1 %894  ;;  %v3295_v54 = vmul.f32 %v2786_v0, %v2982_v36  ;;  %v3299_v63 = vmul.f32 %v2786_v0, %v2992_v2  ;;  %v1081_v56 = vadd.f32 %v3255_v45, %v3128_v20 }
 0x12a   :  { %v1020_v34 = vmul.f32 %v3061_v44, %v3281_v16  ;;  %v3291_v38 = vpop.permute.xlu0 %889  ;;  %v3306_v53 = vadd.f32 %v812_v57, %v4153_v29  ;;  %v3309_v28 = vadd.f32 %v811_v24, %v4154_v31  ;;  %v1145_v36 = vmul.f32 %v2882_v3, %v3096_v27  ;;  %v4157_v27 = vld [vmem:[#allocation5_spill] sm:$0xff] }
 0x12b   :  { %4151 = vst [vmem:[#allocation17_spill] sm:$0xff] %v3295_v54  ;;  %4152 = vst [vmem:[#allocation32_spill] sm:$0xff] %v3299_v63  ;;  %v1019_v49 = vmul.f32 %v3061_v44, %v3291_v38  ;;  %v3318_v2 = vmul.f32 %v2786_v0, %v3029_v50  ;;  %v3322_v20 = vmul.f32 %v2786_v0, %v3041_v12  ;;  %vm1466_vm2 = vcmp.ge.f32.partialorder %v1082_v23, 0.0 }
 0x12c   :  { %v3314_v54 = vadd.f32 %v1020_v34, %v3045_v58  ;;  %v1148_v57 = vmul.f32 %v2882_v3, %v3130_v10  ;;  %v3332_v31 = vadd.f32 %v1146_v59, %v4157_v27  ;;  %v1498_v58 = vmul.f32 0.01, %v1082_v23 }
 0x12d   :  { %4155 = vst [vmem:[#allocation26_spill] sm:$0xff] %v3318_v2  ;;  %4156 = vst [vmem:[#allocation7_spill] sm:$0xff] %v3322_v20  ;;  %v3327_v24 = vadd.f32 %v1019_v49, %v3064_v25  ;;  %v3329_v29 = vpop.permute.xlu1 %904  ;;  %v1147_v50 = vmul.f32 %v2882_v3, %v3142_v42  ;;  %v1497_v12 = vmul.f32 0.01, %v1081_v56  ;;  %v1084_v25 = vadd.f32 %v3255_v45, %v3165_v52  ;;  %v4158_v49 = vld [vmem:[#allocation18_spill] sm:$0xff]  ;;  %v4159_v20 = vld [vmem:[#allocation19_spill] sm:$0xff] }
 0x12e   :  { %v1022_v34 = vmul.f32 %v3061_v44, %v3329_v29  ;;  %v3338_v0 = vpop.permute.xlu0 %899  ;;  %v3345_v59 = vadd.f32 %v1145_v36, %v4158_v49  ;;  %vm1465_vm3 = vcmp.ge.f32.partialorder %v1081_v56, 0.0  ;;  %v1083_v42 = vadd.f32 %v3255_v45, %v3179_v33 }
 0x12f   :  { %v1021_v10 = vmul.f32 %v3061_v44, %v3338_v0  ;;  %v3351_v2 = vadd.f32 %v1148_v57, %v4159_v20  ;;  %v1150_v63 = vmul.f32 %v2882_v3, %v3181_v4  ;;  %v1149_v52 = vmul.f32 %v2882_v3, %v3192_v39 }
 0x130   :  { %v1054_v27 = vadd.f32 %v1022_v34, %v3073_v9  ;;  %v3362_v49 = vsel %vm1466_vm2, %v1082_v23, %v1498_v58  ;;  %v3365_v33 = vadd.f32 %v1147_v50, %v3000_v5  ;;  %v1086_v9 = vadd.f32 %v3255_v45, %v3215_v55 }
 0x131   :  { %v3358_v48 = vadd.f32 %v1021_v10, %v3088_v21  ;;  %v3360_v36 = vpop.permute.xlu1 %914  ;;  %v3373_v57 = vsel %vm1465_vm3, %v1081_v56, %v1497_v12  ;;  %vm1468_vm4 = vcmp.ge.f32.partialorder %v1084_v25, 0.0  ;;  %v1500_v21 = vmul.f32 0.01, %v1084_v25 }
 0x132   :  { %v1024_v20 = vmul.f32 %v3061_v44, %v3360_v36  ;;  %v3371_v4 = vpop.permute.xlu0 %909  ;;  %v1499_v23 = vmul.f32 0.01, %v1083_v42  ;;  %v1085_v5 = vadd.f32 %v3255_v45, %v3228_v37  ;;  %v1152_v58 = vmul.f32 %v2882_v3, %v3230_v30 }
 0x133   :  { %v1023_v39 = vmul.f32 %v3061_v44, %v3371_v4  ;;  %vm1467_vm5 = vcmp.ge.f32.partialorder %v1083_v42, 0.0  ;;  %v3383_v50 = vadd.f32 %v1150_v63, %v3009_v62  ;;  %v3386_v56 = vadd.f32 %v1149_v52, %v3013_v19  ;;  %v4161_v52 = vld [vmem:[#allocation20_spill] sm:$0xff] }
 0x134   :  { %v1056_v55 = vadd.f32 %v1024_v20, %v3111_v11  ;;  %v1502_v10 = vmul.f32 0.01, %v1086_v9  ;;  %v1088_v37 = vadd.f32 %v3255_v45, %v1050_v47  ;;  %v1151_v30 = vmul.f32 %v2882_v3, %v3242_v41 }
 0x135   :  { %v3389_v34 = vadd.f32 %v1023_v39, %v3114_v43  ;;  %v3391_v12 = vpop.permute.xlu1 %924  ;;  %v3401_v62 = vsel %vm1468_vm4, %v1084_v25, %v1500_v21  ;;  %vm1470_vm6 = vcmp.ge.f32.partialorder %v1086_v9, 0.0  ;;  %v1087_v19 = vadd.f32 %v3255_v45, %v3279_v60 }
 0x136   :  { %v1026_v11 = vmul.f32 %v3061_v44, %v3391_v12  ;;  %v3398_v20 = vpop.permute.xlu0 %919  ;;  %4160 = vst [vmem:[#allocation5_spill] sm:$0xff] %v3401_v62  ;;  %v3407_v63 = vsel %vm1467_vm5, %v1083_v42, %v1499_v23  ;;  %v1501_v47 = vmul.f32 0.01, %v1085_v5  ;;  %v3410_v41 = vadd.f32 %v1152_v58, %v4161_v52  ;;  %v4164_v58 = vld [vmem:[#allocation9_spill] sm:$0xff] }
 0x137   :  { %v1025_v43 = vmul.f32 %v3061_v44, %v3398_v20  ;;  %vm1469_vm7 = vcmp.ge.f32.partialorder %v1085_v5, 0.0  ;;  %v1154_v25 = vmul.f32 %v2882_v3, %v3281_v16  ;;  %v1153_v21 = vmul.f32 %v2882_v3, %v3291_v38 }
 0x138   :  { %4162 = vst [vmem:[#allocation18_spill] sm:$0xff] %v3410_v41  ;;  %v3413_v39 = vadd.f32 %v1026_v11, %v3133_v13  ;;  %v3424_v42 = vsel %vm1470_vm6, %v1086_v9, %v1502_v10  ;;  %v1504_v23 = vmul.f32 0.01, %v1088_v37  ;;  %v3427_v52 = vadd.f32 %v1151_v30, %v4164_v58  ;;  %v4166_v30 = vld [vmem:[#allocation6_spill] sm:$0xff] }
 0x139   :  { %v3420_v60 = vadd.f32 %v1025_v43, %v3136_v61  ;;  %v3422_v62 = vpop.permute.xlu1 %934  ;;  %4163 = vst [vmem:[#allocation19_spill] sm:$0xff] %v3424_v42  ;;  %vm1472_vm8 = vcmp.ge.f32.partialorder %v1088_v37, 0.0  ;;  %v1503_v16 = vmul.f32 0.01, %v1087_v19  ;;  %v1090_v38 = vadd.f32 %v3255_v45, %v3314_v54  ;;  %v4167_v42 = vld [vmem:[#allocation11_spill] sm:$0xff] }
 0x13a   :  { %4165 = vst [vmem:[#allocation20_spill] sm:$0xff] %v3427_v52  ;;  %v1028_v13 = vmul.f32 %v3061_v44, %v3422_v62  ;;  %v3431_v11 = vpop.permute.xlu0 %929  ;;  %v3437_v43 = vsel %vm1469_vm7, %v1085_v5, %v1501_v47  ;;  %vm1471_vm9 = vcmp.ge.f32.partialorder %v1087_v19, 0.0  ;;  %v1089_v9 = vadd.f32 %v3255_v45, %v3327_v24 }
 0x13b   :  { %v1027_v61 = vmul.f32 %v3061_v44, %v3431_v11  ;;  %v3443_v58 = vadd.f32 %v1154_v25, %v4166_v30  ;;  %v3446_v52 = vadd.f32 %v1153_v21, %v4167_v42  ;;  %v1156_v54 = vmul.f32 %v2882_v3, %v3329_v29 }
 0x13c   :  { %v1060_v10 = vadd.f32 %v1028_v13, %v3145_v32  ;;  %v3455_v47 = vsel %vm1472_vm8, %v1088_v37, %v1504_v23  ;;  %v1092_v24 = vadd.f32 %v3255_v45, %v1054_v27  ;;  %v1155_v32 = vmul.f32 %v2882_v3, %v3338_v0  ;;  %v4170_v23 = vld [vmem:[#allocation13_spill] sm:$0xff] }
 0x13d   :  { %v3451_v41 = vadd.f32 %v1027_v61, %v3158_v14  ;;  %v3453_v5 = vpop.permute.xlu1 %944  ;;  %4168 = vst [vmem:[#allocation9_spill] sm:$0xff] %v3455_v47  ;;  %v3464_v42 = vsel %vm1471_vm9, %v1087_v19, %v1503_v16  ;;  %vm1474_vm10 = vcmp.ge.f32.partialorder %v1090_v38, 0.0  ;;  %v1506_v29 = vmul.f32 0.01, %v1090_v38  ;;  %v4171_v47 = vld [vmem:[#allocation10_spill] sm:$0xff] }
 0x13e   :  { %v1030_v25 = vmul.f32 %v3061_v44, %v3453_v5  ;;  %v3462_v21 = vpop.permute.xlu0 %939  ;;  %4169 = vst [vmem:[#allocation6_spill] sm:$0xff] %v3464_v42  ;;  %v1505_v13 = vmul.f32 0.01, %v1089_v9  ;;  %v1091_v37 = vadd.f32 %v3255_v45, %v3358_v48  ;;  %v1158_v27 = vmul.f32 %v2882_v3, %v3360_v36 }
 0x13f   :  { %v1029_v14 = vmul.f32 %v3061_v44, %v3462_v21  ;;  %vm1473_vm11 = vcmp.ge.f32.partialorder %v1089_v9, 0.0  ;;  %v3474_v61 = vadd.f32 %v1156_v54, %v4170_v23  ;;  %v1157_v19 = vmul.f32 %v2882_v3, %v3371_v4 }
 0x140   :  { %v1062_v0 = vadd.f32 %v1030_v25, %v3168_v6  ;;  %v1508_v42 = vmul.f32 0.01, %v1092_v24  ;;  %v3484_v48 = vadd.f32 %v1155_v32, %v4171_v47  ;;  %v1094_v36 = vadd.f32 %v3255_v45, %v1056_v55  ;;  %v4174_v32 = vld [vmem:[#allocation12_spill] sm:$0xff] }
 0x141   :  { %v3479_v16 = vadd.f32 %v1029_v14, %v3184_v46  ;;  %v3481_v30 = vpop.permute.xlu1 %954  ;;  %v3492_v54 = vsel %vm1474_vm10, %v1090_v38, %v1506_v29  ;;  %vm1476_vm12 = vcmp.ge.f32.partialorder %v1092_v24, 0.0  ;;  %v1093_v46 = vadd.f32 %v3255_v45, %v3389_v34 }
 0x142   :  { %4172 = vst [vmem:[#allocation11_spill] sm:$0xff] %v3484_v48  ;;  %v1032_v6 = vmul.f32 %v3061_v44, %v3481_v30  ;;  %v3489_v25 = vpop.permute.xlu0 %949  ;;  %4173 = vst [vmem:[#allocation13_spill] sm:$0xff] %v3492_v54  ;;  %v3498_v14 = vsel %vm1473_vm11, %v1089_v9, %v1505_v13  ;;  %v1507_v47 = vmul.f32 0.01, %v1091_v37  ;;  %v3501_v55 = vadd.f32 %v1158_v27, %v4174_v32  ;;  %v4175_v48 = vld [vmem:[#allocation16_spill] sm:$0xff] }
 0x143   :  { %v1031_v4 = vmul.f32 %v3061_v44, %v3489_v25  ;;  %vm1475_vm13 = vcmp.ge.f32.partialorder %v1091_v37, 0.0  ;;  %v3507_v38 = vadd.f32 %v1157_v19, %v4175_v48  ;;  %v1160_v29 = vmul.f32 %v2882_v3, %v3391_v12 }
 0x144   :  { %v3504_v23 = vadd.f32 %v1032_v6, %v3207_v1  ;;  %v3516_v9 = vsel %vm1476_vm12, %v1092_v24, %v1508_v42  ;;  %v1510_v13 = vmul.f32 0.01, %v1094_v36  ;;  %v1159_v27 = vmul.f32 %v2882_v3, %v3398_v20  ;;  %v4179_v42 = vld [vmem:[#allocation14_spill] sm:$0xff] }
 0x145   :  { %4176 = vst [vmem:[#allocation10_spill] sm:$0xff] %v3507_v38  ;;  %v3512_v34 = vadd.f32 %v1031_v4, %v3210_v18  ;;  %v3514_v54 = vpop.permute.xlu1 %964  ;;  %4177 = vst [vmem:[#allocation12_spill] sm:$0xff] %v3516_v9  ;;  %vm1478_vm14 = vcmp.ge.f32.partialorder %v1094_v36, 0.0  ;;  %v1509_v19 = vmul.f32 0.01, %v1093_v46  ;;  %v1096_v12 = vadd.f32 %v3255_v45, %v3413_v39 }
 0x146   :  { %v1034_v1 = vmul.f32 %v3061_v44, %v3514_v54  ;;  %v3522_v6 = vpop.permute.xlu0 %959  ;;  %v3528_v48 = vsel %vm1475_vm13, %v1091_v37, %v1507_v47  ;;  %vm1477_vm15 = vcmp.ge.f32.partialorder %v1093_v46, 0.0  ;;  %v1095_v24 = vadd.f32 %v3255_v45, %v3420_v60  ;;  %v4180_v47 = vld [vmem:[#allocation21_spill] sm:$0xff] }
 0x147   :  { %v1033_v18 = vmul.f32 %v3061_v44, %v3522_v6  ;;  %4178 = vst [vmem:[#allocation16_spill] sm:$0xff] %v3528_v48  ;;  %v3534_v4 = vadd.f32 %v1160_v29, %v4179_v42  ;;  %v1162_v32 = vmul.f32 %v2882_v3, %v3422_v62  ;;  %v1161_v39 = vmul.f32 %v2882_v3, %v3431_v11 }
 0x148   :  { %v1066_v20 = vadd.f32 %v1034_v1, %v3233_v17  ;;  %v3543_v37 = vsel %vm1478_vm14, %v1094_v36, %v1510_v13  ;;  %v3546_v48 = vadd.f32 %v1159_v27, %v4180_v47  ;;  %v1098_v17 = vadd.f32 %v3255_v45, %v1060_v10  ;;  %v4182_v27 = vld [vmem:[#allocation22_spill] sm:$0xff] }
 0x149   :  { %v1065_v9 = vadd.f32 %v1033_v18, %v3236_v40  ;;  %v3541_v38 = vpop.permute.xlu1 %974  ;;  %v3553_v62 = vsel %vm1477_vm15, %v1093_v46, %v1509_v19  ;;  %vm1480_vm0 = vcmp.ge.f32.partialorder %v1096_v12, 0.0  ;;  %v1512_v11 = vmul.f32 0.01, %v1096_v12  ;;  %v4183_v46 = vld [vmem:[#allocation23_spill] sm:$0xff] }
 0x14a   :  { %v1036_v60 = vmul.f32 %v3061_v44, %v3541_v38  ;;  %v3551_v29 = vpop.permute.xlu0 %969  ;;  %4181 = vst [vmem:[#allocation14_spill] sm:$0xff] %v3553_v62  ;;  %v1511_v1 = vmul.f32 0.01, %v1095_v24  ;;  %v1097_v36 = vadd.f32 %v3255_v45, %v3451_v41  ;;  %v1164_v13 = vmul.f32 %v2882_v3, %v3453_v5 }
 0x14b   :  { %v1035_v40 = vmul.f32 %v3061_v44, %v3551_v29  ;;  %vm1479_vm1 = vcmp.ge.f32.partialorder %v1095_v24, 0.0  ;;  %v3565_v18 = vadd.f32 %v1162_v32, %v4182_v27  ;;  %v3568_v19 = vadd.f32 %v1161_v39, %v4183_v46 }
 0x14c   :  { %v3562_v10 = vadd.f32 %v1036_v60, %v3245_v15  ;;  %v1514_v62 = vmul.f32 0.01, %v1098_v17  ;;  %v1100_v41 = vadd.f32 %v3255_v45, %v1062_v0  ;;  %v1163_v5 = vmul.f32 %v2882_v3, %v3462_v21 }
 0x14d   :  { %v3571_v42 = vadd.f32 %v1035_v40, %v3260_v51  ;;  %v3573_v47 = vpop.permute.xlu1 %984  ;;  %v3583_v32 = vsel %vm1480_vm0, %v1096_v12, %v1512_v11  ;;  %vm1482_vm2 = vcmp.ge.f32.partialorder %v1098_v17, 0.0  ;;  %v1099_v51 = vadd.f32 %v3255_v45, %v3479_v16 }
 0x14e   :  { %v1038_v15 = vmul.f32 %v3061_v44, %v3573_v47  ;;  %v3580_v60 = vpop.permute.xlu0 %979  ;;  %v3589_v40 = vsel %vm1479_vm1, %v1095_v24, %v1511_v1  ;;  %v1513_v0 = vmul.f32 0.01, %v1097_v36  ;;  %v3592_v21 = vadd.f32 %v1164_v13, %v3172_v35 }
 0x14f   :  { %v1037_v39 = vmul.f32 %v3061_v44, %v3580_v60  ;;  %vm1481_vm3 = vcmp.ge.f32.partialorder %v1097_v36, 0.0  ;;  %v1166_v12 = vmul.f32 %v2882_v3, %v3481_v30  ;;  %v1165_v11 = vmul.f32 %v2882_v3, %v3489_v25 }
 0x150   :  { %v3595_v27 = vadd.f32 %v1038_v15, %v3268_v7  ;;  %v3606_v24 = vsel %vm1482_vm2, %v1098_v17, %v1514_v62  ;;  %v1516_v1 = vmul.f32 0.01, %v1100_v41  ;;  %v3609_v35 = vadd.f32 %v1163_v5, %v3176_v26  ;;  %v4186_v62 = vld [vmem:[#allocation24_spill] sm:$0xff] }
 0x151   :  { %v3602_v16 = vadd.f32 %v1037_v39, %v3284_v22  ;;  %v3604_v46 = vpop.permute.xlu1 %994  ;;  %4184 = vst [vmem:[#allocation21_spill] sm:$0xff] %v3606_v24  ;;  %vm1484_vm4 = vcmp.ge.f32.partialorder %v1100_v41, 0.0  ;;  %v1515_v30 = vmul.f32 0.01, %v1099_v51  ;;  %v1102_v25 = vadd.f32 %v3255_v45, %v3504_v23  ;;  %v4187_v39 = vld [vmem:[#allocation25_spill] sm:$0xff] }
 0x152   :  { %4185 = vst [vmem:[#allocation22_spill] sm:$0xff] %v3609_v35  ;;  %v1040_v7 = vmul.f32 %v3061_v44, %v3604_v46  ;;  %v3613_v13 = vpop.permute.xlu0 %989  ;;  %v3619_v15 = vsel %vm1481_vm3, %v1097_v36, %v1513_v0  ;;  %vm1483_vm5 = vcmp.ge.f32.partialorder %v1099_v51, 0.0  ;;  %v1101_v26 = vadd.f32 %v3255_v45, %v3512_v34 }
 0x153   :  { %v1039_v22 = vmul.f32 %v3061_v44, %v3613_v13  ;;  %v3627_v5 = vadd.f32 %v1166_v12, %v4186_v62  ;;  %v3630_v24 = vadd.f32 %v1165_v11, %v4187_v39  ;;  %v1104_v23 = vadd.f32 %v3255_v45, %v1066_v20 }
 0x154   :  { %v3624_v17 = vadd.f32 %v1040_v7, %v3306_v53  ;;  %v3638_v0 = vsel %vm1484_vm4, %v1100_v41, %v1516_v1  ;;  %v1168_v34 = vmul.f32 %v2882_v3, %v3514_v54  ;;  %v1103_v53 = vadd.f32 %v3255_v45, %v1065_v9  ;;  %v4192_v9 = vld [vmem:[#allocation8_spill] sm:$0xff] }
 0x155   :  { %4188 = vst [vmem:[#allocation23_spill] sm:$0xff] %v3630_v24  ;;  %v3634_v35 = vadd.f32 %v1039_v22, %v3309_v28  ;;  %v3636_v36 = vpop.permute.xlu1 %1004  ;;  %4189 = vst [vmem:[#allocation24_spill] sm:$0xff] %v3638_v0  ;;  %v3647_v11 = vsel %vm1483_vm5, %v1099_v51, %v1515_v30  ;;  %vm1486_vm6 = vcmp.ge.f32.partialorder %v1102_v25, 0.0  ;;  %v1167_v28 = vmul.f32 %v2882_v3, %v3522_v6  ;;  %v4194_v30 = vld [vmem:[#allocation15_spill] sm:$0xff] }
 0x156   :  { %v1042_v12 = vmul.f32 %v3061_v44, %v3636_v36  ;;  %v3645_v7 = vpop.permute.xlu0 %999  ;;  %4191 = vst [vmem:[#allocation33_spill] sm:$0xff] %v3647_v11  ;;  %v1518_v41 = vmul.f32 0.01, %v1102_v25  ;;  %v1517_v1 = vmul.f32 0.01, %v1101_v26  ;;  %v1170_v54 = vmul.f32 %v2882_v3, %v3541_v38  ;;  %v4196_v11 = vld [vmem:[#allocation27_spill] sm:$0xff] }
 0x157   :  { %4190 = vst [vmem:[#allocation25_spill] sm:$0xff] %v3645_v7  ;;  %v1041_v20 = vmul.f32 %v3061_v44, %v3645_v7  ;;  %vm1485_vm7 = vcmp.ge.f32.partialorder %v1101_v26, 0.0  ;;  %v1520_v62 = vmul.f32 0.01, %v1104_v23  ;;  %v1169_v51 = vmul.f32 %v2882_v3, %v3551_v29 }
 0x158   :  { %v3656_v22 = vadd.f32 %v1042_v12, %v4192_v9  ;;  %v3664_v0 = vadd.f32 %v1168_v34, %v4196_v11  ;;  %vm1488_vm8 = vcmp.ge.f32.partialorder %v1104_v23, 0.0  ;;  %v1519_v7 = vmul.f32 0.01, %v1103_v53  ;;  %v4197_v12 = vld [vmem:[#allocation28_spill] sm:$0xff]  ;;  %v4198_v11 = vld [vmem:[#allocation29_spill] sm:$0xff] }
 0x159   :  { %v3661_v39 = vadd.f32 %v1041_v20, %v4194_v30  ;;  %v1217_v6 = vpop.permute.xlu1 %1216  ;;  %vm1689_vm9 = vcmask 261120   ;;  %v3668_v9 = vadd.f32 %v1167_v28, %v4197_v12  ;;  %vm1487_vm10 = vcmp.ge.f32.partialorder %v1103_v53, 0.0  ;;  %v4199_v28 = vld [vmem:[#allocation30_spill] sm:$0xff] }
 0x15a   :  { %4193 = vst [vmem:[#allocation8_spill] sm:$0xff] %v3656_v22  ;;  %v1370_v38 = vmul.f32 %v3061_v44, %v1217_v6  ;;  %v1212_v24 = vpop.permute.xlu0 %1211  ;;  %v1106_v29 = vadd.f32 %v3255_v45, %v3562_v10  ;;  %v3674_v30 = vsel %vm1486_vm6, %v1102_v25, %v1518_v41  ;;  %v3677_v34 = vsel %vm1485_vm7, %v1101_v26, %v1517_v1 }
 0x15b   :  { %4195 = vst [vmem:[#allocation15_spill] sm:$0xff] %v3661_v39  ;;  %v1369_v20 = vmul.f32 %v3061_v44, %v1212_v24  ;;  %v3680_v39 = vadd.f32 %v1170_v54, %v4198_v11  ;;  %v3683_v22 = vsel %vm1488_vm8, %v1104_v23, %v1520_v62  ;;  %v3686_v12 = vadd.f32 %v1169_v51, %v4199_v28 }
 0x15c   :  { %v1402_v6 = vadd.f32 %v1370_v38, %v3332_v31  ;;  %v1172_v10 = vmul.f32 %v2882_v3, %v3573_v47  ;;  %v3691_v41 = vsel %vm1487_vm10, %v1103_v53, %v1519_v7  ;;  %v3695_v26 = vadd.f32 %v3255_v45, %v3571_v42 }
 0x15d   :  { %v1401_v24 = vadd.f32 %v1369_v20, %v3345_v59  ;;  %v1227_v25 = vpop.permute.xlu1 %1226  ;;  %vm1490_vm11 = vcmp.ge.f32.partialorder %v1106_v29, 0.0  ;;  %v1171_v54 = vmul.f32 %v2882_v3, %v3580_v60  ;;  %v1522_v62 = vmul.f32 0.01, %v1106_v29 }
 0x15e   :  { %v1434_v1 = vadd.f32 %v3255_v45, %v1402_v6  ;;  %v1372_v31 = vmul.f32 %v3061_v44, %v1227_v25  ;;  %v1222_v23 = vpop.permute.xlu0 %1221  ;;  %v3705_v42 = vadd.f32 %v1172_v10, %v3272_v8  ;;  %vm1489_vm14 = vcmp.ge.f32.partialorder %v3695_v26, 0.0 }
 0x15f   :  { %v1433_v47 = vadd.f32 %v3255_v45, %v1401_v24  ;;  %v1371_v59 = vmul.f32 %v3061_v44, %v1222_v23  ;;  %v1521_v60 = vmul.f32 0.01, %v3695_v26 }
 0x160   :  { %vm1562_vm12 = vcmp.ge.f32.partialorder %v1434_v1, 0.0  ;;  %v1594_v53 = vmul.f32 0.01, %v1434_v1  ;;  %v1404_v7 = vadd.f32 %v1372_v31, %v3351_v2 }
 0x161   :  { %vm1561_vm13 = vcmp.ge.f32.partialorder %v1433_v47, 0.0  ;;  %v1593_v51 = vmul.f32 0.01, %v1433_v47  ;;  %v1403_v38 = vadd.f32 %v1371_v59, %v3365_v33  ;;  %v1237_v20 = vpop.permute.xlu1 %1236  ;;  %v4200_v59 = vld [vmem:[#allocation31_spill] sm:$0xff] }
 0x162   :  { %v1626_v11 = vsel %vm1562_vm12, %v1434_v1, %v1594_v53  ;;  %v1436_v6 = vadd.f32 %v3255_v45, %v1404_v7  ;;  %v1374_v28 = vmul.f32 %v3061_v44, %v1237_v20  ;;  %v1232_v24 = vpop.permute.xlu0 %1231  ;;  %v3718_v1 = vadd.f32 %v1171_v54, %v4200_v59 }
 0x163   :  { %v1658_v2 = vmax.f32 %v3362_v49, %v1626_v11  ;;  %v1625_v25 = vsel %vm1561_vm13, %v1433_v47, %v1593_v51  ;;  %v1435_v8 = vadd.f32 %v3255_v45, %v1403_v38  ;;  %v1373_v10 = vmul.f32 %v3061_v44, %v1232_v24  ;;  %v4201_v38 = vld [vmem:[#allocation5_spill] sm:$0xff]  ;;  %v4202_v24 = vld [vmem:[#allocation18_spill] sm:$0xff] }
 0x164   :  { %v1657_v33 = vmax.f32 %v3373_v57, %v1625_v25  ;;  %vm1564_vm15 = vcmp.ge.f32.partialorder %v1436_v6, 0.0  ;;  %v1596_v31 = vmul.f32 0.01, %v1436_v6  ;;  %v1406_v23 = vadd.f32 %v1374_v28, %v3383_v50 }
 0x165   :  { %1691 = vst.msk [vmem:[%s4026_s5 + $0x8] sm:$0xff] %vm1689_vm9, %v1658_v2  ;;  %vm1563_vm0 = vcmp.ge.f32.partialorder %v1435_v8, 0.0  ;;  %v1595_v49 = vmul.f32 0.01, %v1435_v8  ;;  %v1405_v47 = vadd.f32 %v1373_v10, %v3386_v56  ;;  %v1247_v53 = vpop.permute.xlu1 %1246  ;;  %v3726_v7 = vsel %vm1490_vm11, %v1106_v29, %v1522_v62 }
 0x166   :  { %1690 = vst.msk [vmem:[%s4026_s5] sm:$0xff] %vm1689_vm9, %v1657_v33  ;;  %v1628_v57 = vsel %vm1564_vm15, %v1436_v6, %v1596_v31  ;;  %v1438_v50 = vadd.f32 %v3255_v45, %v1406_v23  ;;  %v1376_v54 = vmul.f32 %v3061_v44, %v1247_v53  ;;  %v1242_v51 = vpop.permute.xlu0 %1241  ;;  %v3741_v6 = vadd.f32 %v3255_v45, %v3595_v27 }
 0x167   :  { %v1660_v20 = vmax.f32 %v4201_v38, %v1628_v57  ;;  %v1627_v11 = vsel %vm1563_vm0, %v1435_v8, %v1595_v49  ;;  %v1437_v56 = vadd.f32 %v3255_v45, %v1405_v47  ;;  %v1375_v28 = vmul.f32 %v3061_v44, %v1242_v51  ;;  %v4203_v8 = vld [vmem:[#allocation20_spill] sm:$0xff]  ;;  %v4204_v49 = vld [vmem:[#allocation19_spill] sm:$0xff] }
 0x168   :  { %v1659_v29 = vmax.f32 %v3407_v63, %v1627_v11  ;;  %vm1566_vm1 = vcmp.ge.f32.partialorder %v1438_v50, 0.0  ;;  %v1598_v62 = vmul.f32 0.01, %v1438_v50  ;;  %v1408_v2 = vadd.f32 %v1376_v54, %v4202_v24 }
 0x169   :  { %1693 = vst.msk [vmem:[%s4026_s5 + $0x18] sm:$0xff] %vm1689_vm9, %v1660_v20  ;;  %vm1565_vm2 = vcmp.ge.f32.partialorder %v1437_v56, 0.0  ;;  %v1597_v25 = vmul.f32 0.01, %v1437_v56  ;;  %v1407_v10 = vadd.f32 %v1375_v28, %v4203_v8  ;;  %v1257_v33 = vpop.permute.xlu1 %1256  ;;  %v1174_v63 = vmul.f32 %v2882_v3, %v3604_v46 }
 0x16a   :  { %1692 = vst.msk [vmem:[%s4026_s5 + $0x10] sm:$0xff] %vm1689_vm9, %v1659_v29  ;;  %v1630_v27 = vsel %vm1566_vm1, %v1438_v50, %v1598_v62  ;;  %v1440_v31 = vadd.f32 %v3255_v45, %v1408_v2  ;;  %v1378_v23 = vmul.f32 %v3061_v44, %v1257_v33  ;;  %v1252_v59 = vpop.permute.xlu0 %1251  ;;  %v3764_v50 = vsel %vm1489_vm14, %v3695_v26, %v1521_v60  ;;  %v4205_v29 = vld [vmem:[#allocation9_spill] sm:$0xff] }
 0x16b   :  { %v1662_v47 = vmax.f32 %v4204_v49, %v1630_v27  ;;  %v1629_v53 = vsel %vm1565_vm2, %v1437_v56, %v1597_v25  ;;  %v1439_v57 = vadd.f32 %v3255_v45, %v1407_v10  ;;  %v1377_v54 = vmul.f32 %v3061_v44, %v1252_v59 }
 0x16c   :  { %v1661_v46 = vmax.f32 %v3437_v43, %v1629_v53  ;;  %vm1568_vm3 = vcmp.ge.f32.partialorder %v1440_v31, 0.0  ;;  %v1600_v51 = vmul.f32 0.01, %v1440_v31  ;;  %v1410_v38 = vadd.f32 %v1378_v23, %v3443_v58 }
 0x16d   :  { %1695 = vst.msk [vmem:[%s4026_s5 + $0x28] sm:$0xff] %vm1689_vm9, %v1662_v47  ;;  %vm1567_vm4 = vcmp.ge.f32.partialorder %v1439_v57, 0.0  ;;  %v1599_v20 = vmul.f32 0.01, %v1439_v57  ;;  %v1409_v11 = vadd.f32 %v1377_v54, %v3446_v52  ;;  %v1267_v56 = vpop.permute.xlu1 %1266  ;;  %v3773_v43 = vadd.f32 %v3255_v45, %v3602_v16  ;;  %v4206_v16 = vld [vmem:[#allocation6_spill] sm:$0xff]  ;;  %v4208_v47 = vld [vmem:[#allocation13_spill] sm:$0xff] }
 0x16e   :  { %1694 = vst.msk [vmem:[%s4026_s5 + $0x20] sm:$0xff] %vm1689_vm9, %v1661_v46  ;;  %v1632_v58 = vsel %vm1568_vm3, %v1440_v31, %v1600_v51  ;;  %v1442_v26 = vadd.f32 %v3255_v45, %v1410_v38  ;;  %v1380_v60 = vmul.f32 %v3061_v44, %v1267_v56  ;;  %v1262_v28 = vpop.permute.xlu0 %1261  ;;  %v1173_v33 = vmul.f32 %v2882_v3, %v3613_v13  ;;  %v4207_v31 = vld [vmem:[#allocation11_spill] sm:$0xff] }
 0x16f   :  { %v1664_v62 = vmax.f32 %v4205_v29, %v1632_v58  ;;  %v1631_v24 = vsel %vm1567_vm4, %v1439_v57, %v1599_v20  ;;  %v1441_v52 = vadd.f32 %v3255_v45, %v1409_v11  ;;  %v1379_v2 = vmul.f32 %v3061_v44, %v1262_v28  ;;  %v4209_v58 = vld [vmem:[#allocation10_spill] sm:$0xff]  ;;  %v4210_v28 = vld [vmem:[#allocation17_spill] sm:$0xff] }
 0x170   :  { %v1663_v25 = vmax.f32 %v4206_v16, %v1631_v24  ;;  %vm1570_vm5 = vcmp.ge.f32.partialorder %v1442_v26, 0.0  ;;  %v1602_v8 = vmul.f32 0.01, %v1442_v26  ;;  %v1412_v10 = vadd.f32 %v1380_v60, %v3474_v61 }
 0x171   :  { %1697 = vst.msk [vmem:[%s4026_s5 + $0x38] sm:$0xff] %vm1689_vm9, %v1664_v62  ;;  %vm1569_vm6 = vcmp.ge.f32.partialorder %v1441_v52, 0.0  ;;  %v1601_v27 = vmul.f32 0.01, %v1441_v52  ;;  %v1411_v23 = vadd.f32 %v1379_v2, %v4207_v31  ;;  %v1277_v59 = vpop.permute.xlu1 %1276  ;;  %vm1492_vm7 = vcmp.ge.f32.partialorder %v3741_v6, 0.0 }
 0x172   :  { %1696 = vst.msk [vmem:[%s4026_s5 + $0x30] sm:$0xff] %vm1689_vm9, %v1663_v25  ;;  %v1634_v61 = vsel %vm1570_vm5, %v1442_v26, %v1602_v8  ;;  %v1444_v3 = vadd.f32 %v3255_v45, %v1412_v10  ;;  %v1382_v13 = vmul.f32 %v3061_v44, %v1277_v59  ;;  %v1272_v49 = vpop.permute.xlu0 %1271  ;;  %v1524_v11 = vmul.f32 0.01, %v3741_v6  ;;  %v4212_v8 = vld [vmem:[#allocation16_spill] sm:$0xff] }
 0x173   :  { %v1666_v53 = vmax.f32 %v4208_v47, %v1634_v61  ;;  %v1633_v57 = vsel %vm1569_vm6, %v1441_v52, %v1601_v27  ;;  %v1443_v54 = vadd.f32 %v3255_v45, %v1411_v23  ;;  %v1381_v46 = vmul.f32 %v3061_v44, %v1272_v49  ;;  %v4211_v52 = vld [vmem:[#allocation12_spill] sm:$0xff] }
 0x174   :  { %v1665_v51 = vmax.f32 %v3498_v14, %v1633_v57  ;;  %vm1572_vm8 = vcmp.ge.f32.partialorder %v1444_v3, 0.0  ;;  %v1604_v38 = vmul.f32 0.01, %v1444_v3  ;;  %v1414_v20 = vadd.f32 %v1382_v13, %v3501_v55  ;;  %v4213_v13 = vld [vmem:[#allocation32_spill] sm:$0xff] }
 0x175   :  { %1699 = vst.msk [vmem:[%s4026_s5 + $0x48] sm:$0xff] %vm1689_vm9, %v1666_v53  ;;  %vm1571_vm10 = vcmp.ge.f32.partialorder %v1443_v54, 0.0  ;;  %v1603_v56 = vmul.f32 0.01, %v1443_v54  ;;  %v1413_v26 = vadd.f32 %v1381_v46, %v4209_v58  ;;  %v1287_v60 = vpop.permute.xlu1 %1286  ;;  %v3812_v29 = vadd.f32 %v1174_v63, %v4210_v28 }
 0x176   :  { %1698 = vst.msk [vmem:[%s4026_s5 + $0x40] sm:$0xff] %vm1689_vm9, %v1665_v51  ;;  %v1636_v14 = vsel %vm1572_vm8, %v1444_v3, %v1604_v38  ;;  %v1446_v55 = vadd.f32 %v3255_v45, %v1414_v20  ;;  %v1384_v62 = vmul.f32 %v3061_v44, %v1287_v60  ;;  %v1282_v24 = vpop.permute.xlu0 %1281  ;;  %vm1491_vm11 = vcmp.ge.f32.partialorder %v3773_v43, 0.0 }
 0x177   :  { %v1668_v2 = vmax.f32 %v4211_v52, %v1636_v14  ;;  %v1635_v16 = vsel %vm1571_vm10, %v1443_v54, %v1603_v56  ;;  %v1445_v25 = vadd.f32 %v3255_v45, %v1413_v26  ;;  %v1383_v63 = vmul.f32 %v3061_v44, %v1282_v24 }
 0x178   :  { %v1667_v10 = vmax.f32 %v4212_v8, %v1635_v16  ;;  %vm1574_vm12 = vcmp.ge.f32.partialorder %v1446_v55, 0.0  ;;  %v1606_v27 = vmul.f32 0.01, %v1446_v55  ;;  %v1416_v31 = vadd.f32 %v1384_v62, %v3534_v4  ;;  %v1798_v16 = vld [vmem:[%s4022_s1 + $0x1] ss:$0 sm:$0xff] }
 0x179   :  { %v1523_v23 = vmul.f32 0.01, %v3773_v43  ;;  %1701 = vst.msk [vmem:[%s4026_s5 + $0x58] sm:$0xff] %vm1689_vm9, %v1668_v2  ;;  %vm1573_vm13 = vcmp.ge.f32.partialorder %v1445_v25, 0.0  ;;  %v1605_v59 = vmul.f32 0.01, %v1445_v25  ;;  %v1415_v61 = vadd.f32 %v1383_v63, %v3546_v48  ;;  %v1297_v3 = vpop.permute.xlu1 %1296 }
 0x17a   :  { %v3833_v49 = vadd.f32 %v1173_v33, %v4213_v13  ;;  %1700 = vst.msk [vmem:[%s4026_s5 + $0x50] sm:$0xff] %vm1689_vm9, %v1667_v10  ;;  %v1638_v4 = vsel %vm1574_vm12, %v1446_v55, %v1606_v27  ;;  %v1448_v47 = vadd.f32 %v3255_v45, %v1416_v31  ;;  %v1386_v53 = vmul.f32 %v3061_v44, %v1297_v3  ;;  %v1292_v57 = vpop.permute.xlu0 %1291  ;;  %v4214_v33 = vld [vmem:[#allocation14_spill] sm:$0xff] }
 0x17b   :  { %v1670_v54 = vmax.f32 %v3543_v37, %v1638_v4  ;;  %v1637_v46 = vsel %vm1573_vm13, %v1445_v25, %v1605_v59  ;;  %v1447_v48 = vadd.f32 %v3255_v45, %v1415_v61  ;;  %v1385_v51 = vmul.f32 %v3061_v44, %v1292_v57  ;;  %v4215_v63 = vld [vmem:[#allocation22_spill] sm:$0xff]  ;;  %v4216_v59 = vld [vmem:[#allocation21_spill] sm:$0xff] }
 0x17c   :  { %v1669_v38 = vmax.f32 %v4214_v33, %v1637_v46  ;;  %vm1576_vm14 = vcmp.ge.f32.partialorder %v1448_v47, 0.0  ;;  %v1608_v20 = vmul.f32 0.01, %v1448_v47  ;;  %v1418_v56 = vadd.f32 %v1386_v53, %v3565_v18 }
 0x17d   :  { %v3849_v58 = vsel %vm1492_vm7, %v3741_v6, %v1524_v11  ;;  %1703 = vst.msk [vmem:[%s4026_s5 + $0x68] sm:$0xff] %vm1689_vm9, %v1670_v54  ;;  %vm1575_vm15 = vcmp.ge.f32.partialorder %v1447_v48, 0.0  ;;  %v1607_v37 = vmul.f32 0.01, %v1447_v48  ;;  %v1417_v26 = vadd.f32 %v1385_v51, %v3568_v19  ;;  %v1307_v60 = vpop.permute.xlu1 %1306  ;;  %v4217_v54 = vld [vmem:[#allocation23_spill] sm:$0xff] }
 0x17e   :  { %v3858_v28 = vadd.f32 %v3255_v45, %v3624_v17  ;;  %1702 = vst.msk [vmem:[%s4026_s5 + $0x60] sm:$0xff] %vm1689_vm9, %v1669_v38  ;;  %v1640_v18 = vsel %vm1576_vm14, %v1448_v47, %v1608_v20  ;;  %v1450_v6 = vadd.f32 %v3255_v45, %v1418_v56  ;;  %v1388_v11 = vmul.f32 %v3061_v44, %v1307_v60  ;;  %v1302_v14 = vpop.permute.xlu0 %1301  ;;  %v3914_v51 = vld [vmem:[%s4022_s1 + $0x2] ss:$0 sm:$0xff]  ;;  %v4219_v20 = vld [vmem:[#allocation24_spill] sm:$0xff] }
 0x17f   :  { %v1672_v55 = vmax.f32 %v3583_v32, %v1640_v18  ;;  %v1639_v62 = vsel %vm1575_vm15, %v1447_v48, %v1607_v37  ;;  %v1449_v19 = vadd.f32 %v3255_v45, %v1417_v26  ;;  %v1387_v24 = vmul.f32 %v3061_v44, %v1302_v14  ;;  %v4218_v48 = vld [vmem:[#allocation25_spill] sm:$0xff] }
 0x180   :  { %v1671_v17 = vmax.f32 %v3589_v40, %v1639_v62  ;;  %vm1578_vm0 = vcmp.ge.f32.partialorder %v1450_v6, 0.0  ;;  %v1610_v52 = vmul.f32 0.01, %v1450_v6  ;;  %v1420_v2 = vadd.f32 %v1388_v11, %v3592_v21  ;;  %v4220_v18 = vld [vmem:[#allocation33_spill] sm:$0xff] }
 0x181   :  { %v1176_v25 = vmul.f32 %v1798_v16, %v3636_v36  ;;  %1705 = vst.msk [vmem:[%s4026_s5 + $0x78] sm:$0xff] %vm1689_vm9, %v1672_v55  ;;  %vm1577_vm1 = vcmp.ge.f32.partialorder %v1449_v19, 0.0  ;;  %v1609_v32 = vmul.f32 0.01, %v1449_v19  ;;  %v1419_v8 = vadd.f32 %v1387_v24, %v4215_v63  ;;  %v1317_v40 = vpop.permute.xlu1 %1316 }
 0x182   :  { %v3883_v21 = vsel %vm1491_vm11, %v3773_v43, %v1523_v23  ;;  %1704 = vst.msk [vmem:[%s4026_s5 + $0x70] sm:$0xff] %vm1689_vm9, %v1671_v17  ;;  %v1642_v36 = vsel %vm1578_vm0, %v1450_v6, %v1610_v52  ;;  %v1452_v10 = vadd.f32 %v3255_v45, %v1420_v2  ;;  %v1390_v27 = vmul.f32 %v3061_v44, %v1317_v40  ;;  %v1312_v31 = vpop.permute.xlu0 %1311 }
 0x183   :  { %v1674_v61 = vmax.f32 %v4216_v59, %v1642_v36  ;;  %v1641_v3 = vsel %vm1577_vm1, %v1449_v19, %v1609_v32  ;;  %v1451_v13 = vadd.f32 %v3255_v45, %v1419_v8  ;;  %v1389_v4 = vmul.f32 %v3061_v44, %v1312_v31 }
 0x184   :  { %v1673_v43 = vmax.f32 %v3619_v15, %v1641_v3  ;;  %vm1580_vm2 = vcmp.ge.f32.partialorder %v1452_v10, 0.0  ;;  %v1612_v23 = vmul.f32 0.01, %v1452_v10  ;;  %v1422_v47 = vadd.f32 %v1390_v27, %v3627_v5 }
 0x185   :  { %v3898_v53 = vadd.f32 %v3255_v45, %v3634_v35  ;;  %1707 = vst.msk [vmem:[%s4026_s5 + $0x88] sm:$0xff] %vm1689_vm9, %v1674_v61  ;;  %vm1579_vm3 = vcmp.ge.f32.partialorder %v1451_v13, 0.0  ;;  %v1611_v57 = vmul.f32 0.01, %v1451_v13  ;;  %v1421_v46 = vadd.f32 %v1389_v4, %v4217_v54  ;;  %v1327_v44 = vpop.permute.xlu1 %1326  ;;  %v4222_v54 = vld [vmem:[#allocation7_spill] sm:$0xff] }
 0x186   :  { %v1175_v15 = vmul.f32 %v1798_v16, %v4218_v48  ;;  %1706 = vst.msk [vmem:[%s4026_s5 + $0x80] sm:$0xff] %vm1689_vm9, %v1673_v43  ;;  %v1644_v5 = vsel %vm1580_vm2, %v1452_v10, %v1612_v23  ;;  %v1454_v35 = vadd.f32 %v3255_v45, %v1422_v47  ;;  %v1392_v33 = vmul.f32 %v3914_v51, %v1327_v44  ;;  %v1322_v38 = vpop.permute.xlu0 %1321  ;;  %v4221_v10 = vld [vmem:[#allocation26_spill] sm:$0xff] }
 0x187   :  { %v1676_v56 = vmax.f32 %v4219_v20, %v1644_v5  ;;  %v1643_v37 = vsel %vm1579_vm3, %v1451_v13, %v1611_v57  ;;  %v1453_v26 = vadd.f32 %v3255_v45, %v1421_v46  ;;  %v1391_v60 = vmul.f32 %v3914_v51, %v1322_v38 }
 0x188   :  { %v1675_v6 = vmax.f32 %v4220_v18, %v1643_v37  ;;  %vm1582_vm4 = vcmp.ge.f32.partialorder %v1454_v35, 0.0  ;;  %v1614_v11 = vmul.f32 0.01, %v1454_v35  ;;  %v1424_v14 = vadd.f32 %v1392_v33, %v3664_v0 }
 0x189   :  { %vm1494_vm5 = vcmp.ge.f32.partialorder %v3858_v28, 0.0  ;;  %1709 = vst.msk [vmem:[%s4026_s5 + $0x98] sm:$0xff] %vm1689_vm9, %v1676_v56  ;;  %vm1581_vm6 = vcmp.ge.f32.partialorder %v1453_v26, 0.0  ;;  %v1613_v55 = vmul.f32 0.01, %v1453_v26  ;;  %v1423_v62 = vadd.f32 %v1391_v60, %v3668_v9  ;;  %v1337_v19 = vpop.permute.xlu1 %1336  ;;  %v4223_v60 = vld [vmem:[#allocation8_spill] sm:$0xff] }
 0x18a   :  { %v1526_v24 = vmul.f32 0.01, %v3858_v28  ;;  %1708 = vst.msk [vmem:[%s4026_s5 + $0x90] sm:$0xff] %vm1689_vm9, %v1675_v6  ;;  %v1646_v0 = vsel %vm1582_vm4, %v1454_v35, %v1614_v11  ;;  %v1456_v17 = vadd.f32 %v3255_v45, %v1424_v14  ;;  %v1394_v52 = vmul.f32 %v3914_v51, %v1337_v19  ;;  %v1332_v2 = vpop.permute.xlu0 %1331  ;;  %v4224_v11 = vld [vmem:[#allocation15_spill] sm:$0xff] }
 0x18b   :  { %v1678_v16 = vmax.f32 %v3674_v30, %v1646_v0  ;;  %v1645_v32 = vsel %vm1581_vm6, %v1453_v26, %v1613_v55  ;;  %v1455_v63 = vadd.f32 %v3255_v45, %v1423_v62  ;;  %v1393_v9 = vmul.f32 %v3914_v51, %v1332_v2 }
 0x18c   :  { %v1677_v8 = vmax.f32 %v3677_v34, %v1645_v32  ;;  %vm1584_vm7 = vcmp.ge.f32.partialorder %v1456_v17, 0.0  ;;  %v1616_v40 = vmul.f32 0.01, %v1456_v17  ;;  %v1426_v36 = vadd.f32 %v1394_v52, %v3680_v39 }
 0x18d   :  { %v1208_v27 = vadd.f32 %v1176_v25, %v4221_v10  ;;  %1711 = vst.msk [vmem:[%s4026_s5 + $0xa8] sm:$0xff] %vm1689_vm9, %v1678_v16  ;;  %vm1583_vm8 = vcmp.ge.f32.partialorder %v1455_v63, 0.0  ;;  %v1615_v30 = vmul.f32 0.01, %v1455_v63  ;;  %v1425_v31 = vadd.f32 %v1393_v9, %v3686_v12  ;;  %v1347_v59 = vpop.permute.xlu1 %1346 }
 0x18e   :  { %vm1493_vm10 = vcmp.ge.f32.partialorder %v3898_v53, 0.0  ;;  %v1525_v34 = vmul.f32 0.01, %v3898_v53  ;;  %1710 = vst.msk [vmem:[%s4026_s5 + $0xa0] sm:$0xff] %vm1689_vm9, %v1677_v8  ;;  %v1648_v39 = vsel %vm1584_vm7, %v1456_v17, %v1616_v40  ;;  %v1458_v25 = vadd.f32 %v3255_v45, %v1426_v36  ;;  %v1342_v3 = vpop.permute.xlu0 %1341 }
 0x18f   :  { %v1396_v61 = vmul.f32 %v3914_v51, %v1347_v59  ;;  %v1680_v13 = vmax.f32 %v3683_v22, %v1648_v39  ;;  %v1647_v4 = vsel %vm1583_vm8, %v1455_v63, %v1615_v30  ;;  %v1457_v12 = vadd.f32 %v3255_v45, %v1425_v31 }
 0x190   :  { %v1395_v43 = vmul.f32 %v3914_v51, %v1342_v3  ;;  %v1679_v23 = vmax.f32 %v3691_v41, %v1647_v4  ;;  %vm1586_vm11 = vcmp.ge.f32.partialorder %v1458_v25, 0.0  ;;  %v1618_v47 = vmul.f32 0.01, %v1458_v25 }
 0x191   :  { %v1428_v57 = vadd.f32 %v1396_v61, %v3705_v42  ;;  %v1207_v46 = vadd.f32 %v1175_v15, %v4222_v54  ;;  %1713 = vst.msk [vmem:[%s4026_s5 + $0xb8] sm:$0xff] %vm1689_vm9, %v1680_v13  ;;  %vm1585_vm12 = vcmp.ge.f32.partialorder %v1457_v12, 0.0  ;;  %v1617_v22 = vmul.f32 0.01, %v1457_v12  ;;  %v1357_v48 = vpop.permute.xlu1 %1356 }
 0x192   :  { %v1427_v44 = vadd.f32 %v1395_v43, %v3718_v1  ;;  %v1558_v41 = vsel %vm1494_vm5, %v3858_v28, %v1526_v24  ;;  %1712 = vst.msk [vmem:[%s4026_s5 + $0xb0] sm:$0xff] %vm1689_vm9, %v1679_v23  ;;  %v1650_v42 = vsel %vm1586_vm11, %v1458_v25, %v1618_v47  ;;  %v1398_v5 = vmul.f32 %v3914_v51, %v1357_v48  ;;  %v1352_v35 = vpop.permute.xlu0 %1351  ;;  %v1800_v1 = vld [vmem:[#allocation2] ss:$0 sm:$0xff] }
 0x193   :  { %v1460_v15 = vadd.f32 %v3255_v45, %v1428_v57  ;;  %v1682_v33 = vmax.f32 %v3726_v7, %v1650_v42  ;;  %v1649_v38 = vsel %vm1585_vm12, %v1457_v12, %v1617_v22  ;;  %v1397_v56 = vmul.f32 %v3914_v51, %v1352_v35 }
 0x194   :  { %v1459_v20 = vadd.f32 %v1800_v1, %v1427_v44  ;;  %v1681_v28 = vmax.f32 %v3764_v50, %v1649_v38  ;;  %v1430_v26 = vadd.f32 %v1398_v5, %v3812_v29  ;;  %v1112_v18 = vadd.f32 %v1800_v1, %v4223_v60 }
 0x195   :  { %vm1588_vm13 = vcmp.ge.f32.partialorder %v1460_v15, 0.0  ;;  %v1620_v37 = vmul.f32 0.01, %v1460_v15  ;;  %1715 = vst.msk [vmem:[%s4026_s5 + $0xc8] sm:$0xff] %vm1689_vm9, %v1682_v33  ;;  %v1429_v7 = vadd.f32 %v1397_v56, %v3833_v49  ;;  %v1367_v6 = vpop.permute.xlu1 %1366  ;;  %v1111_v14 = vadd.f32 %v1800_v1, %v4224_v11 }
 0x196   :  { %vm1587_vm14 = vcmp.ge.f32.partialorder %v1459_v20, 0.0  ;;  %v1619_v45 = vmul.f32 0.01, %v1459_v20  ;;  %1714 = vst.msk [vmem:[%s4026_s5 + $0xc0] sm:$0xff] %vm1689_vm9, %v1681_v28  ;;  %v1462_v29 = vadd.f32 %v1800_v1, %v1430_v26  ;;  %v1400_v55 = vmul.f32 %v3914_v51, %v1367_v6  ;;  %v1362_v62 = vpop.permute.xlu0 %1361 }
 0x197   :  { %v1652_v50 = vsel %vm1588_vm13, %v1460_v15, %v1620_v37  ;;  %v1461_v0 = vadd.f32 %v1800_v1, %v1429_v7  ;;  %v1399_v17 = vmul.f32 %v3914_v51, %v1362_v62  ;;  %v1557_v16 = vsel %vm1493_vm10, %v3898_v53, %v1525_v34 }
 0x198   :  { %v1684_v19 = vmax.f32 %v3849_v58, %v1652_v50  ;;  %v1651_v24 = vsel %vm1587_vm14, %v1459_v20, %v1619_v45  ;;  %vm1590_vm15 = vcmp.ge.f32.partialorder %v1462_v29, 0.0  ;;  %v1622_v52 = vmul.f32 0.01, %v1462_v29 }
 0x199   :  { %v1683_v49 = vmax.f32 %v3883_v21, %v1651_v24  ;;  %v1432_v2 = vadd.f32 %v1400_v55, %v1208_v27  ;;  %vm1589_vm0 = vcmp.ge.f32.partialorder %v1461_v0, 0.0  ;;  %v1621_v58 = vmul.f32 0.01, %v1461_v0 }
 0x19a   :  { %1717 = vst.msk [vmem:[%s4026_s5 + $0xd8] sm:$0xff] %vm1689_vm9, %v1684_v19  ;;  %v1431_v32 = vadd.f32 %v1399_v17, %v1207_v46  ;;  %vm1496_vm1 = vcmp.ge.f32.partialorder %v1112_v18, 0.0  ;;  %v1528_v63 = vmul.f32 0.01, %v1112_v18  ;;  %v1654_v21 = vsel %vm1590_vm15, %v1462_v29, %v1622_v52 }
 0x19b   :  { %1716 = vst.msk [vmem:[%s4026_s5 + $0xd0] sm:$0xff] %vm1689_vm9, %v1683_v49  ;;  %v1464_v51 = vadd.f32 %v1800_v1, %v1432_v2  ;;  %v1527_v9 = vmul.f32 0.01, %v1111_v14  ;;  %v1686_v8 = vmax.f32 %v1558_v41, %v1654_v21  ;;  %v1653_v53 = vsel %vm1589_vm0, %v1461_v0, %v1621_v58 }
 0x19c   :  { %v1463_v40 = vadd.f32 %v1800_v1, %v1431_v32  ;;  %vm1495_vm2 = vcmp.ge.f32.partialorder %v1111_v14, 0.0  ;;  %v1685_v36 = vmax.f32 %v1557_v16, %v1653_v53  ;;  %v1560_v30 = vsel %vm1496_vm1, %v1112_v18, %v1528_v63 }
 0x19d   :  { %vm1592_vm3 = vcmp.ge.f32.partialorder %v1464_v51, 0.0  ;;  %v1624_v10 = vmul.f32 0.01, %v1464_v51  ;;  %1719 = vst.msk [vmem:[%s4026_s5 + $0xe8] sm:$0xff] %vm1689_vm9, %v1686_v8  ;;  %v1559_v59 = vsel %vm1495_vm2, %v1111_v14, %v1527_v9 }
 0x19e   :  { %vm1591_vm4 = vcmp.ge.f32.partialorder %v1463_v40, 0.0  ;;  %v1623_v27 = vmul.f32 0.01, %v1463_v40  ;;  %1718 = vst.msk [vmem:[%s4026_s5 + $0xe0] sm:$0xff] %vm1689_vm9, %v1685_v36 }
 0x19f   :  { %v1656_v31 = vsel %vm1592_vm3, %v1464_v51, %v1624_v10 }
 0x1a0   :  { %v1688_v34 = vmax.f32 %v1560_v30, %v1656_v31  ;;  %v1655_v39 = vsel %vm1591_vm4, %v1463_v40, %v1623_v27 }
 0x1a1   :  { %v1687_v25 = vmax.f32 %v1559_v59, %v1655_v39 }
 0x1a2   :  { %1721 = vst.msk [vmem:[%s4026_s5 + $0xf8] sm:$0xff] %vm1689_vm9, %v1688_v34 }
 0x1a3   :  { %1720 = vst.msk [vmem:[%s4026_s5 + $0xf0] sm:$0xff] %vm1689_vm9, %v1687_v25 }
 0x1a4   :  { %1726 = vsyncpa [#allocation3], 1 }

// kernel: eegnet2d_forward.8
= control target key start
LH: loop header
LB: loop body
LE: loop exit
PB: predicated region body
PF: predicated region fallthrough
CT: control target
= control target key end

     0   :  { %v862_v0 = vmov 0   ;;  %v40_v18 = vlaneseq  ;;  %s1229_s3 = inlined_call_operand.vmem [shape: f32[32,1], index: 3, kind: input, shape index: {}]   ;;  %s1230_s1 = inlined_call_operand.vmem [shape: bf16[384,256], index: 1, kind: input, shape index: {}]   ;;  %s1231_s4 = inlined_call_operand.vmem [shape: f32[32,1], index: 4, kind: input, shape index: {}]   ;;  %s1232_s0 = inlined_call_operand.vmem [shape: f32[64,128], index: 0, kind: input, shape index: {}]   ;;  %s1233_s2 = inlined_call_operand.vmem [shape: f32[1,256], index: 2, kind: input, shape index: {}]   ;;  %s1234_s5 = inlined_call_operand.vmem [shape: f32[32,256], index: 5, kind: output, shape index: {}]  }
   0x1   :  { %789 = vset.pattern.permute.xlu1 %v862_v0  ;;  %788 = vset.pattern.permute.xlu0 %v862_v0  ;;  %v49_v1 = vld [vmem:[%s1229_s3 + $0x10] sm:$0xff]  ;;  %v47_v2 = vld [vmem:[%s1229_s3] sm:$0xff]  ;;  %v50_v3 = vld [vmem:[%s1229_s3 + $0x18] sm:$0xff] }
   0x2   :  { %63 = vperm.xlu1 %789, %v49_v1   ;;  %53 = vperm.xlu0 %788, %v47_v2   ;;  %v48_v4 = vld [vmem:[%s1229_s3 + $0x8] sm:$0xff]  ;;  %v793_v7 = vld [vmem:[%s1230_s1 + $0x14] ss:$8 sps:$4 sm:$0xff]   ;;  %v84_v9 = vld [vmem:[%s1231_s4] sm:$0xff]  ;;  %v952_v21 = vshrl.u32 %v40_v18, 7 }
   0x3   :  { %v790_v5 = vld [vmem:[%s1230_s1 + $0x4] ss:$8 sps:$4 sm:$0xff]   ;;  %v792_v6 = vld [vmem:[%s1230_s1] ss:$8 sps:$4 sm:$0xff]   ;;  %v795_v10 = vld [vmem:[%s1230_s1 + $0x10] ss:$8 sps:$4 sm:$0xff]  }
   0x4   :  { %v85_v8 = vld [vmem:[%s1231_s4 + $0x8] sm:$0xff]  ;;  %526 = vmatprep.subr.bf16.mxu1 %v790_v5  ;;  %420 = vmatprep.subr.bf16.mxu0 %v790_v5  ;;  %v87_v12 = vld [vmem:[%s1231_s4 + $0x18] sm:$0xff]  ;;  %v86_v13 = vld [vmem:[%s1231_s4 + $0x10] sm:$0xff]  ;;  %vm42_vm0 = vcmp.lt.s32.totalorder %v952_v21, 1  ;;  %vm79_vm1 = vcmp.lt.s32.totalorder %v952_v21, 7 }
   0x5   :  { %527 = vmatpush1.bf16.msra.mxu1 %v792_v6  ;;  %421 = vmatpush1.bf16.msra.mxu0 %v792_v6  ;;  %v796_v11 = vld [vmem:[%s1230_s1 + $0x24] ss:$8 sps:$4 sm:$0xff]   ;;  %v798_v14 = vld [vmem:[%s1230_s1 + $0x20] ss:$8 sps:$4 sm:$0xff]   ;;  %v799_v15 = vld [vmem:[%s1230_s1 + $0x34] ss:$8 sps:$4 sm:$0xff]  }
   0x6   :  { %68 = vperm.xlu1 %789, %v50_v3   ;;  %58 = vperm.xlu0 %788, %v48_v4   ;;  %v801_v16 = vld [vmem:[%s1230_s1 + $0x30] ss:$8 sps:$4 sm:$0xff]   ;;  %v802_v17 = vld [vmem:[%s1230_s1 + $0x44] ss:$8 sps:$4 sm:$0xff]   ;;  %v804_v19 = vld [vmem:[%s1230_s1 + $0x40] ss:$8 sps:$4 sm:$0xff]  }
   0x7   :  { %528 = vmatprep.subr.bf16.mxu1 %v793_v7  ;;  %422 = vmatprep.subr.bf16.mxu0 %v793_v7  ;;  %v805_v20 = vld [vmem:[%s1230_s1 + $0x54] ss:$8 sps:$4 sm:$0xff]   ;;  %v807_v22 = vld [vmem:[%s1230_s1 + $0x50] ss:$8 sps:$4 sm:$0xff]   ;;  %v808_v23 = vld [vmem:[%s1230_s1 + $0x64] ss:$8 sps:$4 sm:$0xff]  }
   0x8   :  { %v963_v24 = vld [vmem:[%s1232_s0 + $0x1] ss:$2 sm:$0xff]  ;;  %v704_v25 = vld [vmem:[%s1232_s0 + $0x11] ss:$2 sm:$0xff]  ;;  %v21_v29 = vld [vmem:[%s1232_s0] ss:$2 sm:$0xff] }
   0x9   :  { %529 = vmatpush1.bf16.msra.mxu1 %v795_v10  ;;  %423 = vmatpush1.bf16.msra.mxu0 %v795_v10  ;;  %v36_v26 = vrot.slane %v963_v24, 7  ;;  %v37_v27 = vrot.slane %v704_v25, 7  ;;  %v970_v28 = vpack.c.bf16 %v704_v25, %v963_v24  ;;  %v978_v30 = vld [vmem:[%s1232_s0 + $0x10] ss:$2 sm:$0xff]  ;;  %v810_v31 = vld [vmem:[%s1230_s1 + $0x60] ss:$8 sps:$4 sm:$0xff]  }
   0xa   :  { %95 = vperm.xlu1 %789, %v85_v8   ;;  %90 = vperm.xlu0 %788, %v84_v9   ;;  %v985_v32 = vpack.c.bf16 %v978_v30, %v21_v29  ;;  %v76_v34 = vrot.slane %v978_v30, 1  ;;  %v811_v35 = vld [vmem:[%s1230_s1 + $0x74] ss:$8 sps:$4 sm:$0xff]   ;;  %v75_v36 = vrot.slane %v21_v29, 1  ;;  %v813_v38 = vld [vmem:[%s1230_s1 + $0x70] ss:$8 sps:$4 sm:$0xff]  }
   0xb   :  { %530 = vmatprep.subr.bf16.mxu1 %v796_v11  ;;  %424 = vmatprep.subr.bf16.mxu0 %v796_v11  ;;  %v991_v33 = vsel %vm42_vm0, %v36_v26, %v37_v27  ;;  %v814_v39 = vld [vmem:[%s1230_s1 + $0x84] ss:$8 sps:$4 sm:$0xff]   ;;  %v816_v42 = vld [vmem:[%s1230_s1 + $0x80] ss:$8 sps:$4 sm:$0xff]   ;;  %v1030_v44 = vld [vmem:[%s1232_s0 + $0x30] ss:$2 sm:$0xff] }
   0xc   :  { %558 = vmatprep.mubr.bf16.mxu1 %v970_v28  ;;  %452 = vmatprep.mubr.bf16.mxu0 %v985_v32  ;;  %v1004_v37 = vsel %vm79_vm1, %v75_v36, %v76_v34  ;;  %v1015_v40 = vld [vmem:[%s1232_s0 + $0x21] ss:$2 sm:$0xff]  ;;  %v817_v45 = vld [vmem:[%s1230_s1 + $0x94] ss:$8 sps:$4 sm:$0xff]   ;;  %v78_v46 = vrot.slane %v1030_v44, 1 }
   0xd   :  { %531 = vmatpush1.bf16.msra.mxu1 %v798_v14  ;;  %425 = vmatpush1.bf16.msra.mxu0 %v798_v14  ;;  %v38_v41 = vrot.slane %v1015_v40, 7  ;;  %v819_v48 = vld [vmem:[%s1230_s1 + $0x90] ss:$8 sps:$4 sm:$0xff]   ;;  %v820_v49 = vld [vmem:[%s1230_s1 + $0xa4] ss:$8 sps:$4 sm:$0xff]  }
   0xe   :  { %105 = vperm.xlu1 %789, %v87_v12   ;;  %100 = vperm.xlu0 %788, %v86_v13   ;;  %v1040_v47 = vsel %vm79_vm1, %v78_v46, %v75_v36  ;;  %v822_v50 = vld [vmem:[%s1230_s1 + $0xa0] ss:$8 sps:$4 sm:$0xff]   ;;  %v823_v51 = vld [vmem:[%s1230_s1 + $0xb4] ss:$8 sps:$4 sm:$0xff]   ;;  %v825_v52 = vld [vmem:[%s1230_s1 + $0xb0] ss:$8 sps:$4 sm:$0xff]  }
   0xf   :  { %532 = vmatprep.subr.bf16.mxu1 %v799_v15  ;;  %426 = vmatprep.subr.bf16.mxu0 %v799_v15  ;;  %v1025_v43 = vsel %vm42_vm0, %v37_v27, %v38_v41  ;;  %v826_v53 = vld [vmem:[%s1230_s1 + $0xc4] ss:$8 sps:$4 sm:$0xff]   ;;  %v828_v54 = vld [vmem:[%s1230_s1 + $0xc0] ss:$8 sps:$4 sm:$0xff]   ;;  %v829_v55 = vld [vmem:[%s1230_s1 + $0xd4] ss:$8 sps:$4 sm:$0xff]  }
  0x10   :  { %v831_v56 = vld [vmem:[%s1230_s1 + $0xd0] ss:$8 sps:$4 sm:$0xff]   ;;  %v832_v57 = vld [vmem:[%s1230_s1 + $0xe4] ss:$8 sps:$4 sm:$0xff]   ;;  %v834_v58 = vld [vmem:[%s1230_s1 + $0xe0] ss:$8 sps:$4 sm:$0xff]  }
  0x11   :  { %533 = vmatpush1.bf16.msra.mxu1 %v801_v16  ;;  %427 = vmatpush1.bf16.msra.mxu0 %v801_v16  ;;  %v835_v59 = vld [vmem:[%s1230_s1 + $0xf4] ss:$8 sps:$4 sm:$0xff]   ;;  %v837_v60 = vld [vmem:[%s1230_s1 + $0xf0] ss:$8 sps:$4 sm:$0xff]   ;;  %v840_v61 = vld [vmem:[%s1230_s1 + $0x104] ss:$8 sps:$4 sm:$0xff]  }
  0x12   :  { %534 = vmatprep.subr.bf16.mxu1 %v802_v17  ;;  %428 = vmatprep.subr.bf16.mxu0 %v802_v17  ;;  %v706_v62 = vld [vmem:[%s1232_s0 + $0x31] ss:$2 sm:$0xff]  ;;  %v838_v63 = vld [vmem:[%s1230_s1 + $0x100] ss:$8 sps:$4 sm:$0xff]   ;;  %v846_v5 = vld [vmem:[%s1230_s1 + $0x124] ss:$8 sps:$4 sm:$0xff]  }
  0x13   :  { %v1091_v1 = vpack.c.bf16 %v706_v62, %v1015_v40  ;;  %v843_v2 = vld [vmem:[%s1230_s1 + $0x114] ss:$8 sps:$4 sm:$0xff]   ;;  %v841_v3 = vld [vmem:[%s1230_s1 + $0x110] ss:$8 sps:$4 sm:$0xff]   ;;  %v701_v4 = vld [vmem:[%s1232_s0 + $0x20] ss:$2 sm:$0xff] }
  0x14   :  { %v114_v6 = vpack.c.bf16 %v1030_v44, %v701_v4  ;;  %v844_v7 = vld [vmem:[%s1230_s1 + $0x120] ss:$8 sps:$4 sm:$0xff]   ;;  %v849_v8 = vld [vmem:[%s1230_s1 + $0x134] ss:$8 sps:$4 sm:$0xff]   ;;  %v847_v9 = vld [vmem:[%s1230_s1 + $0x130] ss:$8 sps:$4 sm:$0xff]  }
  0x15   :  { %535 = vmatpush1.bf16.msra.mxu1 %v804_v19  ;;  %429 = vmatpush1.bf16.msra.mxu0 %v804_v19  ;;  %v852_v10 = vld [vmem:[%s1230_s1 + $0x144] ss:$8 sps:$4 sm:$0xff]   ;;  %v850_v11 = vld [vmem:[%s1230_s1 + $0x140] ss:$8 sps:$4 sm:$0xff]   ;;  %v855_v12 = vld [vmem:[%s1230_s1 + $0x154] ss:$8 sps:$4 sm:$0xff]  }
  0x16   :  { %536 = vmatprep.subr.bf16.mxu1 %v805_v20  ;;  %430 = vmatprep.subr.bf16.mxu0 %v805_v20  ;;  %v853_v13 = vld [vmem:[%s1230_s1 + $0x150] ss:$8 sps:$4 sm:$0xff]   ;;  %v858_v14 = vld [vmem:[%s1230_s1 + $0x164] ss:$8 sps:$4 sm:$0xff]   ;;  %v856_v15 = vld [vmem:[%s1230_s1 + $0x160] ss:$8 sps:$4 sm:$0xff]  }
  0x17   :  { %v861_v16 = vld [vmem:[%s1230_s1 + $0x174] ss:$8 sps:$4 sm:$0xff]   ;;  %v859_v17 = vld [vmem:[%s1230_s1 + $0x170] ss:$8 sps:$4 sm:$0xff]   ;;  %v39_v18 = vrot.slane %v706_v62, 7  ;;  %v77_v25 = vrot.slane %v701_v4, 1 }
  0x18   :  { %v172_v44 = vsub.s32 0, %v952_v21 }
  0x19   :  { %537 = vmatpush1.bf16.msra.mxu1 %v807_v22  ;;  %431 = vmatpush1.bf16.msra.mxu0 %v807_v22  ;;  %v46_v22 = vsel %vm42_vm0, %v39_v18, %v36_v26  ;;  %v81_v24 = vsel %vm79_vm1, %v76_v34, %v77_v25 }
  0x1a   :  { %538 = vmatprep.subr.bf16.mxu1 %v808_v23  ;;  %432 = vmatprep.subr.bf16.mxu0 %v808_v23  ;;  %v43_v23 = vsel %vm42_vm0, %v38_v41, %v39_v18 }
  0x1d   :  { %539 = vmatpush1.bf16.msra.mxu1 %v810_v31  ;;  %433 = vmatpush1.bf16.msra.mxu0 %v810_v31 }
  0x1e   :  { %540 = vmatprep.subr.bf16.mxu1 %v811_v35  ;;  %434 = vmatprep.subr.bf16.mxu0 %v811_v35 }
  0x21   :  { %541 = vmatpush1.bf16.msra.mxu1 %v813_v38  ;;  %435 = vmatpush1.bf16.msra.mxu0 %v813_v38 }
  0x22   :  { %542 = vmatprep.subr.bf16.mxu1 %v814_v39  ;;  %436 = vmatprep.subr.bf16.mxu0 %v814_v39 }
  0x25   :  { %543 = vmatpush1.bf16.msra.mxu1 %v816_v42  ;;  %437 = vmatpush1.bf16.msra.mxu0 %v816_v42 }
  0x26   :  { %544 = vmatprep.subr.bf16.mxu1 %v817_v45  ;;  %438 = vmatprep.subr.bf16.mxu0 %v817_v45 }
  0x29   :  { %545 = vmatpush1.bf16.msra.mxu1 %v819_v48  ;;  %439 = vmatpush1.bf16.msra.mxu0 %v819_v48 }
  0x2a   :  { %546 = vmatprep.subr.bf16.mxu1 %v820_v49  ;;  %440 = vmatprep.subr.bf16.mxu0 %v820_v49 }
  0x2d   :  { %547 = vmatpush1.bf16.msra.mxu1 %v822_v50  ;;  %441 = vmatpush1.bf16.msra.mxu0 %v822_v50 }
  0x2e   :  { %548 = vmatprep.subr.bf16.mxu1 %v823_v51  ;;  %442 = vmatprep.subr.bf16.mxu0 %v823_v51 }
  0x31   :  { %549 = vmatpush1.bf16.msra.mxu1 %v825_v52  ;;  %443 = vmatpush1.bf16.msra.mxu0 %v825_v52 }
  0x32   :  { %550 = vmatprep.subr.bf16.mxu1 %v826_v53  ;;  %444 = vmatprep.subr.bf16.mxu0 %v826_v53 }
  0x35   :  { %551 = vmatpush1.bf16.msra.mxu1 %v828_v54  ;;  %445 = vmatpush1.bf16.msra.mxu0 %v828_v54 }
  0x36   :  { %552 = vmatprep.subr.bf16.mxu1 %v829_v55  ;;  %446 = vmatprep.subr.bf16.mxu0 %v829_v55 }
  0x39   :  { %553 = vmatpush1.bf16.msra.mxu1 %v831_v56  ;;  %447 = vmatpush1.bf16.msra.mxu0 %v831_v56 }
  0x3a   :  { %554 = vmatprep.subr.bf16.mxu1 %v832_v57  ;;  %448 = vmatprep.subr.bf16.mxu0 %v832_v57 }
  0x3d   :  { %555 = vmatpush1.bf16.msra.mxu1 %v834_v58  ;;  %449 = vmatpush1.bf16.msra.mxu0 %v834_v58 }
  0x3e   :  { %556 = vmatprep.subr.bf16.mxu1 %v835_v59  ;;  %450 = vmatprep.subr.bf16.mxu0 %v835_v59 }
  0x41   :  { %557 = vmatpush1.bf16.msra.mxu1 %v837_v60  ;;  %451 = vmatpush1.bf16.msra.mxu0 %v837_v60 }
  0x42   :  { %579 = vmatprep.subr.bf16.mxu1 %v840_v61  ;;  %473 = vmatprep.subr.bf16.mxu0 %v840_v61 }
  0x44   :  { %559 = vmatmul.mubr.bf16.vlgmr.msra.gmra.mrb[0].mxu1 %v985_v32 }
  0x45   :  { %580 = vmatpush1.bf16.msra.mxu1 %v838_v63  ;;  %568 = vmatprep.mubr.bf16.mxu1 %v1091_v1 }
  0x46   :  { %581 = vmatprep.subr.bf16.mxu1 %v843_v2 }
  0x49   :  { %582 = vmatpush1.bf16.msra.mxu1 %v841_v3 }
  0x4a   :  { %583 = vmatprep.subr.bf16.mxu1 %v846_v5 }
  0x4c   :  { %569 = vmatmul.mubr.bf16.gmra.mrb[4].mxu1 %v114_v6 }
  0x4d   :  { %584 = vmatpush1.bf16.msra.mxu1 %v844_v7  ;;  %611 = vmatprep.mubr.bf16.mxu1 %v862_v0 }
  0x4e   :  { %585 = vmatprep.subr.bf16.mxu1 %v849_v8 }
  0x51   :  { %586 = vmatpush1.bf16.msra.mxu1 %v847_v9 }
  0x52   :  { %587 = vmatprep.subr.bf16.mxu1 %v852_v10 }
  0x55   :  { %588 = vmatpush1.bf16.msra.mxu1 %v850_v11 }
  0x56   :  { %589 = vmatprep.subr.bf16.mxu1 %v855_v12 }
  0x59   :  { %590 = vmatpush1.bf16.msra.mxu1 %v853_v13 }
  0x5a   :  { %591 = vmatprep.subr.bf16.mxu1 %v858_v14 }
  0x5d   :  { %592 = vmatpush1.bf16.msra.mxu1 %v856_v15 }
  0x5e   :  { %593 = vmatprep.subr.bf16.mxu1 %v861_v16 }
  0x61   :  { %594 = vmatpush1.bf16.msra.mxu1 %v859_v17 }
  0x81   :  { %v64_v19 = vpop.permute.xlu1 %63  ;;  %v54_v20 = vpop.permute.xlu0 %53 }
  0x82   :  { %v73_v27 = vmul.f32 %v64_v19, %v1025_v43  ;;  %v71_v32 = vmul.f32 %v54_v20, %v46_v22  ;;  %v80_v43 = vsel %vm79_vm1, %v77_v25, %v78_v46  ;;  %v176_v46 = vsub.s32 1, %v952_v21 }
  0x85   :  { %v69_v29 = vpop.permute.xlu1 %68  ;;  %v59_v31 = vpop.permute.xlu0 %58 }
  0x86   :  { %v74_v35 = vmul.f32 %v69_v29, %v43_v23  ;;  %v72_v36 = vmul.f32 %v59_v31, %v991_v33 }
  0x88   :  { %v118_v26 = vpack.c.bf16 %v74_v35, %v73_v27  ;;  %v117_v38 = vpack.c.bf16 %v72_v36, %v71_v32 }
  0x89   :  { %v96_v39 = vpop.permute.xlu1 %95  ;;  %v91_v40 = vpop.permute.xlu0 %90 }
  0x8a   :  { %v109_v42 = vmul.f32 %v96_v39, %v81_v24  ;;  %v108_v41 = vmul.f32 %v91_v40, %v1004_v37  ;;  %453 = vmatmul.mubr.bf16.vlgmr.msra.gmra.mrb[0].mxu0 %v117_v38 }
  0x8b   :  { %474 = vmatpush1.bf16.msra.mxu0 %v838_v63  ;;  %462 = vmatprep.mubr.bf16.mxu0 %v114_v6 }
  0x8c   :  { %v119_v33 = vpack.c.bf16 %v109_v42, %v108_v41  ;;  %475 = vmatprep.subr.bf16.mxu0 %v843_v2 }
  0x8d   :  { %v106_v30 = vpop.permute.xlu1 %105  ;;  %v101_v45 = vpop.permute.xlu0 %100 }
  0x8e   :  { %v111_v34 = vmul.f32 %v106_v30, %v1040_v47  ;;  %v110_v48 = vmul.f32 %v101_v45, %v80_v43  ;;  %612 = vmatmul.mubr.bf16.vlgmr.msra.gmra.mrb[0].mxu1 %v119_v33  ;;  %v112_v47 = vld [vmem:[%s1233_s2] sm:$0x3] }
  0x8f   :  { %476 = vmatpush1.bf16.msra.mxu0 %v841_v3  ;;  %621 = vmatprep.mubr.bf16.mxu1 %v862_v0  ;;  %v1172_v49 = vrot.slane %v112_v47, %v172_v44  ;;  %v1174_v50 = vrot.slane %v112_v47, %v176_v46 }
  0x90   :  { %v120_v37 = vpack.c.bf16 %v111_v34, %v110_v48  ;;  %477 = vmatprep.subr.bf16.mxu0 %v846_v5 }
  0x92   :  { %463 = vmatmul.mubr.bf16.gmra.mrb[4].mxu0 %v118_v26 }
  0x93   :  { %478 = vmatpush1.bf16.msra.mxu0 %v844_v7  ;;  %505 = vmatprep.mubr.bf16.mxu0 %v862_v0 }
  0x94   :  { %479 = vmatprep.subr.bf16.mxu0 %v849_v8 }
  0x96   :  { %622 = vmatmul.mubr.bf16.gmra.mrb[4].mxu1 %v120_v37 }
  0x97   :  { %480 = vmatpush1.bf16.msra.mxu0 %v847_v9 }
  0x98   :  { %481 = vmatprep.subr.bf16.mxu0 %v852_v10 }
  0x9b   :  { %482 = vmatpush1.bf16.msra.mxu0 %v850_v11 }
  0x9c   :  { %483 = vmatprep.subr.bf16.mxu0 %v855_v12 }
  0x9f   :  { %484 = vmatpush1.bf16.msra.mxu0 %v853_v13 }
  0xa0   :  { %485 = vmatprep.subr.bf16.mxu0 %v858_v14 }
  0xa3   :  { %486 = vmatpush1.bf16.msra.mxu0 %v856_v15 }
  0xa4   :  { %487 = vmatprep.subr.bf16.mxu0 %v861_v16 }
  0xa7   :  { %488 = vmatpush1.bf16.msra.mxu0 %v859_v17 }
  0xaa   :  { %506 = vmatmul.mubr.bf16.vlgmr.msra.gmra.mrb[0].mxu0 %v970_v28 }
  0xab   :  { %515 = vmatprep.mubr.bf16.mxu0 %v862_v0 }
  0xb2   :  { %516 = vmatmul.mubr.bf16.gmra.mrb[4].mxu0 %v1091_v1 }
 0x161   :  { %v613_v51 = vpop.f32.mrb[0].mxu1 }
 0x162   :  { %v763_v52 = vadd.f32 %v613_v51, %v1172_v49  ;;  %v615_v28 = vpop.f32.mrb[1].mxu1 }
 0x163   :  { %v764_v0 = vadd.f32 %v615_v28, %v1174_v50  ;;  %v617_v53 = vpop.f32.mrb[2].mxu1 }
 0x164   :  { %v765_v54 = vadd.f32 %v617_v53, %v1172_v49  ;;  %v619_v55 = vpop.f32.mrb[3].mxu1  ;;  %v664_v1 = vmul.f32 0.01, %v763_v52  ;;  %vm656_vm2 = vcmp.ge.f32.partialorder %v763_v52, 0.0 }
 0x165   :  { %v766_v21 = vadd.f32 %v619_v55, %v1174_v50  ;;  %v665_v2 = vmul.f32 0.01, %v764_v0  ;;  %vm657_vm3 = vcmp.ge.f32.partialorder %v764_v0, 0.0 }
 0x166   :  { %v666_v3 = vmul.f32 0.01, %v765_v54  ;;  %vm658_vm4 = vcmp.ge.f32.partialorder %v765_v54, 0.0  ;;  %v672_v7 = vsel %vm656_vm2, %v763_v52, %v664_v1 }
 0x167   :  { %v673_v8 = vsel %vm657_vm3, %v764_v0, %v665_v2  ;;  %vm659_vm5 = vcmp.ge.f32.partialorder %v766_v21, 0.0  ;;  %v667_v11 = vmul.f32 0.01, %v766_v21 }
 0x168   :  { %v674_v15 = vsel %vm658_vm4, %v765_v54, %v666_v3 }
 0x169   :  { %v623_v56 = vpop.f32.mrb[4].mxu1  ;;  %v675_v32 = vsel %vm659_vm5, %v766_v21, %v667_v11 }
 0x16a   :  { %v767_v57 = vadd.f32 %v623_v56, %v1172_v49  ;;  %v625_v58 = vpop.f32.mrb[5].mxu1 }
 0x16b   :  { %v768_v59 = vadd.f32 %v625_v58, %v1174_v50  ;;  %v627_v60 = vpop.f32.mrb[6].mxu1 }
 0x16c   :  { %v1183_v61 = vadd.f32 %v627_v60, %v1172_v49  ;;  %v629_v62 = vpop.f32.mrb[7].mxu1  ;;  %v668_v18 = vmul.f32 0.01, %v767_v57  ;;  %vm660_vm10 = vcmp.ge.f32.partialorder %v767_v57, 0.0 }
 0x16d   :  { %v1186_v63 = vadd.f32 %v629_v62, %v1174_v50  ;;  %v669_v27 = vmul.f32 0.01, %v768_v59  ;;  %vm661_vm11 = vcmp.ge.f32.partialorder %v768_v59, 0.0 }
 0x16e   :  { %v676_v40 = vsel %vm660_vm10, %v767_v57, %v668_v18  ;;  %vm662_vm12 = vcmp.ge.f32.partialorder %v1183_v61, 0.0  ;;  %v670_v42 = vmul.f32 0.01, %v1183_v61 }
 0x16f   :  { %v677_v33 = vsel %vm661_vm11, %v768_v59, %v669_v27  ;;  %v671_v48 = vmul.f32 0.01, %v1186_v63  ;;  %vm663_vm15 = vcmp.ge.f32.partialorder %v1186_v63, 0.0 }
 0x171   :  { %v679_v54 = vsel %vm663_vm15, %v1186_v63, %v671_v48 }
 0x17d   :  { %v507_v4 = vpop.f32.mrb[0].mxu0 }
 0x17e   :  { %v755_v5 = vadd.f32 %v507_v4, %v1172_v49  ;;  %v509_v6 = vpop.f32.mrb[1].mxu0 }
 0x17f   :  { %v756_v9 = vadd.f32 %v509_v6, %v1174_v50  ;;  %v511_v10 = vpop.f32.mrb[2].mxu0 }
 0x180   :  { %vm632_vm6 = vcmp.ge.f32.partialorder %v755_v5, 0.0  ;;  %v640_v12 = vmul.f32 0.01, %v755_v5  ;;  %v757_v13 = vadd.f32 %v511_v10, %v1172_v49  ;;  %v513_v14 = vpop.f32.mrb[3].mxu0 }
 0x181   :  { %vm633_vm7 = vcmp.ge.f32.partialorder %v756_v9, 0.0  ;;  %v641_v16 = vmul.f32 0.01, %v756_v9  ;;  %v758_v17 = vadd.f32 %v513_v14, %v1174_v50 }
 0x182   :  { %v648_v19 = vsel %vm632_vm6, %v755_v5, %v640_v12  ;;  %vm634_vm8 = vcmp.ge.f32.partialorder %v757_v13, 0.0  ;;  %v642_v20 = vmul.f32 0.01, %v757_v13 }
 0x183   :  { %v680_v22 = vmax.f32 %v648_v19, %v672_v7  ;;  %v649_v23 = vsel %vm633_vm7, %v756_v9, %v641_v16  ;;  %vm635_vm9 = vcmp.ge.f32.partialorder %v758_v17, 0.0  ;;  %v643_v25 = vmul.f32 0.01, %v758_v17 }
 0x184   :  { %v681_v29 = vmax.f32 %v649_v23, %v673_v8  ;;  %v650_v31 = vsel %vm634_vm8, %v757_v13, %v642_v20 }
 0x185   :  { %688 = vst [vmem:[%s1234_s5] sm:$0xff] %v680_v22  ;;  %v682_v35 = vmax.f32 %v650_v31, %v674_v15  ;;  %v651_v36 = vsel %vm635_vm9, %v758_v17, %v643_v25  ;;  %v517_v24 = vpop.f32.mrb[4].mxu0 }
 0x186   :  { %689 = vst [vmem:[%s1234_s5 + $0x8] sm:$0xff] %v681_v29  ;;  %v683_v26 = vmax.f32 %v651_v36, %v675_v32  ;;  %v759_v38 = vadd.f32 %v517_v24, %v1172_v49  ;;  %v519_v39 = vpop.f32.mrb[5].mxu0 }
 0x187   :  { %690 = vst [vmem:[%s1234_s5 + $0x10] sm:$0xff] %v682_v35  ;;  %v760_v41 = vadd.f32 %v519_v39, %v1174_v50  ;;  %v521_v43 = vpop.f32.mrb[6].mxu0 }
 0x188   :  { %691 = vst [vmem:[%s1234_s5 + $0x18] sm:$0xff] %v683_v26  ;;  %vm636_vm13 = vcmp.ge.f32.partialorder %v759_v38, 0.0  ;;  %v644_v30 = vmul.f32 0.01, %v759_v38  ;;  %v761_v45 = vadd.f32 %v521_v43, %v1172_v49  ;;  %v523_v34 = vpop.f32.mrb[7].mxu0  ;;  %v678_v49 = vsel %vm662_vm12, %v1183_v61, %v670_v42 }
 0x189   :  { %vm637_vm14 = vcmp.ge.f32.partialorder %v760_v41, 0.0  ;;  %v645_v37 = vmul.f32 0.01, %v760_v41  ;;  %v762_v44 = vadd.f32 %v523_v34, %v1174_v50 }
 0x18a   :  { %v652_v46 = vsel %vm636_vm13, %v759_v38, %v644_v30  ;;  %vm638_vm0 = vcmp.ge.f32.partialorder %v761_v45, 0.0  ;;  %v646_v47 = vmul.f32 0.01, %v761_v45 }
 0x18b   :  { %v684_v51 = vmax.f32 %v652_v46, %v676_v40  ;;  %v653_v52 = vsel %vm637_vm14, %v760_v41, %v645_v37  ;;  %vm639_vm1 = vcmp.ge.f32.partialorder %v762_v44, 0.0  ;;  %v647_v28 = vmul.f32 0.01, %v762_v44 }
 0x18c   :  { %v685_v0 = vmax.f32 %v653_v52, %v677_v33  ;;  %v654_v53 = vsel %vm638_vm0, %v761_v45, %v646_v47 }
 0x18d   :  { %692 = vst [vmem:[%s1234_s5 + $0x20] sm:$0xff] %v684_v51  ;;  %v686_v50 = vmax.f32 %v654_v53, %v678_v49  ;;  %v655_v55 = vsel %vm639_vm1, %v762_v44, %v647_v28 }
 0x18e   :  { %693 = vst [vmem:[%s1234_s5 + $0x28] sm:$0xff] %v685_v0  ;;  %v687_v21 = vmax.f32 %v655_v55, %v679_v54 }
 0x18f   :  { %694 = vst [vmem:[%s1234_s5 + $0x30] sm:$0xff] %v686_v50 }
 0x190   :  { %695 = vst [vmem:[%s1234_s5 + $0x38] sm:$0xff] %v687_v21 }

// kernel: eegnet2d_forward.7
= control target key start
LH: loop header
LB: loop body
LE: loop exit
PB: predicated region body
PF: predicated region fallthrough
CT: control target
= control target key end

     0   :  { %10 = vsyncpa [#allocation3], 0  ;;  %s1150_s0 = inlined_call_operand.vmem [shape: f32[128,64], index: 0, kind: input, shape index: {}]   ;;  %s1151_s1 = inlined_call_operand.hbm [shape: bf16[192,128], index: 1, kind: input, shape index: {}]   ;;  %s1152_s2 = inlined_call_operand.vmem [shape: f32[1,128], index: 2, kind: input, shape index: {}]   ;;  %s1153_s3 = inlined_call_operand.hbm [shape: f32[64,1], index: 3, kind: input, shape index: {}]   ;;  %s1154_s4 = inlined_call_operand.hbm [shape: f32[64,1], index: 4, kind: input, shape index: {}]   ;;  %s1155_s5 = inlined_call_operand.vmem [shape: f32[64,128], index: 5, kind: output, shape index: {}]  }
   0x1   :  { %11 = vsyncpa [#allocation5], 0  ;;  %s769_s18 = smov [#allocation4]   ;;  %s699_s22 = scalar_lea.hbm %s1153_s3, 1024 }
   0x2   :  { %s33_s19 = sshll.u32 %s769_s18, 4  ;;  %p700_p0 = scmp.ne.s32.totalorder %s1153_s3, %s699_s22  ;;  %s34_s19 = int_to_ptr.vmem [resolvable:$true] %s33_s19 }
   0x3   :  { %p703_p1 = scmp.lt.u32.totalorder %s699_s22, %s1153_s3 }
   0x5   :  { %p705_p2 = pnand %p703_p1, %p700_p0 }
   0x7   :  { %708 = shalt.err (!%p705_p2)
}
   0x8   :  { %s709_s27 = scalar_lea.vmem %s34_s19, 1024  ;;  %p714_p4 = scmp.lt.s32.totalorder %s34_s19, %s34_s19 }
   0x9   :  { %p710_p3 = scmp.ne.s32.totalorder %s34_s19, %s709_s27  ;;  %p715_p5 = scmp.lt.s32.totalorder %s709_s27, %s709_s27 }
   0xb   :  { %p716_p6 = por %p715_p5, %p714_p4 }
   0xd   :  { %p717_p7 = pnand %p716_p6, %p710_p3 }
   0xf   :  { %720 = shalt.err (!%p717_p7)
}
  0x10   :  { %s770_s28 = smov 128   ;;  %s771_s29 = smov 8  }
  0x11   :  { %39 = dma.hbm_to_vmem [thread:$0]  %s1153_s3, 1024, %s34_s19, [#allocation5], %s770_s28, %s770_s28, %s771_s29  }
  0x12   :  { %s772_s7 = smov [#allocation2]   ;;  %s721_s11 = scalar_lea.hbm %s1151_s1, 1536 }
  0x13   :  { %s19_s8 = sshll.u32 %s772_s7, 4  ;;  %p722_p8 = scmp.ne.s32.totalorder %s1151_s1, %s721_s11  ;;  %s20_s8 = int_to_ptr.vmem [resolvable:$true] %s19_s8 }
  0x14   :  { %p725_p9 = scmp.lt.u32.totalorder %s721_s11, %s1151_s1 }
  0x16   :  { %p727_p10 = pnand %p725_p9, %p722_p8 }
  0x18   :  { %730 = shalt.err (!%p727_p10)
}
  0x19   :  { %s731_s16 = scalar_lea.vmem %s20_s8, 1536  ;;  %p736_p12 = scmp.lt.s32.totalorder %s20_s8, %s20_s8 }
  0x1a   :  { %p732_p11 = scmp.ne.s32.totalorder %s20_s8, %s731_s16  ;;  %p737_p13 = scmp.lt.s32.totalorder %s731_s16, %s731_s16 }
  0x1c   :  { %p738_p0 = por %p737_p13, %p736_p12 }
  0x1e   :  { %p739_p1 = pnand %p738_p0, %p732_p11 }
  0x20   :  { %742 = shalt.err (!%p739_p1)
}
  0x21   :  { %s773_s3 = smov 64   ;;  %s774_s17 = smov 4  }
  0x22   :  { %25 = dma.hbm_to_vmem [thread:$0]  %s1151_s1, 1536, %s20_s8, [#allocation3], %s773_s3, %s773_s3, %s774_s17  }
  0x23   :  { %s775_s20 = smov [#allocation6]   ;;  %s743_s24 = scalar_lea.hbm %s1154_s4, 1024 }
  0x24   :  { %s45_s21 = sshll.u32 %s775_s20, 4  ;;  %p744_p2 = scmp.ne.s32.totalorder %s1154_s4, %s743_s24  ;;  %s46_s21 = int_to_ptr.vmem [resolvable:$true] %s45_s21 }
  0x25   :  { %p747_p3 = scmp.lt.u32.totalorder %s743_s24, %s1154_s4 }
  0x27   :  { %p749_p4 = pnand %p747_p3, %p744_p2 }
  0x29   :  { %752 = shalt.err (!%p749_p4)
}
  0x2a   :  { %s753_s6 = scalar_lea.vmem %s46_s21, 1024  ;;  %p758_p6 = scmp.lt.s32.totalorder %s46_s21, %s46_s21 }
  0x2b   :  { %p754_p5 = scmp.ne.s32.totalorder %s46_s21, %s753_s6  ;;  %p759_p7 = scmp.lt.s32.totalorder %s753_s6, %s753_s6 }
  0x2d   :  { %p760_p8 = por %p759_p7, %p758_p6 }
  0x2f   :  { %p761_p9 = pnand %p760_p8, %p754_p5 }
  0x31   :  { %764 = shalt.err (!%p761_p9)
}
  0x32   :  { %51 = dma.hbm_to_vmem [thread:$0]  %s1154_s4, 1024, %s46_s21, [#allocation5], %s770_s28, %s770_s28, %s771_s29  }
  0x33   :  { %765 = dma.done.wait [#allocation3], 1536  }
  0x34   :  { %766 = vsyncadd [#allocation3], 4294965760 }
  0x35   :  { %767 = dma.done.wait [#allocation5], 2048  }
  0x36   :  { %768 = vsyncadd [#allocation5], 4294965248  ;;  %v776_v0 = vmov 0   ;;  %v101_v1 = vlaneseq  ;;  %v185_v2 = vld [vmem:[#allocation6] sm:$0xff]  ;;  %v186_v5 = vld [vmem:[#allocation6 + $0x8] sm:$0xff]  ;;  %vm294_vm2 = vcmask 523264  }
  0x37   :  { %686 = vset.pattern.permute.xlu1 %v776_v0  ;;  %685 = vset.pattern.permute.xlu0 %v776_v0  ;;  %v112_v3 = vld [vmem:[#allocation4] sm:$0xff]  ;;  %v113_v6 = vld [vmem:[#allocation4 + $0x8] sm:$0xff]  ;;  %v649_v8 = vld [vmem:[%s1150_s0 + $0x11] ss:$2 sm:$0xff] }
  0x38   :  { %429 = vmatprep.subr.bf16.mxu0 %v776_v0  ;;  %506 = vmatprep.subr.bf16.mxu1 %v776_v0  ;;  %v855_v4 = vshrl.u32 %v101_v1, 7  ;;  %v648_v7 = vld [vmem:[%s1150_s0 + $0x1] ss:$2 sm:$0xff]  ;;  %v866_v9 = vld [vmem:[%s1150_s0] ss:$2 sm:$0xff]  ;;  %v94_v10 = vrot.slane %v649_v8, 7 }
  0x39   :  { %195 = vperm.xlu1 %686, %v185_v2   ;;  %122 = vperm.xlu0 %685, %v112_v3   ;;  %v93_v11 = vrot.slane %v648_v7, 7  ;;  %v641_v12 = vld [vmem:[%s1150_s0 + $0x10] ss:$2 sm:$0xff]  ;;  %v168_v13 = vrot.slane %v866_v9, 1  ;;  %v876_v15 = vld [vmem:[%s1150_s0 + $0x21] ss:$2 sm:$0xff]  ;;  %v246_v26 = vpack.c.bf16 %v649_v8, %v648_v7 }
  0x3a   :  { %vm176_vm0 = vcmp.lt.s32.totalorder %v855_v4, 7  ;;  %v169_v14 = vrot.slane %v641_v12, 1  ;;  %v881_v16 = vld [vmem:[%s1150_s0 + $0x31] ss:$2 sm:$0xff]  ;;  %vm103_vm1 = vcmp.lt.s32.totalorder %v855_v4, 1  ;;  %v95_v19 = vrot.slane %v876_v15, 7 }
  0x3b   :  { %v115_v17 = vld [vmem:[#allocation4 + $0x18] sm:$0xff]  ;;  %v114_v18 = vld [vmem:[#allocation4 + $0x10] sm:$0xff]  ;;  %v96_v20 = vrot.slane %v881_v16, 7  ;;  %v889_v21 = vld [vmem:[%s1150_s0 + $0x20] ss:$2 sm:$0xff]  ;;  %v893_v22 = vsel %vm103_vm1, %v93_v11, %v94_v10  ;;  %669 = vmatprep.mubr.msk.bf16.mxu0 %vm294_vm2, %v246_v26  ;;  %v948_v40 = vpack.c.bf16 %v641_v12, %v866_v9  ;;  %v996_v61 = vpack.c.bf16 %v881_v16, %v876_v15 }
  0x3c   :  { %v898_v23 = vld [vmem:[%s1150_s0 + $0x30] ss:$2 sm:$0xff]  ;;  %v170_v24 = vrot.slane %v889_v21, 1  ;;  %v905_v25 = vsel %vm176_vm0, %v168_v13, %v169_v14  ;;  %v914_v29 = vsel %vm103_vm1, %v94_v10, %v95_v19  ;;  %v919_v30 = vld [vmem:[%s1150_s0 + $0x40] ss:$2 sm:$0xff] }
  0x3d   :  { %200 = vperm.xlu1 %686, %v186_v5   ;;  %127 = vperm.xlu0 %685, %v113_v6   ;;  %v171_v27 = vrot.slane %v898_v23, 1  ;;  %v910_v28 = vsel %vm103_vm1, %v95_v19, %v96_v20  ;;  %v188_v32 = vld [vmem:[#allocation6 + $0x18] sm:$0xff]  ;;  %v187_v33 = vld [vmem:[#allocation6 + $0x10] sm:$0xff]  ;;  %v172_v34 = vrot.slane %v919_v30, 1  ;;  %v930_v35 = vld [vmem:[%s1150_s0 + $0x41] ss:$2 sm:$0xff]  ;;  %v1000_v62 = vpack.c.bf16 %v898_v23, %v889_v21 }
  0x3e   :  { %v923_v31 = vsel %vm176_vm0, %v169_v14, %v170_v24  ;;  %v935_v36 = vld [vmem:[%s1150_s0 + $0x71] ss:$2 sm:$0xff]  ;;  %v687_v41 = vld [vmem:[#allocation2] sm:$0xff]   ;;  %v97_v43 = vrot.slane %v930_v35, 7  ;;  %v688_v46 = vld [vmem:[#allocation2 + $0x8] sm:$0xff]  }
  0x3f   :  { %v940_v37 = vld [vmem:[%s1150_s0 + $0x51] ss:$2 sm:$0xff]  ;;  %v100_v38 = vrot.slane %v935_v36, 7  ;;  %v945_v39 = vsel %vm176_vm0, %v171_v27, %v172_v34  ;;  %v952_v42 = vsel %vm176_vm0, %v170_v24, %v171_v27  ;;  %430 = vmatpush1.bf16.msra.mxu0 %v687_v41  ;;  %507 = vmatpush1.bf16.msra.mxu1 %v687_v41  ;;  %v117_v47 = vld [vmem:[#allocation4 + $0x28] sm:$0xff]  ;;  %v116_v48 = vld [vmem:[#allocation4 + $0x20] sm:$0xff] }
  0x40   :  { %v98_v45 = vrot.slane %v940_v37, 7  ;;  %431 = vmatprep.subr.bf16.mxu0 %v776_v0  ;;  %508 = vmatprep.subr.bf16.mxu1 %v776_v0  ;;  %v645_v49 = vld [vmem:[%s1150_s0 + $0x50] ss:$2 sm:$0xff]  ;;  %v971_v50 = vld [vmem:[%s1150_s0 + $0x60] ss:$2 sm:$0xff]  ;;  %v982_v55 = vsel %vm103_vm1, %v96_v20, %v97_v43 }
  0x41   :  { %137 = vperm.xlu1 %686, %v115_v17   ;;  %132 = vperm.xlu0 %685, %v114_v18   ;;  %v957_v44 = vsel %vm103_vm1, %v100_v38, %v93_v11  ;;  %v689_v51 = vld [vmem:[#allocation2 + $0x10] sm:$0xff]   ;;  %v173_v53 = vrot.slane %v645_v49, 1  ;;  %v174_v54 = vrot.slane %v971_v50, 1  ;;  %v190_v56 = vld [vmem:[#allocation6 + $0x28] sm:$0xff]  ;;  %v189_v57 = vld [vmem:[#allocation6 + $0x20] sm:$0xff]  ;;  %v1038_v18 = vpack.c.bf16 %v940_v37, %v930_v35 }
  0x42   :  { %v975_v52 = vsel %vm103_vm1, %v97_v43, %v98_v45  ;;  %v690_v58 = vld [vmem:[#allocation2 + $0x18] sm:$0xff]   ;;  %v654_v63 = vld [vmem:[%s1150_s0 + $0x61] ss:$2 sm:$0xff]  ;;  %v118_v5 = vld [vmem:[#allocation4 + $0x30] sm:$0xff]  ;;  %v1041_v19 = vpack.c.bf16 %v645_v49, %v919_v30 }
  0x43   :  { %432 = vmatpush1.bf16.msra.mxu0 %v688_v46  ;;  %509 = vmatpush1.bf16.msra.mxu1 %v688_v46  ;;  %v988_v59 = vsel %vm176_vm0, %v173_v53, %v174_v54  ;;  %v992_v60 = vsel %vm176_vm0, %v172_v34, %v173_v53  ;;  %v99_v1 = vrot.slane %v654_v63, 7  ;;  %v691_v2 = vld [vmem:[#allocation2 + $0x20] sm:$0xff]   ;;  %v119_v3 = vld [vmem:[#allocation4 + $0x38] sm:$0xff]  ;;  %v692_v7 = vld [vmem:[#allocation2 + $0x28] sm:$0xff]  }
  0x44   :  { %433 = vmatprep.subr.bf16.mxu0 %v776_v0  ;;  %510 = vmatprep.subr.bf16.mxu1 %v776_v0  ;;  %v647_v6 = vld [vmem:[%s1150_s0 + $0x70] ss:$2 sm:$0xff]  ;;  %v695_v20 = vld [vmem:[#allocation2 + $0x40] sm:$0xff]   ;;  %v696_v21 = vld [vmem:[#allocation2 + $0x48] sm:$0xff]  }
  0x45   :  { %210 = vperm.xlu1 %686, %v188_v32   ;;  %205 = vperm.xlu0 %685, %v187_v33   ;;  %v1016_v8 = vsel %vm103_vm1, %v99_v1, %v100_v38  ;;  %v175_v10 = vrot.slane %v647_v6, 1  ;;  %v1022_v11 = vsel %vm103_vm1, %v98_v45, %v99_v1  ;;  %v192_v12 = vld [vmem:[#allocation6 + $0x38] sm:$0xff]  ;;  %v191_v14 = vld [vmem:[#allocation6 + $0x30] sm:$0xff]  ;;  %v1050_v4 = vpack.c.bf16 %v647_v6, %v971_v50 }
  0x46   :  { %v693_v15 = vld [vmem:[#allocation2 + $0x30] sm:$0xff]   ;;  %v694_v9 = vld [vmem:[#allocation2 + $0x38] sm:$0xff]  }
  0x47   :  { %434 = vmatpush1.bf16.msra.mxu0 %v689_v51  ;;  %511 = vmatpush1.bf16.msra.mxu1 %v689_v51  ;;  %v1030_v16 = vsel %vm176_vm0, %v175_v10, %v168_v13  ;;  %v1034_v17 = vsel %vm176_vm0, %v174_v54, %v175_v10  ;;  %v1053_v13 = vpack.c.bf16 %v935_v36, %v654_v63  ;;  %v697_v23 = vld [vmem:[#allocation2 + $0x50] sm:$0xff]   ;;  %v698_v24 = vld [vmem:[#allocation2 + $0x58] sm:$0xff]  }
  0x48   :  { %435 = vmatprep.subr.bf16.mxu0 %v776_v0  ;;  %512 = vmatprep.subr.bf16.mxu1 %v776_v0 }
  0x49   :  { %315 = vrot.lane.b32.xlu1 %v246_v26, %s773_s3  ;;  %286 = vrot.lane.b32.xlu0 %v948_v40, %s773_s3 }
  0x4b   :  { %436 = vmatpush1.bf16.msra.mxu0 %v690_v58  ;;  %513 = vmatpush1.bf16.msra.mxu1 %v690_v58 }
  0x4c   :  { %437 = vmatprep.subr.bf16.mxu0 %v776_v0  ;;  %514 = vmatprep.subr.bf16.mxu1 %v776_v0 }
  0x4d   :  { %147 = vperm.xlu1 %686, %v117_v47   ;;  %142 = vperm.xlu0 %685, %v116_v48  }
  0x4f   :  { %438 = vmatpush1.bf16.msra.mxu0 %v691_v2  ;;  %515 = vmatpush1.bf16.msra.mxu1 %v691_v2 }
  0x50   :  { %439 = vmatprep.subr.bf16.mxu0 %v776_v0  ;;  %516 = vmatprep.subr.bf16.mxu1 %v776_v0 }
  0x51   :  { %220 = vperm.xlu1 %686, %v190_v56   ;;  %215 = vperm.xlu0 %685, %v189_v57  }
  0x53   :  { %440 = vmatpush1.bf16.msra.mxu0 %v692_v7  ;;  %517 = vmatpush1.bf16.msra.mxu1 %v692_v7 }
  0x54   :  { %441 = vmatprep.subr.bf16.mxu0 %v776_v0  ;;  %518 = vmatprep.subr.bf16.mxu1 %v776_v0 }
  0x55   :  { %317 = vrot.lane.b32.xlu1 %v996_v61, %s773_s3  ;;  %288 = vrot.lane.b32.xlu0 %v1000_v62, %s773_s3 }
  0x57   :  { %442 = vmatpush1.bf16.msra.mxu0 %v693_v15  ;;  %519 = vmatpush1.bf16.msra.mxu1 %v693_v15 }
  0x58   :  { %443 = vmatprep.subr.bf16.mxu0 %v776_v0  ;;  %520 = vmatprep.subr.bf16.mxu1 %v776_v0 }
  0x59   :  { %157 = vperm.xlu1 %686, %v119_v3   ;;  %152 = vperm.xlu0 %685, %v118_v5  }
  0x5b   :  { %444 = vmatpush1.bf16.msra.mxu0 %v694_v9  ;;  %521 = vmatpush1.bf16.msra.mxu1 %v694_v9 }
  0x5c   :  { %445 = vmatprep.subr.bf16.mxu0 %v776_v0  ;;  %522 = vmatprep.subr.bf16.mxu1 %v776_v0 }
  0x5d   :  { %230 = vperm.xlu1 %686, %v192_v12   ;;  %225 = vperm.xlu0 %685, %v191_v14  }
  0x5f   :  { %446 = vmatpush1.bf16.msra.mxu0 %v695_v20  ;;  %523 = vmatpush1.bf16.msra.mxu1 %v695_v20 }
  0x60   :  { %447 = vmatprep.subr.bf16.mxu0 %v776_v0  ;;  %524 = vmatprep.subr.bf16.mxu1 %v776_v0 }
  0x61   :  { %319 = vrot.lane.b32.xlu1 %v1038_v18, %s773_s3  ;;  %290 = vrot.lane.b32.xlu0 %v1041_v19, %s773_s3 }
  0x63   :  { %448 = vmatpush1.bf16.msra.mxu0 %v696_v21  ;;  %525 = vmatpush1.bf16.msra.mxu1 %v696_v21 }
  0x64   :  { %449 = vmatprep.subr.bf16.mxu0 %v776_v0  ;;  %526 = vmatprep.subr.bf16.mxu1 %v776_v0 }
  0x65   :  { %292 = vrot.lane.b32.xlu0 %v1050_v4, %s773_s3  ;;  %321 = vrot.lane.b32.xlu1 %v1053_v13, %s773_s3 }
  0x67   :  { %450 = vmatpush1.bf16.msra.mxu0 %v697_v23  ;;  %527 = vmatpush1.bf16.msra.mxu1 %v697_v23 }
  0x68   :  { %451 = vmatprep.subr.bf16.mxu0 %v776_v0  ;;  %528 = vmatprep.subr.bf16.mxu1 %v776_v0 }
  0x6b   :  { %452 = vmatpush1.bf16.msra.mxu0 %v698_v24  ;;  %529 = vmatpush1.bf16.msra.mxu1 %v698_v24 }
  0xb8   :  { %v196_v26 = vpop.permute.xlu1 %195  ;;  %v123_v27 = vpop.permute.xlu0 %122 }
  0xb9   :  { %v233_v33 = vmul.f32 %v196_v26, %v905_v25  ;;  %v160_v34 = vmul.f32 %v123_v27, %v957_v44 }
  0xbc   :  { %v201_v30 = vpop.permute.xlu1 %200  ;;  %v128_v32 = vpop.permute.xlu0 %127 }
  0xbd   :  { %v234_v35 = vmul.f32 %v201_v30, %v923_v31  ;;  %v161_v36 = vmul.f32 %v128_v32, %v893_v22 }
  0xbf   :  { %v250_v37 = vpack.c.bf16 %v161_v36, %v160_v34  ;;  %v254_v38 = vpack.c.bf16 %v234_v35, %v233_v33 }
  0xc0   :  { %v138_v41 = vpop.permute.xlu1 %137  ;;  %v133_v43 = vpop.permute.xlu0 %132 }
  0xc1   :  { %v163_v0 = vmul.f32 %v138_v41, %v910_v28  ;;  %v162_v45 = vmul.f32 %v133_v43, %v914_v29  ;;  %673 = vmatprep.mubr.msk.bf16.mxu1 %vm294_vm2, %v254_v38 }
  0xc3   :  { %v251_v46 = vpack.c.bf16 %v163_v0, %v162_v45 }
  0xc4   :  { %v211_v47 = vpop.permute.xlu1 %210  ;;  %v206_v48 = vpop.permute.xlu0 %205 }
  0xc5   :  { %v236_v25 = vmul.f32 %v211_v47, %v945_v39  ;;  %v235_v44 = vmul.f32 %v206_v48, %v952_v42 }
  0xc7   :  { %v255_v31 = vpack.c.bf16 %v236_v25, %v235_v44 }
  0xc8   :  { %v316_v49 = vpop.permute.xlu1 %315  ;;  %v287_v22 = vpop.permute.xlu0 %286 }
  0xc9   :  { %v297_v50 = vsel %vm294_vm2, %v250_v37, %v287_v22  ;;  %v325_v51 = vsel %vm294_vm2, %v948_v40, %v316_v49 }
  0xca   :  { %462 = vmatmul.mubr.bf16.vlgmr.msra.gmra.mrb[0].mxu0 %v297_v50  ;;  %539 = vmatmul.mubr.bf16.vlgmr.msra.gmra.mrb[0].mxu1 %v325_v51 }
  0xcb   :  { %674 = vmatprep.mubr.msk.bf16.mxu1 %vm294_vm2, %v255_v31  ;;  %670 = vmatprep.mubr.msk.bf16.mxu0 %vm294_vm2, %v996_v61 }
  0xcc   :  { %v148_v28 = vpop.permute.xlu1 %147  ;;  %v143_v29 = vpop.permute.xlu0 %142 }
  0xcd   :  { %v165_v39 = vmul.f32 %v148_v28, %v975_v52  ;;  %v164_v42 = vmul.f32 %v143_v29, %v982_v55 }
  0xcf   :  { %v252_v53 = vpack.c.bf16 %v165_v39, %v164_v42 }
  0xd0   :  { %v221_v54 = vpop.permute.xlu1 %220  ;;  %v216_v56 = vpop.permute.xlu0 %215 }
  0xd1   :  { %v238_v57 = vmul.f32 %v221_v54, %v988_v59  ;;  %v237_v40 = vmul.f32 %v216_v56, %v992_v60 }
  0xd3   :  { %v256_v58 = vpack.c.bf16 %v238_v57, %v237_v40 }
  0xd4   :  { %v318_v63 = vpop.permute.xlu1 %317  ;;  %v289_v1 = vpop.permute.xlu0 %288 }
  0xd5   :  { %v301_v2 = vsel %vm294_vm2, %v251_v46, %v289_v1  ;;  %v329_v61 = vsel %vm294_vm2, %v1000_v62, %v318_v63 }
  0xd6   :  { %470 = vmatmul.mubr.bf16.gmra.mrb[4].mxu0 %v301_v2  ;;  %547 = vmatmul.mubr.bf16.gmra.mrb[4].mxu1 %v329_v61 }
  0xd7   :  { %675 = vmatprep.mubr.msk.bf16.mxu1 %vm294_vm2, %v256_v58  ;;  %671 = vmatprep.mubr.msk.bf16.mxu0 %vm294_vm2, %v1038_v18 }
  0xd8   :  { %v158_v52 = vpop.permute.xlu1 %157  ;;  %v153_v55 = vpop.permute.xlu0 %152 }
  0xd9   :  { %v167_v59 = vmul.f32 %v158_v52, %v1016_v8  ;;  %v166_v60 = vmul.f32 %v153_v55, %v1022_v11 }
  0xdb   :  { %v253_v3 = vpack.c.bf16 %v167_v59, %v166_v60 }
  0xdc   :  { %v231_v5 = vpop.permute.xlu1 %230  ;;  %v226_v6 = vpop.permute.xlu0 %225 }
  0xdd   :  { %v240_v7 = vmul.f32 %v231_v5, %v1030_v16  ;;  %v239_v62 = vmul.f32 %v226_v6, %v1034_v17 }
  0xdf   :  { %v257_v10 = vpack.c.bf16 %v240_v7, %v239_v62 }
  0xe0   :  { %v320_v12 = vpop.permute.xlu1 %319  ;;  %v291_v14 = vpop.permute.xlu0 %290 }
  0xe1   :  { %v305_v15 = vsel %vm294_vm2, %v252_v53, %v291_v14  ;;  %v333_v18 = vsel %vm294_vm2, %v1041_v19, %v320_v12  ;;  %v1108_v19 = vld [vmem:[%s1152_s2] ss:$0 sm:$0xff] }
  0xe2   :  { %478 = vmatmul.mubr.bf16.gmra.mrb[8].mxu0 %v305_v15  ;;  %555 = vmatmul.mubr.bf16.gmra.mrb[8].mxu1 %v333_v18 }
  0xe3   :  { %676 = vmatprep.mubr.msk.bf16.mxu1 %vm294_vm2, %v257_v10  ;;  %672 = vmatprep.mubr.msk.bf16.mxu0 %vm294_vm2, %v1053_v13 }
  0xe4   :  { %v322_v8 = vpop.permute.xlu1 %321  ;;  %v293_v11 = vpop.permute.xlu0 %292 }
  0xe5   :  { %v337_v16 = vsel %vm294_vm2, %v1050_v4, %v322_v8  ;;  %v309_v17 = vsel %vm294_vm2, %v253_v3, %v293_v11 }
  0xea   :  { %486 = vmatmul.mubr.bf16.gmra.mrb[12].mxu0 %v309_v17  ;;  %563 = vmatmul.mubr.bf16.gmra.mrb[12].mxu1 %v337_v16 }
 0x19d   :  { %v463_v9 = vpop.f32.mrb[0].mxu0  ;;  %v540_v20 = vpop.f32.mrb[0].mxu1 }
 0x19e   :  { %v464_v21 = vadd.f32 %v1108_v19, %v463_v9  ;;  %v541_v13 = vadd.f32 %v1108_v19, %v540_v20  ;;  %v465_v23 = vpop.f32.mrb[1].mxu0  ;;  %v542_v24 = vpop.f32.mrb[1].mxu1 }
 0x19f   :  { %v466_v26 = vpop.f32.mrb[2].mxu0  ;;  %v543_v27 = vpop.f32.mrb[2].mxu1 }
 0x1a0   :  { %vm571_vm3 = vcmp.ge.f32.partialorder %v464_v21, 0.0  ;;  %v579_v4 = vmul.f32 0.01, %v464_v21  ;;  %vm595_vm4 = vcmp.ge.f32.partialorder %v541_v13, 0.0  ;;  %v603_v30 = vmul.f32 0.01, %v541_v13 }
 0x1a1   :  { %v467_v32 = vadd.f32 %v1108_v19, %v466_v26  ;;  %v544_v33 = vadd.f32 %v1108_v19, %v543_v27  ;;  %v468_v34 = vpop.f32.mrb[3].mxu0  ;;  %v545_v35 = vpop.f32.mrb[3].mxu1 }
 0x1a2   :  { %v587_v36 = vsel %vm571_vm3, %v464_v21, %v579_v4  ;;  %v611_v37 = vsel %vm595_vm4, %v541_v13, %v603_v30 }
 0x1a3   :  { %v619_v38 = vmax.f32 %v587_v36, %v611_v37  ;;  %vm572_vm5 = vcmp.ge.f32.partialorder %v467_v32, 0.0  ;;  %v580_v41 = vmul.f32 0.01, %v467_v32  ;;  %vm596_vm6 = vcmp.ge.f32.partialorder %v544_v33, 0.0 }
 0x1a4   :  { %v604_v43 = vmul.f32 0.01, %v544_v33 }
 0x1a5   :  { %627 = vst [vmem:[%s1155_s5] sm:$0xff] %v619_v38  ;;  %v588_v0 = vsel %vm572_vm5, %v467_v32, %v580_v41 }
 0x1a6   :  { %v612_v45 = vsel %vm596_vm6, %v544_v33, %v604_v43 }
 0x1a7   :  { %v620_v46 = vmax.f32 %v588_v0, %v612_v45 }
 0x1a9   :  { %628 = vst [vmem:[%s1155_s5 + $0x8] sm:$0xff] %v620_v46  ;;  %v471_v47 = vpop.f32.mrb[4].mxu0  ;;  %v548_v48 = vpop.f32.mrb[4].mxu1 }
 0x1aa   :  { %v472_v25 = vadd.f32 %v1108_v19, %v471_v47  ;;  %v549_v44 = vadd.f32 %v1108_v19, %v548_v48  ;;  %v473_v31 = vpop.f32.mrb[5].mxu0  ;;  %v550_v49 = vpop.f32.mrb[5].mxu1 }
 0x1ab   :  { %v474_v22 = vpop.f32.mrb[6].mxu0  ;;  %v551_v50 = vpop.f32.mrb[6].mxu1 }
 0x1ac   :  { %vm573_vm7 = vcmp.ge.f32.partialorder %v472_v25, 0.0  ;;  %v581_v51 = vmul.f32 0.01, %v472_v25  ;;  %vm597_vm8 = vcmp.ge.f32.partialorder %v549_v44, 0.0  ;;  %v605_v28 = vmul.f32 0.01, %v549_v44 }
 0x1ad   :  { %v475_v29 = vadd.f32 %v1108_v19, %v474_v22  ;;  %v552_v39 = vadd.f32 %v1108_v19, %v551_v50  ;;  %v476_v42 = vpop.f32.mrb[7].mxu0  ;;  %v553_v53 = vpop.f32.mrb[7].mxu1 }
 0x1ae   :  { %v589_v54 = vsel %vm573_vm7, %v472_v25, %v581_v51  ;;  %v613_v56 = vsel %vm597_vm8, %v549_v44, %v605_v28 }
 0x1af   :  { %v621_v57 = vmax.f32 %v589_v54, %v613_v56  ;;  %vm574_vm9 = vcmp.ge.f32.partialorder %v475_v29, 0.0  ;;  %v582_v40 = vmul.f32 0.01, %v475_v29  ;;  %vm598_vm10 = vcmp.ge.f32.partialorder %v552_v39, 0.0 }
 0x1b0   :  { %v606_v58 = vmul.f32 0.01, %v552_v39 }
 0x1b1   :  { %629 = vst [vmem:[%s1155_s5 + $0x10] sm:$0xff] %v621_v57  ;;  %v590_v63 = vsel %vm574_vm9, %v475_v29, %v582_v40 }
 0x1b2   :  { %v614_v1 = vsel %vm598_vm10, %v552_v39, %v606_v58 }
 0x1b3   :  { %v622_v2 = vmax.f32 %v590_v63, %v614_v1 }
 0x1b5   :  { %630 = vst [vmem:[%s1155_s5 + $0x18] sm:$0xff] %v622_v2  ;;  %v479_v61 = vpop.f32.mrb[8].mxu0  ;;  %v556_v52 = vpop.f32.mrb[8].mxu1 }
 0x1b6   :  { %v480_v55 = vadd.f32 %v1108_v19, %v479_v61  ;;  %v557_v59 = vadd.f32 %v1108_v19, %v556_v52  ;;  %v481_v60 = vpop.f32.mrb[9].mxu0  ;;  %v558_v3 = vpop.f32.mrb[9].mxu1 }
 0x1b7   :  { %v482_v5 = vpop.f32.mrb[10].mxu0  ;;  %v559_v6 = vpop.f32.mrb[10].mxu1 }
 0x1b8   :  { %vm575_vm11 = vcmp.ge.f32.partialorder %v480_v55, 0.0  ;;  %v583_v7 = vmul.f32 0.01, %v480_v55  ;;  %vm599_vm12 = vcmp.ge.f32.partialorder %v557_v59, 0.0  ;;  %v607_v62 = vmul.f32 0.01, %v557_v59 }
 0x1b9   :  { %v483_v10 = vadd.f32 %v1108_v19, %v482_v5  ;;  %v560_v12 = vadd.f32 %v1108_v19, %v559_v6  ;;  %v484_v14 = vpop.f32.mrb[11].mxu0  ;;  %v561_v15 = vpop.f32.mrb[11].mxu1 }
 0x1ba   :  { %v591_v18 = vsel %vm575_vm11, %v480_v55, %v583_v7  ;;  %v615_v8 = vsel %vm599_vm12, %v557_v59, %v607_v62 }
 0x1bb   :  { %v623_v11 = vmax.f32 %v591_v18, %v615_v8  ;;  %vm576_vm13 = vcmp.ge.f32.partialorder %v483_v10, 0.0  ;;  %v584_v16 = vmul.f32 0.01, %v483_v10  ;;  %vm600_vm14 = vcmp.ge.f32.partialorder %v560_v12, 0.0 }
 0x1bc   :  { %v608_v17 = vmul.f32 0.01, %v560_v12 }
 0x1bd   :  { %631 = vst [vmem:[%s1155_s5 + $0x20] sm:$0xff] %v623_v11  ;;  %v592_v9 = vsel %vm576_vm13, %v483_v10, %v584_v16  ;;  %v487_v20 = vpop.f32.mrb[12].mxu0  ;;  %v564_v21 = vpop.f32.mrb[12].mxu1 }
 0x1be   :  { %v616_v13 = vsel %vm600_vm14, %v560_v12, %v608_v17  ;;  %v488_v23 = vadd.f32 %v1108_v19, %v487_v20  ;;  %v565_v24 = vadd.f32 %v1108_v19, %v564_v21  ;;  %v489_v26 = vpop.f32.mrb[13].mxu0  ;;  %v566_v27 = vpop.f32.mrb[13].mxu1 }
 0x1bf   :  { %v624_v4 = vmax.f32 %v592_v9, %v616_v13  ;;  %v490_v30 = vpop.f32.mrb[14].mxu0  ;;  %v567_v32 = vpop.f32.mrb[14].mxu1 }
 0x1c0   :  { %vm577_vm15 = vcmp.ge.f32.partialorder %v488_v23, 0.0  ;;  %v585_v33 = vmul.f32 0.01, %v488_v23  ;;  %vm601_vm0 = vcmp.ge.f32.partialorder %v565_v24, 0.0  ;;  %v609_v34 = vmul.f32 0.01, %v565_v24 }
 0x1c1   :  { %632 = vst [vmem:[%s1155_s5 + $0x28] sm:$0xff] %v624_v4  ;;  %v491_v35 = vadd.f32 %v1108_v19, %v490_v30  ;;  %v568_v36 = vadd.f32 %v1108_v19, %v567_v32  ;;  %v492_v37 = vpop.f32.mrb[15].mxu0  ;;  %v569_v38 = vpop.f32.mrb[15].mxu1 }
 0x1c2   :  { %v593_v41 = vsel %vm577_vm15, %v488_v23, %v585_v33  ;;  %v617_v43 = vsel %vm601_vm0, %v565_v24, %v609_v34 }
 0x1c3   :  { %v625_v0 = vmax.f32 %v593_v41, %v617_v43  ;;  %vm578_vm1 = vcmp.ge.f32.partialorder %v491_v35, 0.0  ;;  %v586_v45 = vmul.f32 0.01, %v491_v35  ;;  %vm602_vm2 = vcmp.ge.f32.partialorder %v568_v36, 0.0 }
 0x1c4   :  { %v610_v46 = vmul.f32 0.01, %v568_v36 }
 0x1c5   :  { %633 = vst [vmem:[%s1155_s5 + $0x30] sm:$0xff] %v625_v0  ;;  %v594_v47 = vsel %vm578_vm1, %v491_v35, %v586_v45 }
 0x1c6   :  { %v618_v48 = vsel %vm602_vm2, %v568_v36, %v610_v46 }
 0x1c7   :  { %v626_v25 = vmax.f32 %v594_v47, %v618_v48 }
 0x1c9   :  { %634 = vst [vmem:[%s1155_s5 + $0x38] sm:$0xff] %v626_v25 }
 0x1ca   :  { %639 = vsyncpa [#allocation3], 1 }
 0x1cb   :  { %640 = vsyncpa [#allocation5], 1 }

// kernel: eegnet2d_forward.9
= control target key start
LH: loop header
LB: loop body
LE: loop exit
PB: predicated region body
PF: predicated region fallthrough
CT: control target
= control target key end

     0   :  { %v552_v28 = vlaneseq  ;;  %v4053_v36 = vmov 1966171168   ;;  %s4980_s0 = inlined_call_operand.vmem [shape: bf16[2,4096], index: 0, kind: input, shape index: {}]   ;;  %s4981_s1 = inlined_call_operand.vmem [shape: bf16[4096,128], index: 1, kind: input, shape index: {}]   ;;  %s4982_s2 = inlined_call_operand.vmem [shape: f32[1,128], index: 2, kind: input, shape index: {}]   ;;  %s4983_s3 = inlined_call_operand.vmem [shape: f32[128,10], index: 3, kind: input, shape index: {}]   ;;  %s4984_s4 = inlined_call_operand.vmem [shape: f32[1,10], index: 4, kind: input, shape index: {}]   ;;  %s4985_s5 = inlined_call_operand.hbm [shape: f32[2,10], index: 5, kind: output, shape index: {}]  }
   0x1   :  { %v3769_v0 = vld [vmem:[%s4981_s1 + $0x40] sm:$0xff]   ;;  %v3773_v4 = vld [vmem:[%s4981_s1 + $0x48] sm:$0xff]   ;;  %v3777_v8 = vld [vmem:[%s4981_s1 + $0x50] sm:$0xff]   ;;  %v550_v37 = vunpack.c.l.s4 %v4053_v36 }
   0x2   :  { %v3770_v1 = vld [vmem:[%s4981_s1 + $0xc0] sm:$0xff]   ;;  %3336 = vmatprep.subr.bf16.mxu0 %v3769_v0  ;;  %v3774_v5 = vld [vmem:[%s4981_s1 + $0xc8] sm:$0xff]   ;;  %v3778_v9 = vld [vmem:[%s4981_s1 + $0xd0] sm:$0xff]   ;;  %v553_v33 = vshrl.u32 %v552_v28, 7 }
   0x3   :  { %v3771_v2 = vld [vmem:[%s4981_s1] sm:$0xff]   ;;  %3358 = vmatprep.subr.bf16.mxu1 %v3770_v1  ;;  %v3775_v6 = vld [vmem:[%s4981_s1 + $0x8] sm:$0xff]   ;;  %v3779_v10 = vld [vmem:[%s4981_s1 + $0x10] sm:$0xff]   ;;  %v551_v40 = vunpack.c.0.s8 %v550_v37 }
   0x4   :  { %v3772_v3 = vld [vmem:[%s4981_s1 + $0x80] sm:$0xff]   ;;  %3337 = vmatpush3.bf16.msra.mxu0 %v3771_v2  ;;  %v3776_v7 = vld [vmem:[%s4981_s1 + $0x88] sm:$0xff]   ;;  %v3780_v11 = vld [vmem:[%s4981_s1 + $0x90] sm:$0xff]  }
   0x5   :  { %3359 = vmatpush3.bf16.msra.mxu1 %v3772_v3  ;;  %3338 = vmatprep.subr.bf16.mxu0 %v3773_v4  ;;  %v3781_v12 = vld [vmem:[%s4981_s1 + $0x58] sm:$0xff]   ;;  %v3785_v16 = vld [vmem:[%s4981_s1 + $0x60] sm:$0xff]   ;;  %v3789_v20 = vld [vmem:[%s4981_s1 + $0x68] sm:$0xff]   ;;  %v4193_v41 = vsub.s32 %v551_v40, %v553_v33 }
   0x6   :  { %3360 = vmatprep.subr.bf16.mxu1 %v3774_v5  ;;  %v3782_v13 = vld [vmem:[%s4981_s1 + $0xd8] sm:$0xff]   ;;  %v3786_v17 = vld [vmem:[%s4981_s1 + $0xe0] sm:$0xff]   ;;  %v3790_v21 = vld [vmem:[%s4981_s1 + $0xe8] sm:$0xff]  }
   0x7   :  { %v3783_v14 = vld [vmem:[%s4981_s1 + $0x18] sm:$0xff]   ;;  %v3787_v18 = vld [vmem:[%s4981_s1 + $0x20] sm:$0xff]   ;;  %v3791_v22 = vld [vmem:[%s4981_s1 + $0x28] sm:$0xff]  }
   0x8   :  { %3339 = vmatpush3.bf16.msra.mxu0 %v3775_v6  ;;  %v3784_v15 = vld [vmem:[%s4981_s1 + $0x98] sm:$0xff]   ;;  %v3788_v19 = vld [vmem:[%s4981_s1 + $0xa0] sm:$0xff]   ;;  %v3792_v23 = vld [vmem:[%s4981_s1 + $0xa8] sm:$0xff]  }
   0x9   :  { %3361 = vmatpush3.bf16.msra.mxu1 %v3776_v7  ;;  %3340 = vmatprep.subr.bf16.mxu0 %v3777_v8  ;;  %v3793_v24 = vld [vmem:[%s4981_s1 + $0x70] sm:$0xff]   ;;  %v3797_v29 = vld [vmem:[%s4981_s1 + $0x78] sm:$0xff]   ;;  %v28_v34 = vld [vmem:[%s4980_s0] sm:$0xff] }
   0xa   :  { %3362 = vmatprep.subr.bf16.mxu1 %v3778_v9  ;;  %v3794_v25 = vld [vmem:[%s4981_s1 + $0xf0] sm:$0xff]   ;;  %v3798_v30 = vld [vmem:[%s4981_s1 + $0xf8] sm:$0xff]   ;;  %v3802_v35 = vld [vmem:[%s4981_s1 + $0x140] sm:$0xff]   ;;  %v548_v39 = vcombine.high %v28_v34, %v28_v34  ;;  %v555_v42 = vrot.slane %v28_v34, %v4193_v41 }
   0xb   :  { %v3795_v26 = vld [vmem:[%s4981_s1 + $0x30] sm:$0xff]   ;;  %v3799_v31 = vld [vmem:[%s4981_s1 + $0x38] sm:$0xff]   ;;  %v3803_v38 = vld [vmem:[%s4981_s1 + $0x1c0] sm:$0xff]  }
   0xc   :  { %3341 = vmatpush3.bf16.msra.mxu0 %v3779_v10  ;;  %v3796_v27 = vld [vmem:[%s4981_s1 + $0xb0] sm:$0xff]   ;;  %v3800_v32 = vld [vmem:[%s4981_s1 + $0xb8] sm:$0xff]   ;;  %v4197_v43 = vrot.slane %v548_v39, %v4193_v41  ;;  %v563_v44 = vcombine.high %v555_v42, %v555_v42  ;;  %v571_v45 = vrot.slane %v555_v42, %v4193_v41  ;;  %v3804_v47 = vld [vmem:[%s4981_s1 + $0x100] sm:$0xff]  }
   0xd   :  { %3363 = vmatpush3.bf16.msra.mxu1 %v3780_v11  ;;  %3342 = vmatprep.subr.bf16.mxu0 %v3781_v12  ;;  %v3805_v49 = vld [vmem:[%s4981_s1 + $0x180] sm:$0xff]   ;;  %v3806_v52 = vld [vmem:[%s4981_s1 + $0x148] sm:$0xff]   ;;  %v3810_v58 = vld [vmem:[%s4981_s1 + $0x150] sm:$0xff]  }
   0xe   :  { %3364 = vmatprep.subr.bf16.mxu1 %v3782_v13  ;;  %v564_v46 = vcombine.high %v4197_v43, %v4197_v43  ;;  %v585_v48 = vrot.slane %v563_v44, %v4193_v41  ;;  %v593_v51 = vcombine.high %v571_v45, %v571_v45  ;;  %v3807_v54 = vld [vmem:[%s4981_s1 + $0x1c8] sm:$0xff]   ;;  %v3811_v59 = vld [vmem:[%s4981_s1 + $0x1d0] sm:$0xff]   ;;  %v3814_v62 = vld [vmem:[%s4981_s1 + $0x158] sm:$0xff]  }
   0xf   :  { %v3808_v55 = vld [vmem:[%s4981_s1 + $0x108] sm:$0xff]   ;;  %v3812_v60 = vld [vmem:[%s4981_s1 + $0x110] sm:$0xff]   ;;  %v3815_v63 = vld [vmem:[%s4981_s1 + $0x1d8] sm:$0xff]  }
  0x10   :  { %3343 = vmatpush3.bf16.msra.mxu0 %v3783_v14  ;;  %v592_v50 = vrot.slane %v564_v46, %v4193_v41  ;;  %2344 = vmatprep.mubr.bf16.mxu0 %v585_v48  ;;  %v595_v53 = vcombine.high %v585_v48, %v585_v48  ;;  %v3809_v57 = vld [vmem:[%s4981_s1 + $0x188] sm:$0xff]   ;;  %v3813_v61 = vld [vmem:[%s4981_s1 + $0x190] sm:$0xff]   ;;  %v3816_v0 = vld [vmem:[%s4981_s1 + $0x118] sm:$0xff]  }
  0x11   :  { %3365 = vmatpush3.bf16.msra.mxu1 %v3784_v15  ;;  %3344 = vmatprep.subr.bf16.mxu0 %v3785_v16  ;;  %v3817_v1 = vld [vmem:[%s4981_s1 + $0x198] sm:$0xff]   ;;  %v3818_v2 = vld [vmem:[%s4981_s1 + $0x160] sm:$0xff]   ;;  %v3822_v6 = vld [vmem:[%s4981_s1 + $0x168] sm:$0xff]  }
  0x12   :  { %3366 = vmatprep.subr.bf16.mxu1 %v3786_v17  ;;  %v596_v56 = vcombine.high %v592_v50, %v592_v50  ;;  %2384 = vmatprep.mubr.bf16.mxu1 %v595_v53  ;;  %v3819_v3 = vld [vmem:[%s4981_s1 + $0x1e0] sm:$0xff]   ;;  %v3823_v7 = vld [vmem:[%s4981_s1 + $0x1e8] sm:$0xff]   ;;  %v3826_v10 = vld [vmem:[%s4981_s1 + $0x170] sm:$0xff]  }
  0x13   :  { %v3820_v4 = vld [vmem:[%s4981_s1 + $0x120] sm:$0xff]   ;;  %v3824_v8 = vld [vmem:[%s4981_s1 + $0x128] sm:$0xff]   ;;  %v3827_v11 = vld [vmem:[%s4981_s1 + $0x1f0] sm:$0xff]  }
  0x14   :  { %3345 = vmatpush3.bf16.msra.mxu0 %v3787_v18  ;;  %v3821_v5 = vld [vmem:[%s4981_s1 + $0x1a0] sm:$0xff]   ;;  %v3825_v9 = vld [vmem:[%s4981_s1 + $0x1a8] sm:$0xff]   ;;  %v3828_v12 = vld [vmem:[%s4981_s1 + $0x130] sm:$0xff]   ;;  %v578_v18 = vrot.slane %v4197_v43, %v4193_v41 }
  0x15   :  { %3367 = vmatpush3.bf16.msra.mxu1 %v3788_v19  ;;  %3346 = vmatprep.subr.bf16.mxu0 %v3789_v20  ;;  %v3829_v13 = vld [vmem:[%s4981_s1 + $0x1b0] sm:$0xff]   ;;  %v3830_v14 = vld [vmem:[%s4981_s1 + $0x178] sm:$0xff]   ;;  %v3834_v19 = vld [vmem:[%s4981_s1 + $0x240] sm:$0xff]  }
  0x16   :  { %3368 = vmatprep.subr.bf16.mxu1 %v3790_v21  ;;  %v3831_v15 = vld [vmem:[%s4981_s1 + $0x1f8] sm:$0xff]   ;;  %v3835_v20 = vld [vmem:[%s4981_s1 + $0x2c0] sm:$0xff]   ;;  %v3842_v28 = vld [vmem:[%s4981_s1 + $0x250] sm:$0xff]  }
  0x17   :  { %v3832_v16 = vld [vmem:[%s4981_s1 + $0x138] sm:$0xff]   ;;  %v3836_v21 = vld [vmem:[%s4981_s1 + $0x200] sm:$0xff]   ;;  %v3854_v40 = vld [vmem:[%s4981_s1 + $0x268] sm:$0xff]  }
  0x18   :  { %3347 = vmatpush3.bf16.msra.mxu0 %v3791_v22  ;;  %v3833_v17 = vld [vmem:[%s4981_s1 + $0x1b8] sm:$0xff]   ;;  %v3837_v22 = vld [vmem:[%s4981_s1 + $0x280] sm:$0xff]   ;;  %v3855_v42 = vld [vmem:[%s4981_s1 + $0x2e8] sm:$0xff]  }
  0x19   :  { %3369 = vmatpush3.bf16.msra.mxu1 %v3792_v23  ;;  %3348 = vmatprep.subr.bf16.mxu0 %v3793_v24  ;;  %v594_v23 = vcombine.high %v578_v18, %v578_v18  ;;  %v3838_v24 = vld [vmem:[%s4981_s1 + $0x248] sm:$0xff]   ;;  %v3847_v33 = vld [vmem:[%s4981_s1 + $0x2d8] sm:$0xff]   ;;  %v3850_v36 = vld [vmem:[%s4981_s1 + $0x260] sm:$0xff]  }
  0x1a   :  { %3370 = vmatprep.subr.bf16.mxu1 %v3794_v25  ;;  %v3839_v25 = vld [vmem:[%s4981_s1 + $0x2c8] sm:$0xff]   ;;  %v3848_v34 = vld [vmem:[%s4981_s1 + $0x218] sm:$0xff]   ;;  %v3851_v37 = vld [vmem:[%s4981_s1 + $0x2e0] sm:$0xff]  }
  0x1b   :  { %v3853_v39 = vld [vmem:[%s4981_s1 + $0x2a0] sm:$0xff]   ;;  %v3856_v43 = vld [vmem:[%s4981_s1 + $0x228] sm:$0xff]  }
  0x1c   :  { %3349 = vmatpush3.bf16.msra.mxu0 %v3795_v26  ;;  %v3840_v26 = vld [vmem:[%s4981_s1 + $0x208] sm:$0xff]  }
  0x1d   :  { %3371 = vmatpush3.bf16.msra.mxu1 %v3796_v27  ;;  %3350 = vmatprep.subr.bf16.mxu0 %v3797_v29  ;;  %v3841_v27 = vld [vmem:[%s4981_s1 + $0x288] sm:$0xff]   ;;  %v3843_v29 = vld [vmem:[%s4981_s1 + $0x2d0] sm:$0xff]  }
  0x1e   :  { %3372 = vmatprep.subr.bf16.mxu1 %v3798_v30  ;;  %v3844_v30 = vld [vmem:[%s4981_s1 + $0x210] sm:$0xff]   ;;  %v3857_v44 = vld [vmem:[%s4981_s1 + $0x2a8] sm:$0xff]  }
  0x1f   :  { %v29_v46 = vld [vmem:[%s4980_s0 + $0x8] sm:$0xff] }
  0x20   :  { %3351 = vmatpush3.bf16.msra.mxu0 %v3799_v31  ;;  %v3845_v31 = vld [vmem:[%s4981_s1 + $0x290] sm:$0xff]   ;;  %v604_v48 = vrot.slane %v29_v46, %v4193_v41 }
  0x21   :  { %3373 = vmatpush3.bf16.msra.mxu1 %v3800_v32  ;;  %3380 = vmatprep.subr.bf16.mxu0 %v3802_v35  ;;  %v3846_v32 = vld [vmem:[%s4981_s1 + $0x258] sm:$0xff]  }
  0x22   :  { %3402 = vmatprep.subr.bf16.mxu1 %v3803_v38  ;;  %v3849_v35 = vld [vmem:[%s4981_s1 + $0x298] sm:$0xff]   ;;  %v3852_v38 = vld [vmem:[%s4981_s1 + $0x220] sm:$0xff]  }
  0x23   :  { %2345 = vmatmul.mubr.bf16.vlgmr.msra.gmra.mrb[0].mxu0 %v571_v45  ;;  %v3858_v45 = vld [vmem:[%s4981_s1 + $0x270] sm:$0xff]  }
  0x24   :  { %3381 = vmatpush3.bf16.msra.mxu0 %v3804_v47  ;;  %2385 = vmatmul.mubr.bf16.vlgmr.msra.gmra.mrb[0].mxu1 %v593_v51  ;;  %v3859_v47 = vld [vmem:[%s4981_s1 + $0x2f0] sm:$0xff]  }
  0x25   :  { %3382 = vmatprep.subr.bf16.mxu0 %v3806_v52  ;;  %3403 = vmatpush3.bf16.msra.mxu1 %v3805_v49  ;;  %v597_v49 = vcombine.high %v29_v46, %v29_v46  ;;  %v3861_v51 = vld [vmem:[%s4981_s1 + $0x2b0] sm:$0xff]   ;;  %v612_v52 = vcombine.high %v604_v48, %v604_v48 }
  0x26   :  { %2424 = vmatprep.mubr.bf16.mxu0 %v592_v50  ;;  %3404 = vmatprep.subr.bf16.mxu1 %v3807_v54  ;;  %v3860_v50 = vld [vmem:[%s4981_s1 + $0x230] sm:$0xff]   ;;  %v3862_v54 = vld [vmem:[%s4981_s1 + $0x278] sm:$0xff]  }
  0x27   :  { %2464 = vmatprep.mubr.bf16.mxu1 %v596_v56  ;;  %v4385_v53 = vrot.slane %v597_v49, %v4193_v41  ;;  %v634_v56 = vrot.slane %v612_v52, %v4193_v41  ;;  %v3909_v46 = vld [vmem:[%s4981_s1 + $0x410] sm:$0xff]   ;;  %v3912_v49 = vld [vmem:[%s4981_s1 + $0x4d8] sm:$0xff]   ;;  %v3915_v52 = vld [vmem:[%s4981_s1 + $0x460] sm:$0xff]  }
  0x28   :  { %3383 = vmatpush3.bf16.msra.mxu0 %v3808_v55  ;;  %v3863_v55 = vld [vmem:[%s4981_s1 + $0x2f8] sm:$0xff]  }
  0x29   :  { %3384 = vmatprep.subr.bf16.mxu0 %v3810_v58  ;;  %3405 = vmatpush3.bf16.msra.mxu1 %v3809_v57  ;;  %v613_v57 = vcombine.high %v4385_v53, %v4385_v53  ;;  %v3864_v58 = vld [vmem:[%s4981_s1 + $0x238] sm:$0xff]  }
  0x2a   :  { %3406 = vmatprep.subr.bf16.mxu1 %v3811_v59  ;;  %v3865_v59 = vld [vmem:[%s4981_s1 + $0x2b8] sm:$0xff]  }
  0x2c   :  { %3385 = vmatpush3.bf16.msra.mxu0 %v3812_v60  ;;  %v644_v60 = vcombine.high %v634_v56, %v634_v56 }
  0x2d   :  { %3386 = vmatprep.subr.bf16.mxu0 %v3814_v62  ;;  %3407 = vmatpush3.bf16.msra.mxu1 %v3813_v61  ;;  %v620_v61 = vrot.slane %v604_v48, %v4193_v41  ;;  %v3866_v62 = vld [vmem:[%s4981_s1 + $0x340] sm:$0xff]   ;;  %v3911_v48 = vld [vmem:[%s4981_s1 + $0x458] sm:$0xff]  }
  0x2e   :  { %3408 = vmatprep.subr.bf16.mxu1 %v3815_v63  ;;  %v3867_v63 = vld [vmem:[%s4981_s1 + $0x3c0] sm:$0xff]  }
  0x30   :  { %3387 = vmatpush3.bf16.msra.mxu0 %v3816_v0  ;;  %v641_v0 = vrot.slane %v613_v57, %v4193_v41  ;;  %v3920_v57 = vld [vmem:[%s4981_s1 + $0x4e8] sm:$0xff]  }
  0x31   :  { %3388 = vmatprep.subr.bf16.mxu0 %v3818_v2  ;;  %3409 = vmatpush3.bf16.msra.mxu1 %v3817_v1  ;;  %v3868_v1 = vld [vmem:[%s4981_s1 + $0x300] sm:$0xff]  }
  0x32   :  { %3410 = vmatprep.subr.bf16.mxu1 %v3819_v3  ;;  %v3869_v2 = vld [vmem:[%s4981_s1 + $0x380] sm:$0xff]   ;;  %v642_v3 = vcombine.high %v620_v61, %v620_v61 }
  0x34   :  { %3389 = vmatpush3.bf16.msra.mxu0 %v3820_v4  ;;  %v3870_v4 = vld [vmem:[%s4981_s1 + $0x348] sm:$0xff]  }
  0x35   :  { %3390 = vmatprep.subr.bf16.mxu0 %v3822_v6  ;;  %3411 = vmatpush3.bf16.msra.mxu1 %v3821_v5  ;;  %v3871_v5 = vld [vmem:[%s4981_s1 + $0x3c8] sm:$0xff]   ;;  %v645_v6 = vcombine.high %v641_v0, %v641_v0 }
  0x36   :  { %3412 = vmatprep.subr.bf16.mxu1 %v3823_v7  ;;  %v3872_v7 = vld [vmem:[%s4981_s1 + $0x308] sm:$0xff]  }
  0x38   :  { %3391 = vmatpush3.bf16.msra.mxu0 %v3824_v8  ;;  %v3873_v8 = vld [vmem:[%s4981_s1 + $0x388] sm:$0xff]  }
  0x39   :  { %3392 = vmatprep.subr.bf16.mxu0 %v3826_v10  ;;  %3413 = vmatpush3.bf16.msra.mxu1 %v3825_v9  ;;  %v3874_v9 = vld [vmem:[%s4981_s1 + $0x350] sm:$0xff]  }
  0x3a   :  { %3414 = vmatprep.subr.bf16.mxu1 %v3827_v11  ;;  %v3875_v10 = vld [vmem:[%s4981_s1 + $0x3d0] sm:$0xff]  }
  0x3b   :  { %v3876_v11 = vld [vmem:[%s4981_s1 + $0x310] sm:$0xff]  }
  0x3c   :  { %3393 = vmatpush3.bf16.msra.mxu0 %v3828_v12  ;;  %v3877_v12 = vld [vmem:[%s4981_s1 + $0x390] sm:$0xff]  }
  0x3d   :  { %3394 = vmatprep.subr.bf16.mxu0 %v3830_v14  ;;  %3415 = vmatpush3.bf16.msra.mxu1 %v3829_v13  ;;  %v3878_v13 = vld [vmem:[%s4981_s1 + $0x358] sm:$0xff]  }
  0x3e   :  { %3416 = vmatprep.subr.bf16.mxu1 %v3831_v15  ;;  %v3879_v14 = vld [vmem:[%s4981_s1 + $0x3d8] sm:$0xff]  }
  0x3f   :  { %v3880_v15 = vld [vmem:[%s4981_s1 + $0x318] sm:$0xff]  }
  0x40   :  { %3395 = vmatpush3.bf16.msra.mxu0 %v3832_v16  ;;  %v3881_v16 = vld [vmem:[%s4981_s1 + $0x398] sm:$0xff]  }
  0x41   :  { %3424 = vmatprep.subr.bf16.mxu0 %v3834_v19  ;;  %3417 = vmatpush3.bf16.msra.mxu1 %v3833_v17  ;;  %v3882_v17 = vld [vmem:[%s4981_s1 + $0x360] sm:$0xff]  }
  0x42   :  { %3446 = vmatprep.subr.bf16.mxu1 %v3835_v20  ;;  %v3884_v19 = vld [vmem:[%s4981_s1 + $0x320] sm:$0xff]  }
  0x43   :  { %2425 = vmatmul.mubr.bf16.vlgmr.msra.gmra.mrb[4].mxu0 %v578_v18  ;;  %v3883_v18 = vld [vmem:[%s4981_s1 + $0x3e0] sm:$0xff]  }
  0x44   :  { %3425 = vmatpush3.bf16.msra.mxu0 %v3836_v21  ;;  %2465 = vmatmul.mubr.bf16.vlgmr.msra.gmra.mrb[4].mxu1 %v594_v23  ;;  %v3885_v20 = vld [vmem:[%s4981_s1 + $0x3a0] sm:$0xff]   ;;  %v3886_v21 = vld [vmem:[%s4981_s1 + $0x368] sm:$0xff]  }
  0x45   :  { %3426 = vmatprep.subr.bf16.mxu0 %v3838_v24  ;;  %3447 = vmatpush3.bf16.msra.mxu1 %v3837_v22  ;;  %v3887_v22 = vld [vmem:[%s4981_s1 + $0x3e8] sm:$0xff]  }
  0x46   :  { %3448 = vmatprep.subr.bf16.mxu1 %v3839_v25  ;;  %2504 = vmatprep.mubr.bf16.mxu0 %v634_v56  ;;  %v3888_v23 = vld [vmem:[%s4981_s1 + $0x328] sm:$0xff]   ;;  %v3890_v25 = vld [vmem:[%s4981_s1 + $0x370] sm:$0xff]  }
  0x47   :  { %2544 = vmatprep.mubr.bf16.mxu1 %v644_v60  ;;  %v3889_v24 = vld [vmem:[%s4981_s1 + $0x3a8] sm:$0xff]   ;;  %v3923_v60 = vld [vmem:[%s4981_s1 + $0x470] sm:$0xff]  }
  0x48   :  { %3427 = vmatpush3.bf16.msra.mxu0 %v3840_v26  ;;  %v3891_v26 = vld [vmem:[%s4981_s1 + $0x3f0] sm:$0xff]   ;;  %v3919_v56 = vld [vmem:[%s4981_s1 + $0x468] sm:$0xff]  }
  0x49   :  { %3428 = vmatprep.subr.bf16.mxu0 %v3842_v28  ;;  %3449 = vmatpush3.bf16.msra.mxu1 %v3841_v27  ;;  %v3892_v27 = vld [vmem:[%s4981_s1 + $0x330] sm:$0xff]  }
  0x4a   :  { %3450 = vmatprep.subr.bf16.mxu1 %v3843_v29  ;;  %v3893_v28 = vld [vmem:[%s4981_s1 + $0x3b0] sm:$0xff]   ;;  %v3894_v29 = vld [vmem:[%s4981_s1 + $0x378] sm:$0xff]  }
  0x4c   :  { %3429 = vmatpush3.bf16.msra.mxu0 %v3844_v30  ;;  %v3895_v30 = vld [vmem:[%s4981_s1 + $0x3f8] sm:$0xff]  }
  0x4d   :  { %3430 = vmatprep.subr.bf16.mxu0 %v3846_v32  ;;  %3451 = vmatpush3.bf16.msra.mxu1 %v3845_v31  ;;  %v3896_v31 = vld [vmem:[%s4981_s1 + $0x338] sm:$0xff]  }
  0x4e   :  { %3452 = vmatprep.subr.bf16.mxu1 %v3847_v33  ;;  %v3897_v32 = vld [vmem:[%s4981_s1 + $0x3b8] sm:$0xff]   ;;  %v627_v33 = vrot.slane %v4385_v53, %v4193_v41  ;;  %v3916_v53 = vld [vmem:[%s4981_s1 + $0x4e0] sm:$0xff]  }
  0x50   :  { %3431 = vmatpush3.bf16.msra.mxu0 %v3848_v34  ;;  %v3899_v34 = vld [vmem:[%s4981_s1 + $0x440] sm:$0xff]  }
  0x51   :  { %3432 = vmatprep.subr.bf16.mxu0 %v3850_v36  ;;  %3453 = vmatpush3.bf16.msra.mxu1 %v3849_v35  ;;  %v3900_v35 = vld [vmem:[%s4981_s1 + $0x4c0] sm:$0xff]  }
  0x52   :  { %3454 = vmatprep.subr.bf16.mxu1 %v3851_v37  ;;  %v3901_v36 = vld [vmem:[%s4981_s1 + $0x400] sm:$0xff]  }
  0x53   :  { %v3902_v37 = vld [vmem:[%s4981_s1 + $0x480] sm:$0xff]  }
  0x54   :  { %3433 = vmatpush3.bf16.msra.mxu0 %v3852_v38  ;;  %v643_v38 = vcombine.high %v627_v33, %v627_v33 }
  0x55   :  { %3434 = vmatprep.subr.bf16.mxu0 %v3854_v40  ;;  %3455 = vmatpush3.bf16.msra.mxu1 %v3853_v39  ;;  %v3903_v39 = vld [vmem:[%s4981_s1 + $0x448] sm:$0xff]  }
  0x56   :  { %3456 = vmatprep.subr.bf16.mxu1 %v3855_v42  ;;  %v3904_v40 = vld [vmem:[%s4981_s1 + $0x4c8] sm:$0xff]  }
  0x57   :  { %v3905_v42 = vld [vmem:[%s4981_s1 + $0x408] sm:$0xff]  }
  0x58   :  { %3435 = vmatpush3.bf16.msra.mxu0 %v3856_v43  ;;  %v3906_v43 = vld [vmem:[%s4981_s1 + $0x488] sm:$0xff]  }
  0x59   :  { %3436 = vmatprep.subr.bf16.mxu0 %v3858_v45  ;;  %3457 = vmatpush3.bf16.msra.mxu1 %v3857_v44  ;;  %v3907_v44 = vld [vmem:[%s4981_s1 + $0x450] sm:$0xff]  }
  0x5a   :  { %3458 = vmatprep.subr.bf16.mxu1 %v3859_v47  ;;  %v3908_v45 = vld [vmem:[%s4981_s1 + $0x4d0] sm:$0xff]  }
  0x5b   :  { %v3910_v47 = vld [vmem:[%s4981_s1 + $0x490] sm:$0xff]  }
  0x5c   :  { %3437 = vmatpush3.bf16.msra.mxu0 %v3860_v50  ;;  %v3913_v50 = vld [vmem:[%s4981_s1 + $0x418] sm:$0xff]  }
  0x5d   :  { %3438 = vmatprep.subr.bf16.mxu0 %v3862_v54  ;;  %3459 = vmatpush3.bf16.msra.mxu1 %v3861_v51  ;;  %v3914_v51 = vld [vmem:[%s4981_s1 + $0x498] sm:$0xff]   ;;  %v3917_v54 = vld [vmem:[%s4981_s1 + $0x420] sm:$0xff]  }
  0x5e   :  { %3460 = vmatprep.subr.bf16.mxu1 %v3863_v55  ;;  %v3918_v55 = vld [vmem:[%s4981_s1 + $0x4a0] sm:$0xff]  }
  0x60   :  { %3439 = vmatpush3.bf16.msra.mxu0 %v3864_v58  ;;  %v3921_v58 = vld [vmem:[%s4981_s1 + $0x428] sm:$0xff]  }
  0x61   :  { %3468 = vmatprep.subr.bf16.mxu0 %v3866_v62  ;;  %3461 = vmatpush3.bf16.msra.mxu1 %v3865_v59  ;;  %v3922_v59 = vld [vmem:[%s4981_s1 + $0x4a8] sm:$0xff]   ;;  %v3924_v62 = vld [vmem:[%s4981_s1 + $0x4f0] sm:$0xff]  }
  0x62   :  { %3490 = vmatprep.subr.bf16.mxu1 %v3867_v63 }
  0x63   :  { %2505 = vmatmul.mubr.bf16.vlgmr.msra.gmra.mrb[8].mxu0 %v620_v61  ;;  %v30_v61 = vld [vmem:[%s4980_s0 + $0x10] sm:$0xff] }
  0x64   :  { %3469 = vmatpush3.bf16.msra.mxu0 %v3868_v1  ;;  %2584 = vmatprep.mubr.bf16.mxu0 %v641_v0  ;;  %v653_v63 = vrot.slane %v30_v61, %v4193_v41  ;;  %v646_v0 = vcombine.high %v30_v61, %v30_v61  ;;  %v3925_v1 = vld [vmem:[%s4981_s1 + $0x430] sm:$0xff]  }
  0x65   :  { %2545 = vmatmul.mubr.bf16.vlgmr.msra.gmra.mrb[8].mxu1 %v642_v3  ;;  %3470 = vmatprep.subr.bf16.mxu0 %v3870_v4  ;;  %v3974_v61 = vld [vmem:[%s4981_s1 + $0x610] sm:$0xff]  }
  0x66   :  { %3491 = vmatpush3.bf16.msra.mxu1 %v3869_v2  ;;  %2624 = vmatprep.mubr.bf16.mxu1 %v645_v6  ;;  %v3926_v2 = vld [vmem:[%s4981_s1 + $0x4b0] sm:$0xff]   ;;  %v661_v3 = vcombine.high %v653_v63, %v653_v63  ;;  %v4591_v4 = vrot.slane %v646_v0, %v4193_v41  ;;  %v3928_v6 = vld [vmem:[%s4981_s1 + $0x4f8] sm:$0xff]  }
  0x67   :  { %3492 = vmatprep.subr.bf16.mxu1 %v3871_v5  ;;  %v3927_v5 = vld [vmem:[%s4981_s1 + $0x478] sm:$0xff]  }
  0x68   :  { %3471 = vmatpush3.bf16.msra.mxu0 %v3872_v7  ;;  %v683_v7 = vrot.slane %v661_v3, %v4193_v41  ;;  %v3977_v0 = vld [vmem:[%s4981_s1 + $0x6d8] sm:$0xff]   ;;  %v3980_v3 = vld [vmem:[%s4981_s1 + $0x660] sm:$0xff]  }
  0x69   :  { %3472 = vmatprep.subr.bf16.mxu0 %v3874_v9  ;;  %v3929_v9 = vld [vmem:[%s4981_s1 + $0x438] sm:$0xff]  }
  0x6a   :  { %3493 = vmatpush3.bf16.msra.mxu1 %v3873_v8  ;;  %v662_v8 = vcombine.high %v4591_v4, %v4591_v4 }
  0x6b   :  { %3494 = vmatprep.subr.bf16.mxu1 %v3875_v10  ;;  %v3930_v10 = vld [vmem:[%s4981_s1 + $0x4b8] sm:$0xff]  }
  0x6c   :  { %3473 = vmatpush3.bf16.msra.mxu0 %v3876_v11  ;;  %v693_v11 = vcombine.high %v683_v7, %v683_v7 }
  0x6d   :  { %3474 = vmatprep.subr.bf16.mxu0 %v3878_v13  ;;  %v3931_v13 = vld [vmem:[%s4981_s1 + $0x540] sm:$0xff]  }
  0x6e   :  { %3495 = vmatpush3.bf16.msra.mxu1 %v3877_v12  ;;  %v669_v12 = vrot.slane %v653_v63, %v4193_v41  ;;  %v3976_v63 = vld [vmem:[%s4981_s1 + $0x658] sm:$0xff]  }
  0x6f   :  { %3496 = vmatprep.subr.bf16.mxu1 %v3879_v14  ;;  %v3932_v14 = vld [vmem:[%s4981_s1 + $0x5c0] sm:$0xff]  }
  0x70   :  { %3475 = vmatpush3.bf16.msra.mxu0 %v3880_v15  ;;  %v690_v15 = vrot.slane %v662_v8, %v4193_v41  ;;  %v3985_v8 = vld [vmem:[%s4981_s1 + $0x6e8] sm:$0xff]  }
  0x71   :  { %3476 = vmatprep.subr.bf16.mxu0 %v3882_v17  ;;  %v3934_v17 = vld [vmem:[%s4981_s1 + $0x580] sm:$0xff]  }
  0x72   :  { %3497 = vmatpush3.bf16.msra.mxu1 %v3881_v16  ;;  %v3933_v16 = vld [vmem:[%s4981_s1 + $0x500] sm:$0xff]  }
  0x73   :  { %3498 = vmatprep.subr.bf16.mxu1 %v3883_v18  ;;  %v691_v18 = vcombine.high %v669_v12, %v669_v12 }
  0x74   :  { %3477 = vmatpush3.bf16.msra.mxu0 %v3884_v19  ;;  %v3935_v19 = vld [vmem:[%s4981_s1 + $0x548] sm:$0xff]  }
  0x75   :  { %3478 = vmatprep.subr.bf16.mxu0 %v3886_v21  ;;  %v694_v21 = vcombine.high %v690_v15, %v690_v15 }
  0x76   :  { %3499 = vmatpush3.bf16.msra.mxu1 %v3885_v20  ;;  %v3936_v20 = vld [vmem:[%s4981_s1 + $0x5c8] sm:$0xff]  }
  0x77   :  { %3500 = vmatprep.subr.bf16.mxu1 %v3887_v22  ;;  %v3937_v22 = vld [vmem:[%s4981_s1 + $0x508] sm:$0xff]  }
  0x78   :  { %3479 = vmatpush3.bf16.msra.mxu0 %v3888_v23  ;;  %v3938_v23 = vld [vmem:[%s4981_s1 + $0x588] sm:$0xff]  }
  0x79   :  { %3480 = vmatprep.subr.bf16.mxu0 %v3890_v25  ;;  %v3940_v25 = vld [vmem:[%s4981_s1 + $0x5d0] sm:$0xff]  }
  0x7a   :  { %3501 = vmatpush3.bf16.msra.mxu1 %v3889_v24  ;;  %v3939_v24 = vld [vmem:[%s4981_s1 + $0x550] sm:$0xff]  }
  0x7b   :  { %3502 = vmatprep.subr.bf16.mxu1 %v3891_v26  ;;  %v3941_v26 = vld [vmem:[%s4981_s1 + $0x510] sm:$0xff]  }
  0x7c   :  { %3481 = vmatpush3.bf16.msra.mxu0 %v3892_v27  ;;  %v3942_v27 = vld [vmem:[%s4981_s1 + $0x590] sm:$0xff]  }
  0x7d   :  { %3482 = vmatprep.subr.bf16.mxu0 %v3894_v29  ;;  %v3944_v29 = vld [vmem:[%s4981_s1 + $0x5d8] sm:$0xff]  }
  0x7e   :  { %3503 = vmatpush3.bf16.msra.mxu1 %v3893_v28  ;;  %v3943_v28 = vld [vmem:[%s4981_s1 + $0x558] sm:$0xff]  }
  0x7f   :  { %3504 = vmatprep.subr.bf16.mxu1 %v3895_v30  ;;  %v3945_v30 = vld [vmem:[%s4981_s1 + $0x518] sm:$0xff]  }
  0x80   :  { %3483 = vmatpush3.bf16.msra.mxu0 %v3896_v31  ;;  %v3946_v31 = vld [vmem:[%s4981_s1 + $0x598] sm:$0xff]  }
  0x81   :  { %3512 = vmatprep.subr.bf16.mxu0 %v3899_v34  ;;  %v3949_v34 = vld [vmem:[%s4981_s1 + $0x520] sm:$0xff]  }
  0x82   :  { %3505 = vmatpush3.bf16.msra.mxu1 %v3897_v32  ;;  %v3947_v32 = vld [vmem:[%s4981_s1 + $0x560] sm:$0xff]  }
  0x83   :  { %2585 = vmatmul.mubr.bf16.vlgmr.msra.gmra.mrb[12].mxu0 %v627_v33  ;;  %3534 = vmatprep.subr.bf16.mxu1 %v3900_v35  ;;  %v3948_v33 = vld [vmem:[%s4981_s1 + $0x5e0] sm:$0xff]  }
  0x84   :  { %3513 = vmatpush3.bf16.msra.mxu0 %v3901_v36  ;;  %2664 = vmatprep.mubr.bf16.mxu0 %v683_v7  ;;  %v3950_v35 = vld [vmem:[%s4981_s1 + $0x5a0] sm:$0xff]   ;;  %v3951_v36 = vld [vmem:[%s4981_s1 + $0x568] sm:$0xff]  }
  0x85   :  { %2625 = vmatmul.mubr.bf16.vlgmr.msra.gmra.mrb[12].mxu1 %v643_v38  ;;  %3514 = vmatprep.subr.bf16.mxu0 %v3903_v39  ;;  %v3953_v38 = vld [vmem:[%s4981_s1 + $0x528] sm:$0xff]  }
  0x86   :  { %3535 = vmatpush3.bf16.msra.mxu1 %v3902_v37  ;;  %2704 = vmatprep.mubr.bf16.mxu1 %v693_v11  ;;  %v3952_v37 = vld [vmem:[%s4981_s1 + $0x5e8] sm:$0xff]   ;;  %v3988_v11 = vld [vmem:[%s4981_s1 + $0x670] sm:$0xff]  }
  0x87   :  { %3536 = vmatprep.subr.bf16.mxu1 %v3904_v40  ;;  %v3954_v39 = vld [vmem:[%s4981_s1 + $0x5a8] sm:$0xff]   ;;  %v3955_v40 = vld [vmem:[%s4981_s1 + $0x570] sm:$0xff]  }
  0x88   :  { %3515 = vmatpush3.bf16.msra.mxu0 %v3905_v42  ;;  %v3956_v42 = vld [vmem:[%s4981_s1 + $0x5f0] sm:$0xff]   ;;  %v3984_v7 = vld [vmem:[%s4981_s1 + $0x668] sm:$0xff]  }
  0x89   :  { %3516 = vmatprep.subr.bf16.mxu0 %v3907_v44  ;;  %v3958_v44 = vld [vmem:[%s4981_s1 + $0x5b0] sm:$0xff]  }
  0x8a   :  { %3537 = vmatpush3.bf16.msra.mxu1 %v3906_v43  ;;  %v3957_v43 = vld [vmem:[%s4981_s1 + $0x530] sm:$0xff]  }
  0x8b   :  { %3538 = vmatprep.subr.bf16.mxu1 %v3908_v45  ;;  %v3959_v45 = vld [vmem:[%s4981_s1 + $0x578] sm:$0xff]  }
  0x8c   :  { %3517 = vmatpush3.bf16.msra.mxu0 %v3909_v46  ;;  %v3960_v46 = vld [vmem:[%s4981_s1 + $0x5f8] sm:$0xff]  }
  0x8d   :  { %3518 = vmatprep.subr.bf16.mxu0 %v3911_v48  ;;  %v3962_v48 = vld [vmem:[%s4981_s1 + $0x5b8] sm:$0xff]  }
  0x8e   :  { %3539 = vmatpush3.bf16.msra.mxu1 %v3910_v47  ;;  %v3961_v47 = vld [vmem:[%s4981_s1 + $0x538] sm:$0xff]  }
  0x8f   :  { %3540 = vmatprep.subr.bf16.mxu1 %v3912_v49  ;;  %v676_v49 = vrot.slane %v4591_v4, %v4193_v41  ;;  %v3981_v4 = vld [vmem:[%s4981_s1 + $0x6e0] sm:$0xff]  }
  0x90   :  { %3519 = vmatpush3.bf16.msra.mxu0 %v3913_v50  ;;  %v3964_v50 = vld [vmem:[%s4981_s1 + $0x640] sm:$0xff]  }
  0x91   :  { %3520 = vmatprep.subr.bf16.mxu0 %v3915_v52  ;;  %v3966_v52 = vld [vmem:[%s4981_s1 + $0x600] sm:$0xff]  }
  0x92   :  { %3541 = vmatpush3.bf16.msra.mxu1 %v3914_v51  ;;  %v3965_v51 = vld [vmem:[%s4981_s1 + $0x6c0] sm:$0xff]  }
  0x93   :  { %3542 = vmatprep.subr.bf16.mxu1 %v3916_v53  ;;  %v3967_v53 = vld [vmem:[%s4981_s1 + $0x680] sm:$0xff]  }
  0x94   :  { %3521 = vmatpush3.bf16.msra.mxu0 %v3917_v54  ;;  %v692_v54 = vcombine.high %v676_v49, %v676_v49 }
  0x95   :  { %3522 = vmatprep.subr.bf16.mxu0 %v3919_v56  ;;  %v3969_v56 = vld [vmem:[%s4981_s1 + $0x6c8] sm:$0xff]  }
  0x96   :  { %3543 = vmatpush3.bf16.msra.mxu1 %v3918_v55  ;;  %v3968_v55 = vld [vmem:[%s4981_s1 + $0x648] sm:$0xff]  }
  0x97   :  { %3544 = vmatprep.subr.bf16.mxu1 %v3920_v57  ;;  %v3970_v57 = vld [vmem:[%s4981_s1 + $0x608] sm:$0xff]  }
  0x98   :  { %3523 = vmatpush3.bf16.msra.mxu0 %v3921_v58  ;;  %v3971_v58 = vld [vmem:[%s4981_s1 + $0x688] sm:$0xff]  }
  0x99   :  { %3524 = vmatprep.subr.bf16.mxu0 %v3923_v60  ;;  %v3973_v60 = vld [vmem:[%s4981_s1 + $0x6d0] sm:$0xff]  }
  0x9a   :  { %3545 = vmatpush3.bf16.msra.mxu1 %v3922_v59  ;;  %v3972_v59 = vld [vmem:[%s4981_s1 + $0x650] sm:$0xff]  }
  0x9b   :  { %3546 = vmatprep.subr.bf16.mxu1 %v3924_v62  ;;  %v3975_v62 = vld [vmem:[%s4981_s1 + $0x690] sm:$0xff]  }
  0x9c   :  { %3525 = vmatpush3.bf16.msra.mxu0 %v3925_v1  ;;  %v3978_v1 = vld [vmem:[%s4981_s1 + $0x618] sm:$0xff]  }
  0x9d   :  { %3526 = vmatprep.subr.bf16.mxu0 %v3927_v5  ;;  %v3982_v5 = vld [vmem:[%s4981_s1 + $0x620] sm:$0xff]  }
  0x9e   :  { %3547 = vmatpush3.bf16.msra.mxu1 %v3926_v2  ;;  %v3979_v2 = vld [vmem:[%s4981_s1 + $0x698] sm:$0xff]  }
  0x9f   :  { %3548 = vmatprep.subr.bf16.mxu1 %v3928_v6  ;;  %v3983_v6 = vld [vmem:[%s4981_s1 + $0x6a0] sm:$0xff]  }
  0xa0   :  { %3527 = vmatpush3.bf16.msra.mxu0 %v3929_v9  ;;  %v3986_v9 = vld [vmem:[%s4981_s1 + $0x628] sm:$0xff]  }
  0xa1   :  { %3556 = vmatprep.subr.bf16.mxu0 %v3931_v13  ;;  %v3989_v13 = vld [vmem:[%s4981_s1 + $0x6f0] sm:$0xff]  }
  0xa2   :  { %3549 = vmatpush3.bf16.msra.mxu1 %v3930_v10  ;;  %v3987_v10 = vld [vmem:[%s4981_s1 + $0x6a8] sm:$0xff]  }
  0xa3   :  { %2665 = vmatmul.mubr.bf16.vlgmr.msra.gmra.mrb[16].mxu0 %v669_v12  ;;  %3578 = vmatprep.subr.bf16.mxu1 %v3932_v14  ;;  %v31_v12 = vld [vmem:[%s4980_s0 + $0x18] sm:$0xff] }
  0xa4   :  { %3557 = vmatpush3.bf16.msra.mxu0 %v3933_v16  ;;  %2744 = vmatprep.mubr.bf16.mxu0 %v690_v15  ;;  %v702_v14 = vrot.slane %v31_v12, %v4193_v41  ;;  %v695_v15 = vcombine.high %v31_v12, %v31_v12  ;;  %v3990_v16 = vld [vmem:[%s4981_s1 + $0x630] sm:$0xff]  }
  0xa5   :  { %2705 = vmatmul.mubr.bf16.vlgmr.msra.gmra.mrb[16].mxu1 %v691_v18  ;;  %3558 = vmatprep.subr.bf16.mxu0 %v3935_v19 }
  0xa6   :  { %3579 = vmatpush3.bf16.msra.mxu1 %v3934_v17  ;;  %2784 = vmatprep.mubr.bf16.mxu1 %v694_v21  ;;  %v3992_v17 = vld [vmem:[%s4981_s1 + $0x678] sm:$0xff]   ;;  %v710_v18 = vcombine.high %v702_v14, %v702_v14  ;;  %v4797_v19 = vrot.slane %v695_v15, %v4193_v41 }
  0xa7   :  { %3580 = vmatprep.subr.bf16.mxu1 %v3936_v20  ;;  %v3991_v20 = vld [vmem:[%s4981_s1 + $0x6b0] sm:$0xff]   ;;  %v3993_v21 = vld [vmem:[%s4981_s1 + $0x6f8] sm:$0xff]  }
  0xa8   :  { %3559 = vmatpush3.bf16.msra.mxu0 %v3937_v22  ;;  %v732_v22 = vrot.slane %v710_v18, %v4193_v41 }
  0xa9   :  { %3560 = vmatprep.subr.bf16.mxu0 %v3939_v24  ;;  %v3994_v24 = vld [vmem:[%s4981_s1 + $0x638] sm:$0xff]  }
  0xaa   :  { %3581 = vmatpush3.bf16.msra.mxu1 %v3938_v23  ;;  %v711_v23 = vcombine.high %v4797_v19, %v4797_v19 }
  0xab   :  { %3582 = vmatprep.subr.bf16.mxu1 %v3940_v25  ;;  %v742_v25 = vcombine.high %v732_v22, %v732_v22 }
  0xac   :  { %3561 = vmatpush3.bf16.msra.mxu0 %v3941_v26  ;;  %v718_v26 = vrot.slane %v702_v14, %v4193_v41 }
  0xad   :  { %3562 = vmatprep.subr.bf16.mxu0 %v3943_v28  ;;  %v3995_v28 = vld [vmem:[%s4981_s1 + $0x6b8] sm:$0xff]  }
  0xae   :  { %3583 = vmatpush3.bf16.msra.mxu1 %v3942_v27  ;;  %v3996_v27 = vld [vmem:[%s4981_s1 + $0x740] sm:$0xff]  }
  0xaf   :  { %3584 = vmatprep.subr.bf16.mxu1 %v3944_v29  ;;  %v739_v29 = vrot.slane %v711_v23, %v4193_v41 }
  0xb0   :  { %3563 = vmatpush3.bf16.msra.mxu0 %v3945_v30  ;;  %v3997_v30 = vld [vmem:[%s4981_s1 + $0x7c0] sm:$0xff]  }
  0xb1   :  { %3564 = vmatprep.subr.bf16.mxu0 %v3947_v32  ;;  %v740_v32 = vcombine.high %v718_v26, %v718_v26 }
  0xb2   :  { %3585 = vmatpush3.bf16.msra.mxu1 %v3946_v31  ;;  %v3998_v31 = vld [vmem:[%s4981_s1 + $0x700] sm:$0xff]  }
  0xb3   :  { %3586 = vmatprep.subr.bf16.mxu1 %v3948_v33  ;;  %v4000_v33 = vld [vmem:[%s4981_s1 + $0x748] sm:$0xff]  }
  0xb4   :  { %3565 = vmatpush3.bf16.msra.mxu0 %v3949_v34  ;;  %v3999_v34 = vld [vmem:[%s4981_s1 + $0x780] sm:$0xff]  }
  0xb5   :  { %3566 = vmatprep.subr.bf16.mxu0 %v3951_v36  ;;  %v4001_v36 = vld [vmem:[%s4981_s1 + $0x7c8] sm:$0xff]  }
  0xb6   :  { %3587 = vmatpush3.bf16.msra.mxu1 %v3950_v35  ;;  %v743_v35 = vcombine.high %v739_v29, %v739_v29 }
  0xb7   :  { %3588 = vmatprep.subr.bf16.mxu1 %v3952_v37  ;;  %v4002_v37 = vld [vmem:[%s4981_s1 + $0x708] sm:$0xff]  }
  0xb8   :  { %3567 = vmatpush3.bf16.msra.mxu0 %v3953_v38  ;;  %v4004_v38 = vld [vmem:[%s4981_s1 + $0x750] sm:$0xff]  }
  0xb9   :  { %3568 = vmatprep.subr.bf16.mxu0 %v3955_v40  ;;  %v4005_v40 = vld [vmem:[%s4981_s1 + $0x7d0] sm:$0xff]  }
  0xba   :  { %3589 = vmatpush3.bf16.msra.mxu1 %v3954_v39  ;;  %v4003_v39 = vld [vmem:[%s4981_s1 + $0x788] sm:$0xff]  }
  0xbb   :  { %3590 = vmatprep.subr.bf16.mxu1 %v3956_v42  ;;  %v4006_v42 = vld [vmem:[%s4981_s1 + $0x710] sm:$0xff]  }
  0xbc   :  { %3569 = vmatpush3.bf16.msra.mxu0 %v3957_v43  ;;  %v4008_v43 = vld [vmem:[%s4981_s1 + $0x758] sm:$0xff]  }
  0xbd   :  { %3570 = vmatprep.subr.bf16.mxu0 %v3959_v45  ;;  %v4009_v45 = vld [vmem:[%s4981_s1 + $0x7d8] sm:$0xff]  }
  0xbe   :  { %3591 = vmatpush3.bf16.msra.mxu1 %v3958_v44  ;;  %v4007_v44 = vld [vmem:[%s4981_s1 + $0x790] sm:$0xff]  }
  0xbf   :  { %3592 = vmatprep.subr.bf16.mxu1 %v3960_v46  ;;  %v4010_v46 = vld [vmem:[%s4981_s1 + $0x718] sm:$0xff]  }
  0xc0   :  { %3571 = vmatpush3.bf16.msra.mxu0 %v3961_v47  ;;  %v4012_v47 = vld [vmem:[%s4981_s1 + $0x760] sm:$0xff]  }
  0xc1   :  { %3600 = vmatprep.subr.bf16.mxu0 %v3964_v50  ;;  %v4014_v50 = vld [vmem:[%s4981_s1 + $0x720] sm:$0xff]  }
  0xc2   :  { %3593 = vmatpush3.bf16.msra.mxu1 %v3962_v48  ;;  %v4011_v48 = vld [vmem:[%s4981_s1 + $0x798] sm:$0xff]  }
  0xc3   :  { %2745 = vmatmul.mubr.bf16.vlgmr.msra.gmra.mrb[20].mxu0 %v676_v49  ;;  %3622 = vmatprep.subr.bf16.mxu1 %v3965_v51  ;;  %v4013_v49 = vld [vmem:[%s4981_s1 + $0x7e0] sm:$0xff]   ;;  %v4016_v51 = vld [vmem:[%s4981_s1 + $0x768] sm:$0xff]  }
  0xc4   :  { %3601 = vmatpush3.bf16.msra.mxu0 %v3966_v52  ;;  %2824 = vmatprep.mubr.bf16.mxu0 %v732_v22  ;;  %v4015_v52 = vld [vmem:[%s4981_s1 + $0x7a0] sm:$0xff]  }
  0xc5   :  { %2785 = vmatmul.mubr.bf16.vlgmr.msra.gmra.mrb[20].mxu1 %v692_v54  ;;  %3602 = vmatprep.subr.bf16.mxu0 %v3968_v55  ;;  %v4018_v54 = vld [vmem:[%s4981_s1 + $0x728] sm:$0xff]   ;;  %v4020_v55 = vld [vmem:[%s4981_s1 + $0x770] sm:$0xff]  }
  0xc6   :  { %3623 = vmatpush3.bf16.msra.mxu1 %v3967_v53  ;;  %2864 = vmatprep.mubr.bf16.mxu1 %v742_v25  ;;  %v4017_v53 = vld [vmem:[%s4981_s1 + $0x7e8] sm:$0xff]  }
  0xc7   :  { %3624 = vmatprep.subr.bf16.mxu1 %v3969_v56 }
  0xc8   :  { %3603 = vmatpush3.bf16.msra.mxu0 %v3970_v57  ;;  %v4019_v57 = vld [vmem:[%s4981_s1 + $0x7a8] sm:$0xff]  }
  0xc9   :  { %3604 = vmatprep.subr.bf16.mxu0 %v3972_v59 }
  0xca   :  { %3625 = vmatpush3.bf16.msra.mxu1 %v3971_v58 }
  0xcb   :  { %3626 = vmatprep.subr.bf16.mxu1 %v3973_v60 }
  0xcc   :  { %3605 = vmatpush3.bf16.msra.mxu0 %v3974_v61 }
  0xcd   :  { %3606 = vmatprep.subr.bf16.mxu0 %v3976_v63 }
  0xce   :  { %3627 = vmatpush3.bf16.msra.mxu1 %v3975_v62 }
  0xcf   :  { %3628 = vmatprep.subr.bf16.mxu1 %v3977_v0 }
  0xd0   :  { %3607 = vmatpush3.bf16.msra.mxu0 %v3978_v1 }
  0xd1   :  { %3608 = vmatprep.subr.bf16.mxu0 %v3980_v3 }
  0xd2   :  { %3629 = vmatpush3.bf16.msra.mxu1 %v3979_v2 }
  0xd3   :  { %3630 = vmatprep.subr.bf16.mxu1 %v3981_v4 }
  0xd4   :  { %3609 = vmatpush3.bf16.msra.mxu0 %v3982_v5 }
  0xd5   :  { %3610 = vmatprep.subr.bf16.mxu0 %v3984_v7 }
  0xd6   :  { %3631 = vmatpush3.bf16.msra.mxu1 %v3983_v6 }
  0xd7   :  { %3632 = vmatprep.subr.bf16.mxu1 %v3985_v8 }
  0xd8   :  { %3611 = vmatpush3.bf16.msra.mxu0 %v3986_v9 }
  0xd9   :  { %3612 = vmatprep.subr.bf16.mxu0 %v3988_v11 }
  0xda   :  { %3633 = vmatpush3.bf16.msra.mxu1 %v3987_v10 }
  0xdb   :  { %3634 = vmatprep.subr.bf16.mxu1 %v3989_v13 }
  0xdc   :  { %3613 = vmatpush3.bf16.msra.mxu0 %v3990_v16 }
  0xdd   :  { %3614 = vmatprep.subr.bf16.mxu0 %v3992_v17 }
  0xde   :  { %3635 = vmatpush3.bf16.msra.mxu1 %v3991_v20 }
  0xdf   :  { %3636 = vmatprep.subr.bf16.mxu1 %v3993_v21 }
  0xe0   :  { %3615 = vmatpush3.bf16.msra.mxu0 %v3994_v24 }
  0xe1   :  { %3644 = vmatprep.subr.bf16.mxu0 %v3996_v27 }
  0xe2   :  { %3637 = vmatpush3.bf16.msra.mxu1 %v3995_v28 }
  0xe3   :  { %2825 = vmatmul.mubr.bf16.vlgmr.msra.gmra.mrb[24].mxu0 %v718_v26  ;;  %3666 = vmatprep.subr.bf16.mxu1 %v3997_v30 }
  0xe4   :  { %3645 = vmatpush3.bf16.msra.mxu0 %v3998_v31  ;;  %2904 = vmatprep.mubr.bf16.mxu0 %v739_v29 }
  0xe5   :  { %2865 = vmatmul.mubr.bf16.vlgmr.msra.gmra.mrb[24].mxu1 %v740_v32  ;;  %3646 = vmatprep.subr.bf16.mxu0 %v4000_v33 }
  0xe6   :  { %3667 = vmatpush3.bf16.msra.mxu1 %v3999_v34  ;;  %2944 = vmatprep.mubr.bf16.mxu1 %v743_v35 }
  0xe7   :  { %3668 = vmatprep.subr.bf16.mxu1 %v4001_v36 }
  0xe8   :  { %3647 = vmatpush3.bf16.msra.mxu0 %v4002_v37 }
  0xe9   :  { %3648 = vmatprep.subr.bf16.mxu0 %v4004_v38 }
  0xea   :  { %3669 = vmatpush3.bf16.msra.mxu1 %v4003_v39 }
  0xeb   :  { %3670 = vmatprep.subr.bf16.mxu1 %v4005_v40 }
  0xec   :  { %3649 = vmatpush3.bf16.msra.mxu0 %v4006_v42 }
  0xed   :  { %3650 = vmatprep.subr.bf16.mxu0 %v4008_v43 }
  0xee   :  { %3671 = vmatpush3.bf16.msra.mxu1 %v4007_v44 }
  0xef   :  { %3672 = vmatprep.subr.bf16.mxu1 %v4009_v45 }
  0xf0   :  { %3651 = vmatpush3.bf16.msra.mxu0 %v4010_v46 }
  0xf1   :  { %3652 = vmatprep.subr.bf16.mxu0 %v4012_v47 }
  0xf2   :  { %3673 = vmatpush3.bf16.msra.mxu1 %v4011_v48 }
  0xf3   :  { %3674 = vmatprep.subr.bf16.mxu1 %v4013_v49 }
  0xf4   :  { %3653 = vmatpush3.bf16.msra.mxu0 %v4014_v50 }
  0xf5   :  { %3654 = vmatprep.subr.bf16.mxu0 %v4016_v51 }
  0xf6   :  { %3675 = vmatpush3.bf16.msra.mxu1 %v4015_v52  ;;  %v3352_v56 = vpop.f32.mrb[0].mxu0 }
  0xf7   :  { %10 = vsyncpa [#allocation4], 0  ;;  %v3353_v58 = vpop.f32.mrb[1].mxu0  ;;  %3676 = vmatprep.subr.bf16.mxu1 %v4017_v53  ;;  %v4021_v59 = vld [vmem:[%s4981_s1 + $0x7f0] sm:$0xff]   ;;  %v3374_v60 = vpop.f32.mrb[0].mxu1  ;;  %v4024_v2 = vld [vmem:[%s4981_s1 + $0x778] sm:$0xff]   ;;  %v725_v10 = vrot.slane %v4797_v19, %v4193_v41 }
  0xf8   :  { %v3354_v61 = vadd.f32 %v3353_v58, %v3352_v56  ;;  %v3355_v62 = vpop.f32.mrb[2].mxu0  ;;  %3655 = vmatpush3.bf16.msra.mxu0 %v4018_v54  ;;  %v4022_v63 = vld [vmem:[%s4981_s1 + $0x730] sm:$0xff]   ;;  %v3375_v0 = vpop.f32.mrb[1].mxu1  ;;  %v4025_v7 = vld [vmem:[%s4981_s1 + $0x7f8] sm:$0xff]   ;;  %v2969_v36 = vld [vmem:[%s4983_s3] sm:$0xff]  ;;  %v4054_v39 = vmov 0.0|0.0  }
  0xf9   :  { %v3356_v1 = vpop.f32.mrb[3].mxu0  ;;  %3656 = vmatprep.subr.bf16.mxu0 %v4020_v55  ;;  %v3376_v3 = vadd.f32 %v3375_v0, %v3374_v60  ;;  %v3377_v4 = vpop.f32.mrb[2].mxu1  ;;  %v4023_v5 = vld [vmem:[%s4981_s1 + $0x7b0] sm:$0xff]   ;;  %v4026_v9 = vld [vmem:[%s4981_s1 + $0x738] sm:$0xff]   ;;  %v741_v12 = vcombine.high %v725_v10, %v725_v10  ;;  %v2970_v37 = vld [vmem:[%s4983_s3 + $0x8] sm:$0xff]  ;;  %v4055_v52 = vmov 0.0  }
  0xfa   :  { %3677 = vmatpush3.bf16.msra.mxu1 %v4019_v57  ;;  %v3378_v6 = vpop.f32.mrb[3].mxu1  ;;  %v4027_v11 = vld [vmem:[%s4981_s1 + $0x7b8] sm:$0xff]   ;;  %v2971_v38 = vld [vmem:[%s4983_s3 + $0x10] sm:$0xff]  ;;  %v3741_v40 = vpack.c.bf16 %v2970_v37, %v2969_v36  ;;  %v2973_v44 = vld [vmem:[%s4983_s3 + $0x20] sm:$0xff]  ;;  %26 = vst [vmem:[#allocation2] sm:$0x3] %v4055_v52 }
  0xfb   :  { %3678 = vmatprep.subr.bf16.mxu1 %v4021_v59  ;;  %v2387_v8 = vadd.f32 %v3376_v3, %v3354_v61  ;;  %v2972_v42 = vld [vmem:[%s4983_s3 + $0x18] sm:$0xff]  ;;  %v2974_v45 = vld [vmem:[%s4983_s3 + $0x28] sm:$0xff]  ;;  %v2975_v55 = vld [vmem:[%s4983_s3 + $0x30] sm:$0xff]  ;;  %vm4056_vm0 = vmmov 0   ;;  %s4057_s16 = smov [#allocation3]   ;;  %vm3062_vm2 = vcmask 74752  }
  0xfc   :  { %3657 = vmatpush3.bf16.msra.mxu0 %v4022_v63  ;;  %v3744_v43 = vpack.c.bf16 %v2972_v42, %v2971_v38  ;;  %v3747_v47 = vpack.c.bf16 %v2974_v45, %v2973_v44  ;;  %v2976_v56 = vld [vmem:[%s4983_s3 + $0x38] sm:$0xff]  ;;  %v2977_v63 = vld [vmem:[%s4983_s3 + $0x40] sm:$0xff]  ;;  %v2978_v0 = vld [vmem:[%s4983_s3 + $0x48] sm:$0xff]  ;;  %s3070_s17 = sshll.u32 %s4057_s16, 4  ;;  %s3071_s17 = int_to_ptr.vmem [resolvable:$true] %s3070_s17 }
  0xfd   :  { %3658 = vmatprep.subr.bf16.mxu0 %v4024_v2  ;;  %v3750_v60 = vpack.c.bf16 %v2976_v56, %v2975_v55  ;;  %v3753_v1 = vpack.c.bf16 %v2978_v0, %v2977_v63  ;;  %v2979_v2 = vld [vmem:[%s4983_s3 + $0x50] sm:$0xff]  ;;  %v2980_v3 = vld [vmem:[%s4983_s3 + $0x58] sm:$0xff]  ;;  %v2982_v6 = vld [vmem:[%s4983_s3 + $0x68] sm:$0xff]  ;;  %s4029_s18 = scalar_lea.vmem %s3071_s17, 32  ;;  %p4034_p1 = scmp.lt.s32.totalorder %s3071_s17, %s3071_s17 }
  0xfe   :  { %3679 = vmatpush3.bf16.msra.mxu1 %v4023_v5  ;;  %v3756_v4 = vpack.c.bf16 %v2980_v3, %v2979_v2  ;;  %v2981_v5 = vld [vmem:[%s4983_s3 + $0x60] sm:$0xff]  ;;  %p4030_p0 = scmp.ne.s32.totalorder %s3071_s17, %s4029_s18  ;;  %p4035_p2 = scmp.lt.s32.totalorder %s4029_s18, %s4029_s18 }
  0xff   :  { %3680 = vmatprep.subr.bf16.mxu1 %v4025_v7  ;;  %v3759_v7 = vpack.c.bf16 %v2982_v6, %v2981_v5  ;;  %v3335_v2 = vld [vmem:[%s4984_s4] ss:$0 sm:$0xff] }
 0x100   :  { %3659 = vmatpush3.bf16.msra.mxu0 %v4026_v9  ;;  %v2984_v9 = vld [vmem:[%s4983_s3 + $0x78] sm:$0xff]  ;;  %p4036_p3 = por %p4035_p2, %p4034_p1 }
 0x101   :  { %3740 = vmatprep.subr.bf16.mxu0 %v4054_v39 }
 0x102   :  { %3681 = vmatpush3.bf16.msra.mxu1 %v4027_v11  ;;  %p4037_p4 = pnand %p4036_p3, %p4030_p0 }
 0x103   :  { %2905 = vmatmul.mubr.bf16.vlgmr.msra.gmra.mrb[28].mxu0 %v725_v10 }
 0x104   :  { %3742 = vmatpush3.bf16.msra.mxu0 %v3741_v40  ;;  %3737 = vmatprep.mubr.msk.f32.mxu0 %vm4056_vm0, %v4055_v52 }
 0x105   :  { %2945 = vmatmul.mubr.bf16.vlgmr.msra.gmra.mrb[28].mxu1 %v741_v12  ;;  %3743 = vmatprep.subr.bf16.mxu0 %v4054_v39 }
 0x108   :  { %3745 = vmatpush3.bf16.msra.mxu0 %v3744_v43 }
 0x109   :  { %3746 = vmatprep.subr.bf16.mxu0 %v4054_v39 }
 0x10c   :  { %3748 = vmatpush3.bf16.msra.mxu0 %v3747_v47 }
 0x10d   :  { %3749 = vmatprep.subr.bf16.mxu0 %v4054_v39 }
 0x110   :  { %3751 = vmatpush3.bf16.msra.mxu0 %v3750_v60 }
 0x111   :  { %3752 = vmatprep.subr.bf16.mxu0 %v4054_v39 }
 0x114   :  { %3754 = vmatpush3.bf16.msra.mxu0 %v3753_v1 }
 0x115   :  { %3755 = vmatprep.subr.bf16.mxu0 %v4054_v39 }
 0x116   :  { %v3396_v13 = vpop.f32.mrb[4].mxu0 }
 0x117   :  { %v3397_v14 = vpop.f32.mrb[5].mxu0  ;;  %v3418_v15 = vpop.f32.mrb[4].mxu1 }
 0x118   :  { %v3398_v16 = vadd.f32 %v3397_v14, %v3396_v13  ;;  %v3399_v17 = vpop.f32.mrb[6].mxu0  ;;  %v3419_v18 = vpop.f32.mrb[5].mxu1  ;;  %3757 = vmatpush3.bf16.msra.mxu0 %v3756_v4 }
 0x119   :  { %v3400_v20 = vpop.f32.mrb[7].mxu0  ;;  %v3420_v41 = vadd.f32 %v3419_v18, %v3418_v15  ;;  %v3421_v19 = vpop.f32.mrb[6].mxu1  ;;  %3758 = vmatprep.subr.bf16.mxu0 %v4054_v39 }
 0x11a   :  { %v2427_v21 = vadd.f32 %v3398_v16, %v2387_v8  ;;  %v3422_v22 = vpop.f32.mrb[7].mxu1  ;;  %v2983_v8 = vld [vmem:[%s4983_s3 + $0x70] sm:$0xff] }
 0x11b   :  { %v3762_v10 = vpack.c.bf16 %v2984_v9, %v2983_v8 }
 0x11c   :  { %v2467_v23 = vadd.f32 %v3420_v41, %v2427_v21  ;;  %3760 = vmatpush3.bf16.msra.mxu0 %v3759_v7 }
 0x11d   :  { %3761 = vmatprep.subr.bf16.mxu0 %v4054_v39 }
 0x120   :  { %3763 = vmatpush3.bf16.msra.mxu0 %v3762_v10 }
 0x136   :  { %v3440_v24 = vpop.f32.mrb[8].mxu0 }
 0x137   :  { %v3441_v25 = vpop.f32.mrb[9].mxu0 }
 0x138   :  { %v3462_v26 = vpop.f32.mrb[8].mxu1  ;;  %v3442_v27 = vadd.f32 %v3441_v25, %v3440_v24  ;;  %v3443_v28 = vpop.f32.mrb[10].mxu0 }
 0x139   :  { %v3463_v29 = vpop.f32.mrb[9].mxu1  ;;  %v3444_v30 = vpop.f32.mrb[11].mxu0 }
 0x13a   :  { %v2507_v31 = vadd.f32 %v3442_v27, %v2467_v23  ;;  %v3464_v32 = vadd.f32 %v3463_v29, %v3462_v26  ;;  %v3465_v33 = vpop.f32.mrb[10].mxu1 }
 0x13b   :  { %v3466_v34 = vpop.f32.mrb[11].mxu1 }
 0x13c   :  { %v2547_v35 = vadd.f32 %v3464_v32, %v2507_v31 }
 0x156   :  { %v3484_v46 = vpop.f32.mrb[12].mxu0 }
 0x157   :  { %v3485_v48 = vpop.f32.mrb[13].mxu0 }
 0x158   :  { %v3506_v49 = vpop.f32.mrb[12].mxu1  ;;  %v3486_v50 = vadd.f32 %v3485_v48, %v3484_v46  ;;  %v3487_v51 = vpop.f32.mrb[14].mxu0 }
 0x159   :  { %v3507_v53 = vpop.f32.mrb[13].mxu1  ;;  %v3488_v54 = vpop.f32.mrb[15].mxu0 }
 0x15a   :  { %v2587_v57 = vadd.f32 %v3486_v50, %v2547_v35  ;;  %v3508_v58 = vadd.f32 %v3507_v53, %v3506_v49  ;;  %v3509_v59 = vpop.f32.mrb[14].mxu1 }
 0x15b   :  { %v3510_v61 = vpop.f32.mrb[15].mxu1 }
 0x15c   :  { %v2627_v62 = vadd.f32 %v3508_v58, %v2587_v57  ;;  %v27_v58 = vld [vmem:[#allocation2] sm:$0x3] }
 0x15d   :  { %v3334_v61 = vld [vmem:[%s4982_s2] ss:$0 sm:$0xff] }
 0x176   :  { %v3528_v11 = vpop.f32.mrb[16].mxu0 }
 0x177   :  { %v3529_v12 = vpop.f32.mrb[17].mxu0 }
 0x178   :  { %v3550_v13 = vpop.f32.mrb[16].mxu1  ;;  %v3530_v14 = vadd.f32 %v3529_v12, %v3528_v11  ;;  %v3531_v15 = vpop.f32.mrb[18].mxu0 }
 0x179   :  { %v3551_v16 = vpop.f32.mrb[17].mxu1  ;;  %v3532_v17 = vpop.f32.mrb[19].mxu0 }
 0x17a   :  { %v2667_v18 = vadd.f32 %v3530_v14, %v2627_v62  ;;  %v3552_v20 = vadd.f32 %v3551_v16, %v3550_v13  ;;  %v3553_v21 = vpop.f32.mrb[18].mxu1 }
 0x17b   :  { %v3554_v41 = vpop.f32.mrb[19].mxu1 }
 0x17c   :  { %v2707_v19 = vadd.f32 %v3552_v20, %v2667_v18 }
 0x196   :  { %v3572_v22 = vpop.f32.mrb[20].mxu0 }
 0x197   :  { %v3573_v23 = vpop.f32.mrb[21].mxu0 }
 0x198   :  { %v3594_v24 = vpop.f32.mrb[20].mxu1  ;;  %v3574_v25 = vadd.f32 %v3573_v23, %v3572_v22  ;;  %v3575_v26 = vpop.f32.mrb[22].mxu0 }
 0x199   :  { %v3595_v27 = vpop.f32.mrb[21].mxu1  ;;  %v3576_v28 = vpop.f32.mrb[23].mxu0 }
 0x19a   :  { %v2747_v29 = vadd.f32 %v3574_v25, %v2707_v19  ;;  %v3596_v30 = vadd.f32 %v3595_v27, %v3594_v24  ;;  %v3597_v31 = vpop.f32.mrb[22].mxu1 }
 0x19b   :  { %v3598_v32 = vpop.f32.mrb[23].mxu1 }
 0x19c   :  { %v2787_v33 = vadd.f32 %v3596_v30, %v2747_v29 }
 0x1b6   :  { %v3616_v34 = vpop.f32.mrb[24].mxu0 }
 0x1b7   :  { %v3617_v35 = vpop.f32.mrb[25].mxu0 }
 0x1b8   :  { %v3638_v36 = vpop.f32.mrb[24].mxu1  ;;  %v3618_v37 = vadd.f32 %v3617_v35, %v3616_v34  ;;  %v3619_v38 = vpop.f32.mrb[26].mxu0 }
 0x1b9   :  { %v3639_v39 = vpop.f32.mrb[25].mxu1  ;;  %v3620_v40 = vpop.f32.mrb[27].mxu0 }
 0x1ba   :  { %v2827_v42 = vadd.f32 %v3618_v37, %v2787_v33  ;;  %v3640_v43 = vadd.f32 %v3639_v39, %v3638_v36  ;;  %v3641_v44 = vpop.f32.mrb[26].mxu1 }
 0x1bb   :  { %v3642_v45 = vpop.f32.mrb[27].mxu1 }
 0x1bc   :  { %v2867_v46 = vadd.f32 %v3640_v43, %v2827_v42 }
 0x1d6   :  { %v3660_v47 = vpop.f32.mrb[28].mxu0 }
 0x1d7   :  { %v3661_v48 = vpop.f32.mrb[29].mxu0 }
 0x1d8   :  { %v3682_v49 = vpop.f32.mrb[28].mxu1  ;;  %v3662_v50 = vadd.f32 %v3661_v48, %v3660_v47  ;;  %v3663_v51 = vpop.f32.mrb[30].mxu0 }
 0x1d9   :  { %v3683_v52 = vpop.f32.mrb[29].mxu1  ;;  %v3664_v53 = vpop.f32.mrb[31].mxu0 }
 0x1da   :  { %v2907_v54 = vadd.f32 %v3662_v50, %v2867_v46  ;;  %v3684_v55 = vadd.f32 %v3683_v52, %v3682_v49  ;;  %v3685_v56 = vpop.f32.mrb[30].mxu1 }
 0x1db   :  { %v3686_v57 = vpop.f32.mrb[31].mxu1 }
 0x1dc   :  { %v2947_v59 = vadd.f32 %v3684_v55, %v2907_v54 }
 0x1de   :  { %v2952_v60 = vadd.f32 %v2947_v59, %v27_v58 }
 0x1e0   :  { %2953 = vst [vmem:[#allocation2] sm:$0x3] %v2952_v60 }
 0x1e7   :  { %v2957_v62 = vld [vmem:[#allocation2] sm:$0x3] }
 0x1e8   :  { %v2965_v63 = vadd.f32 %v3334_v61, %v2957_v62 }
 0x1ea   :  { %vm2966_vm1 = vcmp.ge.f32.partialorder %v2965_v63, 0.0  ;;  %v2967_v0 = vmul.f32 0.01, %v2965_v63 }
 0x1ec   :  { %v2968_v1 = vsel %vm2966_vm1, %v2965_v63, %v2967_v0 }
 0x1ed   :  { %3738 = vmatmul.mubr.f32.vlgmr.msra.gmra.mrb[32].mxu0 %v2968_v1 }
 0x2c0   :  { %v3058_v3 = vpop.f32.mrb[32].mxu0 }
 0x2c1   :  { %v3059_v4 = vadd.f32 %v3335_v2, %v3058_v3  ;;  %v3739_v5 = vpop.f32.mrb[33].mxu0 }
 0x2c3   :  { %3063 = vst.msk [vmem:[#allocation3] sm:$0x3] %vm3062_vm2, %v3059_v4 }
 0x2c4   :  { %4040 = shalt.err (!%p4037_p4)
}
 0x2c5   :  { %s4041_s20 = scalar_lea.hbm %s4985_s5, 32 }
 0x2c6   :  { %p4042_p5 = scmp.ne.s32.totalorder %s4985_s5, %s4041_s20  ;;  %p4045_p6 = scmp.lt.u32.totalorder %s4041_s20, %s4985_s5 }
 0x2c8   :  { %p4047_p7 = pnand %p4045_p6, %p4042_p5 }
 0x2ca   :  { %4050 = shalt.err (!%p4047_p7)
}
 0x2cb   :  { %3073 = dma.vmem_to_hbm [thread:$0]  %s3071_s17, 32, %s4985_s5, [#allocation4]  }
 0x2cc   :  { %4051 = dma.done.wait [#allocation4], 32  }
 0x2cd   :  { %4052 = vsyncadd [#allocation4], 4294967264 }
 0x2ce   :  { %3077 = vsyncpa [#allocation4], 1 }

</bundles_post_ra>
